<compile_context>
chip_gen: v5e
topology: v5e:2x2
jax: 0.10.0
libtpu: 0.0.40
codegen_flags: <defaults>
</compile_context>

<pallas_src>
import functools

import jax
import jax.numpy as jnp
from jax import lax
from jax.experimental import pallas as pl
from jax.experimental.pallas import tpu as pltpu


def _round_up(x, m):
    return ((x + m - 1) // m) * m


# ---------------------------------------------------------------------------
# Kernel
# ---------------------------------------------------------------------------
def _gru_layers(gi0_ref, wih_ref, whh_ref, bih_ref, bhn_ref, out_ref, gi_scr):
    """Shared body for the fused multi-layer GRU.

    gi0_ref : (T, Bp, 3Hp) bf16  layer-0 input projection (bias pre-folded)
    wih_ref : (L-1, Hp, 3Hp) bf16  W_ih^T for layers 1..L-1   (None if L == 1)
    whh_ref : (L,   Hp, 3Hp) bf16  W_hh^T for all layers
    bih_ref : (L-1, 1, 3Hp) f32    folded input+hidden(r,z) bias, layers 1..L-1
    bhn_ref : (L,   1, Hp)  f32    hidden n-gate bias per layer
    out_ref : (T, Bp, Hp)   bf16   last-layer hidden states (time-major)
    gi_scr  : (T, Bp, 3Hp)  bf16   scratch: next layer's input projection
    """
    T, Bp, Hp = out_ref.shape
    L = whh_ref.shape[0]
    unroll = max(1, min(T, 8))   # bounded unroll: ILP without vreg spills

    for layer in range(L):                       # static unroll over layers
        gi_src = gi0_ref if layer == 0 else gi_scr
        whh = whh_ref[layer]                     # (Hp, 3Hp) bf16
        # Only the n-gate hidden bias survives in the loop; hoist its broadcast.
        bhn_b = jnp.broadcast_to(bhn_ref[layer], (Bp, Hp))       # (Bp, Hp) f32
        has_next = layer + 1 < L
        if has_next:
            wih_next = wih_ref[layer]            # weights of layer `layer+1`
            bih_next_b = jnp.broadcast_to(bih_ref[layer], (Bp, 3 * Hp))

        def step(t, h_prev):
            gi = gi_src[t].astype(jnp.float32)   # (Bp, 3Hp)
            gh = jnp.dot(h_prev.astype(whh.dtype), whh,
                         preferred_element_type=jnp.float32)     # no bias here
            # gate slices are 128-lane aligned (Hp is a multiple of 128)
            i_r, i_z, i_n = gi[:, :Hp], gi[:, Hp:2 * Hp], gi[:, 2 * Hp:]
            h_r, h_z, h_n = gh[:, :Hp], gh[:, Hp:2 * Hp], gh[:, 2 * Hp:]
            r = jax.nn.sigmoid(i_r + h_r)        # b_ir + b_hr already in i_r
            z = jax.nn.sigmoid(i_z + h_z)        # b_iz + b_hz already in i_z
            n = jnp.tanh(i_n + r * (h_n + bhn_b))
            h_new = (1.0 - z) * n + z * h_prev
            h_b = h_new.astype(out_ref.dtype)    # bf16 once, reused below
            out_ref[t] = h_b
            if has_next:
                # Next layer's input projection, fused into this step: off the
                # recurrence critical path, overlaps with the next step's gh dot.
                gi_next = jnp.dot(h_b, wih_next,
                                  preferred_element_type=jnp.float32) + bih_next_b
                gi_scr[t] = gi_next.astype(gi_scr.dtype)
            return h_new                          # carry stays f32 in vregs

        h0 = jnp.zeros((Bp, Hp), jnp.float32)
        lax.fori_loop(0, T, step, h0, unroll=unroll)


def _fused_gru_kernel_multi(gi0_ref, wih_ref, whh_ref, bih_ref, bhn_ref,
                            out_ref, gi_scr):
    _gru_layers(gi0_ref, wih_ref, whh_ref, bih_ref, bhn_ref, out_ref, gi_scr)


def _fused_gru_kernel_single(gi0_ref, whh_ref, bhn_ref, out_ref):
    _gru_layers(gi0_ref, None, whh_ref, None, bhn_ref, out_ref, None)


# ---------------------------------------------------------------------------
# Parameter preparation (done once, outside the forward pass)
# ---------------------------------------------------------------------------
def _pad_gates_t(w, hid_dim, hp, pad_rows_to=None):
    """(3H, D_in) PyTorch weight -> transposed, gate-padded (rows, 3*hp)."""
    h = hid_dim
    d_in = w.shape[1]
    rows = d_in if pad_rows_to is None else pad_rows_to
    wt = w.T                                            # (d_in, 3H)
    out = jnp.zeros((rows, 3 * hp), w.dtype)
    for g in range(3):                                  # gate order r, z, n
        out = out.at[:d_in, g * hp:g * hp + h].set(wt[:, g * h:(g + 1) * h])
    return out


def _fold_bias(b_ih, b_hh, hid_dim, hp):
    """Fold b_hr/b_hz into the input-projection bias (n-gate keeps b_in only)."""
    h = hid_dim
    out = jnp.zeros((3 * hp,), jnp.float32)
    out = out.at[0 * hp:0 * hp + h].set(b_ih[0 * h:1 * h] + b_hh[0 * h:1 * h])  # r
    out = out.at[1 * hp:1 * hp + h].set(b_ih[1 * h:2 * h] + b_hh[1 * h:2 * h])  # z
    out = out.at[2 * hp:2 * hp + h].set(b_ih[2 * h:3 * h])                      # n
    return out


def _pad_hn_bias(b_hh, hid_dim, hp):
    out = jnp.zeros((hp,), jnp.float32)
    return out.at[:hid_dim].set(b_hh[2 * hid_dim:3 * hid_dim])


def prepare_rnn_decoder_params(params, hid_dim):
    """Pre-transpose, gate-pad (H -> multiple of 128), fold biases, bf16-cast once."""
    L = len(params)
    hp = _round_up(hid_dim, 128)

    w_ih0, _, b_ih0, b_hh0 = params[0]
    wih0_t = _pad_gates_t(w_ih0, hid_dim, hp).astype(jnp.bfloat16)       # (D, 3Hp)
    bih0 = _fold_bias(b_ih0, b_hh0, hid_dim, hp)                          # (3Hp,) f32

    whh_t = jnp.stack(
        [_pad_gates_t(p[1], hid_dim, hp, pad_rows_to=hp) for p in params]
    ).astype(jnp.bfloat16)                                                # (L, Hp, 3Hp)
    bhn = jnp.stack(
        [_pad_hn_bias(p[3], hid_dim, hp) for p in params]
    ).astype(jnp.float32)[:, None, :]                                     # (L, 1, Hp)

    if L > 1:
        wih_t = jnp.stack(
            [_pad_gates_t(params[l][0], hid_dim, hp, pad_rows_to=hp)
             for l in range(1, L)]
        ).astype(jnp.bfloat16)                                            # (L-1, Hp, 3Hp)
        bih = jnp.stack(
            [_fold_bias(params[l][2], params[l][3], hid_dim, hp)
             for l in range(1, L)]
        ).astype(jnp.float32)[:, None, :]                                 # (L-1, 1, 3Hp)
    else:
        wih_t = None                                                      # specialized
        bih = None

    return dict(wih0_t=wih0_t, bih0=bih0, wih_t=wih_t, bih=bih,
                whh_t=whh_t, bhn=bhn)


def init_gru_params(key, in_dim, hid_dim, n_layers):
    """Deterministic PyTorch-style init: U(-1/sqrt(hid), 1/sqrt(hid))."""
    bound = 1.0 / jnp.sqrt(jnp.float32(hid_dim))
    params = []
    for layer in range(n_layers):
        d_in = in_dim if layer == 0 else hid_dim
        key, k1, k2, k3, k4 = jax.random.split(key, 5)
        w_ih = jax.random.uniform(k1, (3 * hid_dim, d_in), jnp.float32, -bound, bound)
        w_hh = jax.random.uniform(k2, (3 * hid_dim, hid_dim), jnp.float32, -bound, bound)
        b_ih = jax.random.uniform(k3, (3 * hid_dim,), jnp.float32, -bound, bound)
        b_hh = jax.random.uniform(k4, (3 * hid_dim,), jnp.float32, -bound, bound)
        params.append((w_ih, w_hh, b_ih, b_hh))
    return params


# ---------------------------------------------------------------------------
# Forward
# ---------------------------------------------------------------------------
def _nbytes(a):
    return int(a.size) * a.dtype.itemsize


@functools.partial(jax.jit, static_argnames=("hid_dim",))
def rnn_decoder_forward(x_btd, prepared, *, hid_dim):
    """x_btd: (B, T, in_dim) float.  Returns decoder_out: (B, T, hid_dim) f32."""
    B, T, _ = x_btd.shape
    L, hp, three_hp = prepared["whh_t"].shape
    Bp = _round_up(max(B, 8), 8)
    single = prepared["wih_t"] is None

    # Time-major, batch padded to a full sublane tile.
    x_tbd = jnp.transpose(x_btd, (1, 0, 2)).astype(jnp.float32)
    x_tbd = jnp.pad(x_tbd, ((0, 0), (0, Bp - B), (0, 0)))

    # Layer-0 input projection hoisted out of the recurrence (one big matmul);
    # bias (with b_hr/b_hz folded in) added in f32, result shipped as bf16.
    gi0 = (jnp.einsum("tbd,dg->tbg",
                      x_tbd.astype(jnp.bfloat16), prepared["wih0_t"],
                      preferred_element_type=jnp.float32)
           + prepared["bih0"]).astype(jnp.bfloat16)

    # VMEM budget: double-buffered full blocks + weights + scratch, with margin.
    gi0_bytes = T * Bp * three_hp * 2
    out_bytes = T * Bp * hp * 2
    scr_bytes = 0 if single else gi0_bytes
    w_bytes = _nbytes(prepared["whh_t"]) + _nbytes(prepared["bhn"])
    if not single:
        w_bytes += _nbytes(prepared["wih_t"]) + _nbytes(prepared["bih"])
    needed = 2 * gi0_bytes + 2 * out_bytes + scr_bytes + 2 * w_bytes
    vmem_limit = int(min(max(2 * needed, 16 * 2 ** 20), 64 * 2 ** 20))

    out_shape = jax.ShapeDtypeStruct((T, Bp, hp), jnp.bfloat16)
    out_spec = pl.BlockSpec((T, Bp, hp), lambda i: (0, 0, 0))
    gi0_spec = pl.BlockSpec((T, Bp, three_hp), lambda i: (0, 0, 0))
    compiler_params = pltpu.CompilerParams(
        dimension_semantics=("arbitrary",),      # recurrence: sequential
        vmem_limit_bytes=vmem_limit,
    )

    if single:
        out_tbh = pl.pallas_call(
            _fused_gru_kernel_single,
            out_shape=out_shape,
            grid_spec=pltpu.PrefetchScalarGridSpec(
                num_scalar_prefetch=0,
                grid=(1,),
                in_specs=[
                    gi0_spec,
                    pl.BlockSpec(prepared["whh_t"].shape, lambda i: (0, 0, 0)),
                    pl.BlockSpec(prepared["bhn"].shape, lambda i: (0, 0, 0)),
                ],
                out_specs=out_spec,
                scratch_shapes=[],
            ),
            compiler_params=compiler_params,
        )(gi0, prepared["whh_t"], prepared["bhn"])
    else:
        out_tbh = pl.pallas_call(
            _fused_gru_kernel_multi,
            out_shape=out_shape,
            grid_spec=pltpu.PrefetchScalarGridSpec(
                num_scalar_prefetch=0,
                grid=(1,),
                in_specs=[
                    gi0_spec,
                    pl.BlockSpec(prepared["wih_t"].shape, lambda i: (0, 0, 0)),
                    pl.BlockSpec(prepared["whh_t"].shape, lambda i: (0, 0, 0)),
                    pl.BlockSpec(prepared["bih"].shape, lambda i: (0, 0, 0)),
                    pl.BlockSpec(prepared["bhn"].shape, lambda i: (0, 0, 0)),
                ],
                out_specs=out_spec,
                scratch_shapes=[pltpu.VMEM((T, Bp, three_hp), jnp.bfloat16)],
            ),
            compiler_params=compiler_params,
        )(gi0, prepared["wih_t"], prepared["whh_t"], prepared["bih"],
          prepared["bhn"])

    # Strip padding, back to batch_first, module-facing f32.
    return jnp.transpose(out_tbh[:, :B, :hid_dim], (1, 0, 2)).astype(jnp.float32)


# ---------------------------------------------------------------------------
# Pure-JAX reference
# ---------------------------------------------------------------------------
def _reference_gru(x_btd, params, matmul_dtype=jnp.float32):
    h_seq = jnp.transpose(x_btd, (1, 0, 2)).astype(jnp.float32)  # (T, B, D)
    for (w_ih, w_hh, b_ih, b_hh) in params:
        H = w_hh.shape[1]
        B = h_seq.shape[1]
        wih_t = w_ih.T.astype(matmul_dtype)
        whh_t = w_hh.T.astype(matmul_dtype)

        def step(h_prev, x_t):
            gi = jnp.dot(x_t.astype(matmul_dtype), wih_t,
                         preferred_element_type=jnp.float32) + b_ih
            gh = jnp.dot(h_prev.astype(matmul_dtype), whh_t,
                         preferred_element_type=jnp.float32) + b_hh
            i_r, i_z, i_n = gi[:, :H], gi[:, H:2 * H], gi[:, 2 * H:]
            h_r, h_z, h_n = gh[:, :H], gh[:, H:2 * H], gh[:, 2 * H:]
            r = jax.nn.sigmoid(i_r + h_r)
            z = jax.nn.sigmoid(i_z + h_z)
            n = jnp.tanh(i_n + r * h_n)
            h_new = (1.0 - z) * n + z * h_prev
            return h_new, h_new

        h0 = jnp.zeros((B, H), jnp.float32)
        _, h_seq = jax.lax.scan(step, h0, h_seq)
    return jnp.transpose(h_seq, (1, 0, 2))


if __name__ == "__main__":
    # Small shapes consistent with the module's forward: x is (batch, seq, in_dim).
    B, T, IN_DIM, HID_DIM, N_LAYERS = 2, 8, 16, 32, 2
    DROPOUT = 0.1  # inter-layer dropout is identity at inference time

    key = jax.random.PRNGKey(0)
    key, kx = jax.random.split(key)
    x = jax.random.normal(kx, (B, T, IN_DIM), jnp.float32)

    params = init_gru_params(key, IN_DIM, HID_DIM, N_LAYERS)
    prepared = prepare_rnn_decoder_params(params, HID_DIM)   # once, not per call

    out = rnn_decoder_forward(x, prepared, hid_dim=HID_DIM)
    out = jax.block_until_ready(out)
    assert out.shape == (B, T, HID_DIM), out.shape

    # Check vs a reference using the same bf16-matmul precision (kernel keeps
    # gi / inter-layer activations / output in bf16, hence the tolerance).
    ref_bf16 = jax.block_until_ready(_reference_gru(x, params, jnp.bfloat16))
    assert jnp.allclose(out, ref_bf16, atol=5e-2, rtol=5e-2), \
        float(jnp.max(jnp.abs(out - ref_bf16)))

    # Loose sanity check vs the full-f32 reference.
    ref_f32 = jax.block_until_ready(_reference_gru(x, params, jnp.float32))
    assert jnp.allclose(out, ref_f32, atol=2e-1, rtol=2e-1), \
        float(jnp.max(jnp.abs(out - ref_f32)))

    # Also exercise the specialized single-layer path (no scratch, no dummies).
    params1 = init_gru_params(jax.random.PRNGKey(1), IN_DIM, HID_DIM, 1)
    prepared1 = prepare_rnn_decoder_params(params1, HID_DIM)
    out1 = jax.block_until_ready(rnn_decoder_forward(x, prepared1, hid_dim=HID_DIM))
    ref1 = jax.block_until_ready(_reference_gru(x, params1, jnp.bfloat16))
    assert out1.shape == (B, T, HID_DIM)
    assert jnp.allclose(out1, ref1, atol=5e-2, rtol=5e-2), \
        float(jnp.max(jnp.abs(out1 - ref1)))

    print("KERNEL_OK")
</pallas_src>

<mosaic_0001>
module attributes {stable_mosaic.version = 11 : i64} {
  func.func @_fused_gru_kernel_multi(%arg0: i32, %arg1: memref<8x8x384xbf16, #tpu.memory_space<vmem>>, %arg2: memref<1x128x384xbf16, #tpu.memory_space<vmem>>, %arg3: memref<2x128x384xbf16, #tpu.memory_space<vmem>>, %arg4: memref<1x1x384xf32, #tpu.memory_space<vmem>>, %arg5: memref<2x1x128xf32, #tpu.memory_space<vmem>>, %arg6: memref<8x8x128xbf16, #tpu.memory_space<vmem>>, %arg7: memref<8x8x384xbf16, #tpu.memory_space<vmem>>) attributes {dimension_semantics = [#tpu.dimension_semantics<arbitrary>], iteration_bounds = array<i64: 1>, scalar_prefetch = 0 : i64, scratch_operands = 1 : i64, tpu.core_type = #tpu.core_type<tc>, window_params = [{pipeline_mode = #tpu.pipeline_mode<synchronous>, transform_indices = @transform_0, window_bounds = array<i64: 8, 8, 384>}, {pipeline_mode = #tpu.pipeline_mode<synchronous>, transform_indices = @transform_1, window_bounds = array<i64: 1, 128, 384>}, {pipeline_mode = #tpu.pipeline_mode<synchronous>, transform_indices = @transform_2, window_bounds = array<i64: 2, 128, 384>}, {pipeline_mode = #tpu.pipeline_mode<synchronous>, transform_indices = @transform_3, window_bounds = array<i64: 1, 1, 384>}, {pipeline_mode = #tpu.pipeline_mode<synchronous>, transform_indices = @transform_4, window_bounds = array<i64: 2, 1, 128>}, {pipeline_mode = #tpu.pipeline_mode<synchronous>, transform_indices = @transform_5, window_bounds = array<i64: 8, 8, 128>}]} {
    %c0 = arith.constant 0 : index
    %c0_0 = arith.constant 0 : index
    %c0_1 = arith.constant 0 : index
    %0 = vector.load %arg3[%c0, %c0_0, %c0_1] : memref<2x128x384xbf16, #tpu.memory_space<vmem>>, vector<1x128x384xbf16>
    %1 = vector.shape_cast %0 : vector<1x128x384xbf16> to vector<128x384xbf16>
    %c0_2 = arith.constant 0 : index
    %c0_3 = arith.constant 0 : index
    %c0_4 = arith.constant 0 : index
    %2 = vector.load %arg5[%c0_2, %c0_3, %c0_4] : memref<2x1x128xf32, #tpu.memory_space<vmem>>, vector<1x1x128xf32>
    %3 = vector.shape_cast %2 : vector<1x1x128xf32> to vector<1x128xf32>
    %4 = vector.shape_cast %3 : vector<1x128xf32> to vector<1x128xf32>
    %5 = vector.broadcast %4 : vector<1x128xf32> to vector<8x128xf32>
    %c0_5 = arith.constant 0 : index
    %c0_6 = arith.constant 0 : index
    %c0_7 = arith.constant 0 : index
    %6 = vector.load %arg2[%c0_5, %c0_6, %c0_7] : memref<1x128x384xbf16, #tpu.memory_space<vmem>>, vector<1x128x384xbf16>
    %7 = vector.shape_cast %6 : vector<1x128x384xbf16> to vector<128x384xbf16>
    %c0_8 = arith.constant 0 : index
    %c0_9 = arith.constant 0 : index
    %c0_10 = arith.constant 0 : index
    %8 = vector.load %arg4[%c0_8, %c0_9, %c0_10] : memref<1x1x384xf32, #tpu.memory_space<vmem>>, vector<1x1x384xf32>
    %9 = vector.shape_cast %8 : vector<1x1x384xf32> to vector<1x384xf32>
    %10 = vector.shape_cast %9 : vector<1x384xf32> to vector<1x384xf32>
    %11 = vector.broadcast %10 : vector<1x384xf32> to vector<8x384xf32>
    %cst = arith.constant 0.000000e+00 : f32
    %12 = vector.broadcast %cst : f32 to vector<8x128xf32>
    %c0_i32 = arith.constant 0 : i32
    %13 = arith.index_cast %c0_i32 : i32 to index
    %c0_11 = arith.constant 0 : index
    %c0_12 = arith.constant 0 : index
    %14 = vector.load %arg1[%13, %c0_11, %c0_12] : memref<8x8x384xbf16, #tpu.memory_space<vmem>>, vector<1x8x384xbf16>
    %15 = vector.shape_cast %14 : vector<1x8x384xbf16> to vector<8x384xbf16>
    %16 = arith.extf %15 : vector<8x384xbf16> to vector<8x384xf32>
    %17 = arith.truncf %12 : vector<8x128xf32> to vector<8x128xbf16>
    %cst_13 = arith.constant dense<0.000000e+00> : vector<8x384xf32>
    %18 = tpu.matmul %17, %1, %cst_13 {dimension_numbers = #tpu.dot_dimension_numbers<[1], [0], [0], [1], [0, 0, 1, 1], [], []>} : vector<8x128xbf16>, vector<128x384xbf16>, vector<8x384xf32> -> vector<8x384xf32>
    %19 = vector.extract_strided_slice %16 {offsets = [0, 0], sizes = [8, 128], strides = [1, 1]} : vector<8x384xf32> to vector<8x128xf32>
    %20 = vector.extract_strided_slice %16 {offsets = [0, 128], sizes = [8, 128], strides = [1, 1]} : vector<8x384xf32> to vector<8x128xf32>
    %21 = vector.extract_strided_slice %16 {offsets = [0, 256], sizes = [8, 128], strides = [1, 1]} : vector<8x384xf32> to vector<8x128xf32>
    %22 = vector.extract_strided_slice %18 {offsets = [0, 0], sizes = [8, 128], strides = [1, 1]} : vector<8x384xf32> to vector<8x128xf32>
    %23 = vector.extract_strided_slice %18 {offsets = [0, 128], sizes = [8, 128], strides = [1, 1]} : vector<8x384xf32> to vector<8x128xf32>
    %24 = vector.extract_strided_slice %18 {offsets = [0, 256], sizes = [8, 128], strides = [1, 1]} : vector<8x384xf32> to vector<8x128xf32>
    %25 = arith.addf %19, %22 : vector<8x128xf32>
    %26 = arith.negf %25 : vector<8x128xf32>
    %27 = math.exp %26 : vector<8x128xf32>
    %cst_14 = arith.constant 1.000000e+00 : f32
    %28 = vector.broadcast %cst_14 : f32 to vector<8x128xf32>
    %29 = arith.addf %28, %27 : vector<8x128xf32>
    %30 = arith.divf %28, %29 : vector<8x128xf32>
    %31 = arith.addf %20, %23 : vector<8x128xf32>
    %32 = arith.negf %31 : vector<8x128xf32>
    %33 = math.exp %32 : vector<8x128xf32>
    %cst_15 = arith.constant 1.000000e+00 : f32
    %34 = vector.broadcast %cst_15 : f32 to vector<8x128xf32>
    %35 = arith.addf %34, %33 : vector<8x128xf32>
    %36 = arith.divf %34, %35 : vector<8x128xf32>
    %37 = arith.addf %24, %5 : vector<8x128xf32>
    %38 = arith.mulf %30, %37 : vector<8x128xf32>
    %39 = arith.addf %21, %38 : vector<8x128xf32>
    %40 = math.tanh %39 : vector<8x128xf32>
    %cst_16 = arith.constant 1.000000e+00 : f32
    %41 = vector.broadcast %cst_16 : f32 to vector<8x128xf32>
    %42 = arith.subf %41, %36 : vector<8x128xf32>
    %43 = arith.mulf %42, %40 : vector<8x128xf32>
    %44 = arith.mulf %36, %12 : vector<8x128xf32>
    %45 = arith.addf %43, %44 : vector<8x128xf32>
    %46 = arith.truncf %45 : vector<8x128xf32> to vector<8x128xbf16>
    %47 = arith.index_cast %c0_i32 : i32 to index
    %c0_17 = arith.constant 0 : index
    %c0_18 = arith.constant 0 : index
    %48 = vector.load %arg6[%47, %c0_17, %c0_18] : memref<8x8x128xbf16, #tpu.memory_space<vmem>>, vector<1x8x128xbf16>
    %49 = vector.shape_cast %48 : vector<1x8x128xbf16> to vector<8x128xbf16>
    %50 = vector.shape_cast %46 : vector<8x128xbf16> to vector<1x8x128xbf16>
    tpu.vector_store %arg6[%47, %c0_17, %c0_18], %50 {strides = array<i32>} : memref<8x8x128xbf16, #tpu.memory_space<vmem>>, vector<1x8x128xbf16>,
    %cst_19 = arith.constant dense<0.000000e+00> : vector<8x384xf32>
    %51 = tpu.matmul %46, %7, %cst_19 {dimension_numbers = #tpu.dot_dimension_numbers<[1], [0], [0], [1], [0, 0, 1, 1], [], []>} : vector<8x128xbf16>, vector<128x384xbf16>, vector<8x384xf32> -> vector<8x384xf32>
    %52 = arith.addf %51, %11 : vector<8x384xf32>
    %53 = arith.truncf %52 : vector<8x384xf32> to vector<8x384xbf16>
    %54 = arith.index_cast %c0_i32 : i32 to index
    %c0_20 = arith.constant 0 : index
    %c0_21 = arith.constant 0 : index
    %55 = vector.load %arg7[%54, %c0_20, %c0_21] : memref<8x8x384xbf16, #tpu.memory_space<vmem>>, vector<1x8x384xbf16>
    %56 = vector.shape_cast %55 : vector<1x8x384xbf16> to vector<8x384xbf16>
    %57 = vector.shape_cast %53 : vector<8x384xbf16> to vector<1x8x384xbf16>
    tpu.vector_store %arg7[%54, %c0_20, %c0_21], %57 {strides = array<i32>} : memref<8x8x384xbf16, #tpu.memory_space<vmem>>, vector<1x8x384xbf16>,
    %c1_i32 = arith.constant 1 : i32
    %58 = arith.index_cast %c1_i32 : i32 to index
    %c0_22 = arith.constant 0 : index
    %c0_23 = arith.constant 0 : index
    %59 = vector.load %arg1[%58, %c0_22, %c0_23] : memref<8x8x384xbf16, #tpu.memory_space<vmem>>, vector<1x8x384xbf16>
    %60 = vector.shape_cast %59 : vector<1x8x384xbf16> to vector<8x384xbf16>
    %61 = arith.extf %60 : vector<8x384xbf16> to vector<8x384xf32>
    %62 = arith.truncf %45 : vector<8x128xf32> to vector<8x128xbf16>
    %cst_24 = arith.constant dense<0.000000e+00> : vector<8x384xf32>
    %63 = tpu.matmul %62, %1, %cst_24 {dimension_numbers = #tpu.dot_dimension_numbers<[1], [0], [0], [1], [0, 0, 1, 1], [], []>} : vector<8x128xbf16>, vector<128x384xbf16>, vector<8x384xf32> -> vector<8x384xf32>
    %64 = vector.extract_strided_slice %61 {offsets = [0, 0], sizes = [8, 128], strides = [1, 1]} : vector<8x384xf32> to vector<8x128xf32>
    %65 = vector.extract_strided_slice %61 {offsets = [0, 128], sizes = [8, 128], strides = [1, 1]} : vector<8x384xf32> to vector<8x128xf32>
    %66 = vector.extract_strided_slice %61 {offsets = [0, 256], sizes = [8, 128], strides = [1, 1]} : vector<8x384xf32> to vector<8x128xf32>
    %67 = vector.extract_strided_slice %63 {offsets = [0, 0], sizes = [8, 128], strides = [1, 1]} : vector<8x384xf32> to vector<8x128xf32>
    %68 = vector.extract_strided_slice %63 {offsets = [0, 128], sizes = [8, 128], strides = [1, 1]} : vector<8x384xf32> to vector<8x128xf32>
    %69 = vector.extract_strided_slice %63 {offsets = [0, 256], sizes = [8, 128], strides = [1, 1]} : vector<8x384xf32> to vector<8x128xf32>
    %70 = arith.addf %64, %67 : vector<8x128xf32>
    %71 = arith.negf %70 : vector<8x128xf32>
    %72 = math.exp %71 : vector<8x128xf32>
    %cst_25 = arith.constant 1.000000e+00 : f32
    %73 = vector.broadcast %cst_25 : f32 to vector<8x128xf32>
    %74 = arith.addf %73, %72 : vector<8x128xf32>
    %75 = arith.divf %73, %74 : vector<8x128xf32>
    %76 = arith.addf %65, %68 : vector<8x128xf32>
    %77 = arith.negf %76 : vector<8x128xf32>
    %78 = math.exp %77 : vector<8x128xf32>
    %cst_26 = arith.constant 1.000000e+00 : f32
    %79 = vector.broadcast %cst_26 : f32 to vector<8x128xf32>
    %80 = arith.addf %79, %78 : vector<8x128xf32>
    %81 = arith.divf %79, %80 : vector<8x128xf32>
    %82 = arith.addf %69, %5 : vector<8x128xf32>
    %83 = arith.mulf %75, %82 : vector<8x128xf32>
    %84 = arith.addf %66, %83 : vector<8x128xf32>
    %85 = math.tanh %84 : vector<8x128xf32>
    %cst_27 = arith.constant 1.000000e+00 : f32
    %86 = vector.broadcast %cst_27 : f32 to vector<8x128xf32>
    %87 = arith.subf %86, %81 : vector<8x128xf32>
    %88 = arith.mulf %87, %85 : vector<8x128xf32>
    %89 = arith.mulf %81, %45 : vector<8x128xf32>
    %90 = arith.addf %88, %89 : vector<8x128xf32>
    %91 = arith.truncf %90 : vector<8x128xf32> to vector<8x128xbf16>
    %92 = arith.index_cast %c1_i32 : i32 to index
    %c0_28 = arith.constant 0 : index
    %c0_29 = arith.constant 0 : index
    %93 = vector.load %arg6[%92, %c0_28, %c0_29] : memref<8x8x128xbf16, #tpu.memory_space<vmem>>, vector<1x8x128xbf16>
    %94 = vector.shape_cast %93 : vector<1x8x128xbf16> to vector<8x128xbf16>
    %95 = vector.shape_cast %91 : vector<8x128xbf16> to vector<1x8x128xbf16>
    tpu.vector_store %arg6[%92, %c0_28, %c0_29], %95 {strides = array<i32>} : memref<8x8x128xbf16, #tpu.memory_space<vmem>>, vector<1x8x128xbf16>,
    %cst_30 = arith.constant dense<0.000000e+00> : vector<8x384xf32>
    %96 = tpu.matmul %91, %7, %cst_30 {dimension_numbers = #tpu.dot_dimension_numbers<[1], [0], [0], [1], [0, 0, 1, 1], [], []>} : vector<8x128xbf16>, vector<128x384xbf16>, vector<8x384xf32> -> vector<8x384xf32>
    %97 = arith.addf %96, %11 : vector<8x384xf32>
    %98 = arith.truncf %97 : vector<8x384xf32> to vector<8x384xbf16>
    %99 = arith.index_cast %c1_i32 : i32 to index
    %c0_31 = arith.constant 0 : index
    %c0_32 = arith.constant 0 : index
    %100 = vector.load %arg7[%99, %c0_31, %c0_32] : memref<8x8x384xbf16, #tpu.memory_space<vmem>>, vector<1x8x384xbf16>
    %101 = vector.shape_cast %100 : vector<1x8x384xbf16> to vector<8x384xbf16>
    %102 = vector.shape_cast %98 : vector<8x384xbf16> to vector<1x8x384xbf16>
    tpu.vector_store %arg7[%99, %c0_31, %c0_32], %102 {strides = array<i32>} : memref<8x8x384xbf16, #tpu.memory_space<vmem>>, vector<1x8x384xbf16>,
    %c2_i32 = arith.constant 2 : i32
    %103 = arith.index_cast %c2_i32 : i32 to index
    %c0_33 = arith.constant 0 : index
    %c0_34 = arith.constant 0 : index
    %104 = vector.load %arg1[%103, %c0_33, %c0_34] : memref<8x8x384xbf16, #tpu.memory_space<vmem>>, vector<1x8x384xbf16>
    %105 = vector.shape_cast %104 : vector<1x8x384xbf16> to vector<8x384xbf16>
    %106 = arith.extf %105 : vector<8x384xbf16> to vector<8x384xf32>
    %107 = arith.truncf %90 : vector<8x128xf32> to vector<8x128xbf16>
    %cst_35 = arith.constant dense<0.000000e+00> : vector<8x384xf32>
    %108 = tpu.matmul %107, %1, %cst_35 {dimension_numbers = #tpu.dot_dimension_numbers<[1], [0], [0], [1], [0, 0, 1, 1], [], []>} : vector<8x128xbf16>, vector<128x384xbf16>, vector<8x384xf32> -> vector<8x384xf32>
    %109 = vector.extract_strided_slice %106 {offsets = [0, 0], sizes = [8, 128], strides = [1, 1]} : vector<8x384xf32> to vector<8x128xf32>
    %110 = vector.extract_strided_slice %106 {offsets = [0, 128], sizes = [8, 128], strides = [1, 1]} : vector<8x384xf32> to vector<8x128xf32>
    %111 = vector.extract_strided_slice %106 {offsets = [0, 256], sizes = [8, 128], strides = [1, 1]} : vector<8x384xf32> to vector<8x128xf32>
    %112 = vector.extract_strided_slice %108 {offsets = [0, 0], sizes = [8, 128], strides = [1, 1]} : vector<8x384xf32> to vector<8x128xf32>
    %113 = vector.extract_strided_slice %108 {offsets = [0, 128], sizes = [8, 128], strides = [1, 1]} : vector<8x384xf32> to vector<8x128xf32>
    %114 = vector.extract_strided_slice %108 {offsets = [0, 256], sizes = [8, 128], strides = [1, 1]} : vector<8x384xf32> to vector<8x128xf32>
    %115 = arith.addf %109, %112 : vector<8x128xf32>
    %116 = arith.negf %115 : vector<8x128xf32>
    %117 = math.exp %116 : vector<8x128xf32>
    %cst_36 = arith.constant 1.000000e+00 : f32
    %118 = vector.broadcast %cst_36 : f32 to vector<8x128xf32>
    %119 = arith.addf %118, %117 : vector<8x128xf32>
    %120 = arith.divf %118, %119 : vector<8x128xf32>
    %121 = arith.addf %110, %113 : vector<8x128xf32>
    %122 = arith.negf %121 : vector<8x128xf32>
    %123 = math.exp %122 : vector<8x128xf32>
    %cst_37 = arith.constant 1.000000e+00 : f32
    %124 = vector.broadcast %cst_37 : f32 to vector<8x128xf32>
    %125 = arith.addf %124, %123 : vector<8x128xf32>
    %126 = arith.divf %124, %125 : vector<8x128xf32>
    %127 = arith.addf %114, %5 : vector<8x128xf32>
    %128 = arith.mulf %120, %127 : vector<8x128xf32>
    %129 = arith.addf %111, %128 : vector<8x128xf32>
    %130 = math.tanh %129 : vector<8x128xf32>
    %cst_38 = arith.constant 1.000000e+00 : f32
    %131 = vector.broadcast %cst_38 : f32 to vector<8x128xf32>
    %132 = arith.subf %131, %126 : vector<8x128xf32>
    %133 = arith.mulf %132, %130 : vector<8x128xf32>
    %134 = arith.mulf %126, %90 : vector<8x128xf32>
    %135 = arith.addf %133, %134 : vector<8x128xf32>
    %136 = arith.truncf %135 : vector<8x128xf32> to vector<8x128xbf16>
    %137 = arith.index_cast %c2_i32 : i32 to index
    %c0_39 = arith.constant 0 : index
    %c0_40 = arith.constant 0 : index
    %138 = vector.load %arg6[%137, %c0_39, %c0_40] : memref<8x8x128xbf16, #tpu.memory_space<vmem>>, vector<1x8x128xbf16>
    %139 = vector.shape_cast %138 : vector<1x8x128xbf16> to vector<8x128xbf16>
    %140 = vector.shape_cast %136 : vector<8x128xbf16> to vector<1x8x128xbf16>
    tpu.vector_store %arg6[%137, %c0_39, %c0_40], %140 {strides = array<i32>} : memref<8x8x128xbf16, #tpu.memory_space<vmem>>, vector<1x8x128xbf16>,
    %cst_41 = arith.constant dense<0.000000e+00> : vector<8x384xf32>
    %141 = tpu.matmul %136, %7, %cst_41 {dimension_numbers = #tpu.dot_dimension_numbers<[1], [0], [0], [1], [0, 0, 1, 1], [], []>} : vector<8x128xbf16>, vector<128x384xbf16>, vector<8x384xf32> -> vector<8x384xf32>
    %142 = arith.addf %141, %11 : vector<8x384xf32>
    %143 = arith.truncf %142 : vector<8x384xf32> to vector<8x384xbf16>
    %144 = arith.index_cast %c2_i32 : i32 to index
    %c0_42 = arith.constant 0 : index
    %c0_43 = arith.constant 0 : index
    %145 = vector.load %arg7[%144, %c0_42, %c0_43] : memref<8x8x384xbf16, #tpu.memory_space<vmem>>, vector<1x8x384xbf16>
    %146 = vector.shape_cast %145 : vector<1x8x384xbf16> to vector<8x384xbf16>
    %147 = vector.shape_cast %143 : vector<8x384xbf16> to vector<1x8x384xbf16>
    tpu.vector_store %arg7[%144, %c0_42, %c0_43], %147 {strides = array<i32>} : memref<8x8x384xbf16, #tpu.memory_space<vmem>>, vector<1x8x384xbf16>,
    %c3_i32 = arith.constant 3 : i32
    %148 = arith.index_cast %c3_i32 : i32 to index
    %c0_44 = arith.constant 0 : index
    %c0_45 = arith.constant 0 : index
    %149 = vector.load %arg1[%148, %c0_44, %c0_45] : memref<8x8x384xbf16, #tpu.memory_space<vmem>>, vector<1x8x384xbf16>
    %150 = vector.shape_cast %149 : vector<1x8x384xbf16> to vector<8x384xbf16>
    %151 = arith.extf %150 : vector<8x384xbf16> to vector<8x384xf32>
    %152 = arith.truncf %135 : vector<8x128xf32> to vector<8x128xbf16>
    %cst_46 = arith.constant dense<0.000000e+00> : vector<8x384xf32>
    %153 = tpu.matmul %152, %1, %cst_46 {dimension_numbers = #tpu.dot_dimension_numbers<[1], [0], [0], [1], [0, 0, 1, 1], [], []>} : vector<8x128xbf16>, vector<128x384xbf16>, vector<8x384xf32> -> vector<8x384xf32>
    %154 = vector.extract_strided_slice %151 {offsets = [0, 0], sizes = [8, 128], strides = [1, 1]} : vector<8x384xf32> to vector<8x128xf32>
    %155 = vector.extract_strided_slice %151 {offsets = [0, 128], sizes = [8, 128], strides = [1, 1]} : vector<8x384xf32> to vector<8x128xf32>
    %156 = vector.extract_strided_slice %151 {offsets = [0, 256], sizes = [8, 128], strides = [1, 1]} : vector<8x384xf32> to vector<8x128xf32>
    %157 = vector.extract_strided_slice %153 {offsets = [0, 0], sizes = [8, 128], strides = [1, 1]} : vector<8x384xf32> to vector<8x128xf32>
    %158 = vector.extract_strided_slice %153 {offsets = [0, 128], sizes = [8, 128], strides = [1, 1]} : vector<8x384xf32> to vector<8x128xf32>
    %159 = vector.extract_strided_slice %153 {offsets = [0, 256], sizes = [8, 128], strides = [1, 1]} : vector<8x384xf32> to vector<8x128xf32>
    %160 = arith.addf %154, %157 : vector<8x128xf32>
    %161 = arith.negf %160 : vector<8x128xf32>
    %162 = math.exp %161 : vector<8x128xf32>
    %cst_47 = arith.constant 1.000000e+00 : f32
    %163 = vector.broadcast %cst_47 : f32 to vector<8x128xf32>
    %164 = arith.addf %163, %162 : vector<8x128xf32>
    %165 = arith.divf %163, %164 : vector<8x128xf32>
    %166 = arith.addf %155, %158 : vector<8x128xf32>
    %167 = arith.negf %166 : vector<8x128xf32>
    %168 = math.exp %167 : vector<8x128xf32>
    %cst_48 = arith.constant 1.000000e+00 : f32
    %169 = vector.broadcast %cst_48 : f32 to vector<8x128xf32>
    %170 = arith.addf %169, %168 : vector<8x128xf32>
    %171 = arith.divf %169, %170 : vector<8x128xf32>
    %172 = arith.addf %159, %5 : vector<8x128xf32>
    %173 = arith.mulf %165, %172 : vector<8x128xf32>
    %174 = arith.addf %156, %173 : vector<8x128xf32>
    %175 = math.tanh %174 : vector<8x128xf32>
    %cst_49 = arith.constant 1.000000e+00 : f32
    %176 = vector.broadcast %cst_49 : f32 to vector<8x128xf32>
    %177 = arith.subf %176, %171 : vector<8x128xf32>
    %178 = arith.mulf %177, %175 : vector<8x128xf32>
    %179 = arith.mulf %171, %135 : vector<8x128xf32>
    %180 = arith.addf %178, %179 : vector<8x128xf32>
    %181 = arith.truncf %180 : vector<8x128xf32> to vector<8x128xbf16>
    %182 = arith.index_cast %c3_i32 : i32 to index
    %c0_50 = arith.constant 0 : index
    %c0_51 = arith.constant 0 : index
    %183 = vector.load %arg6[%182, %c0_50, %c0_51] : memref<8x8x128xbf16, #tpu.memory_space<vmem>>, vector<1x8x128xbf16>
    %184 = vector.shape_cast %183 : vector<1x8x128xbf16> to vector<8x128xbf16>
    %185 = vector.shape_cast %181 : vector<8x128xbf16> to vector<1x8x128xbf16>
    tpu.vector_store %arg6[%182, %c0_50, %c0_51], %185 {strides = array<i32>} : memref<8x8x128xbf16, #tpu.memory_space<vmem>>, vector<1x8x128xbf16>,
    %cst_52 = arith.constant dense<0.000000e+00> : vector<8x384xf32>
    %186 = tpu.matmul %181, %7, %cst_52 {dimension_numbers = #tpu.dot_dimension_numbers<[1], [0], [0], [1], [0, 0, 1, 1], [], []>} : vector<8x128xbf16>, vector<128x384xbf16>, vector<8x384xf32> -> vector<8x384xf32>
    %187 = arith.addf %186, %11 : vector<8x384xf32>
    %188 = arith.truncf %187 : vector<8x384xf32> to vector<8x384xbf16>
    %189 = arith.index_cast %c3_i32 : i32 to index
    %c0_53 = arith.constant 0 : index
    %c0_54 = arith.constant 0 : index
    %190 = vector.load %arg7[%189, %c0_53, %c0_54] : memref<8x8x384xbf16, #tpu.memory_space<vmem>>, vector<1x8x384xbf16>
    %191 = vector.shape_cast %190 : vector<1x8x384xbf16> to vector<8x384xbf16>
    %192 = vector.shape_cast %188 : vector<8x384xbf16> to vector<1x8x384xbf16>
    tpu.vector_store %arg7[%189, %c0_53, %c0_54], %192 {strides = array<i32>} : memref<8x8x384xbf16, #tpu.memory_space<vmem>>, vector<1x8x384xbf16>,
    %c4_i32 = arith.constant 4 : i32
    %193 = arith.index_cast %c4_i32 : i32 to index
    %c0_55 = arith.constant 0 : index
    %c0_56 = arith.constant 0 : index
    %194 = vector.load %arg1[%193, %c0_55, %c0_56] : memref<8x8x384xbf16, #tpu.memory_space<vmem>>, vector<1x8x384xbf16>
    %195 = vector.shape_cast %194 : vector<1x8x384xbf16> to vector<8x384xbf16>
    %196 = arith.extf %195 : vector<8x384xbf16> to vector<8x384xf32>
    %197 = arith.truncf %180 : vector<8x128xf32> to vector<8x128xbf16>
    %cst_57 = arith.constant dense<0.000000e+00> : vector<8x384xf32>
    %198 = tpu.matmul %197, %1, %cst_57 {dimension_numbers = #tpu.dot_dimension_numbers<[1], [0], [0], [1], [0, 0, 1, 1], [], []>} : vector<8x128xbf16>, vector<128x384xbf16>, vector<8x384xf32> -> vector<8x384xf32>
    %199 = vector.extract_strided_slice %196 {offsets = [0, 0], sizes = [8, 128], strides = [1, 1]} : vector<8x384xf32> to vector<8x128xf32>
    %200 = vector.extract_strided_slice %196 {offsets = [0, 128], sizes = [8, 128], strides = [1, 1]} : vector<8x384xf32> to vector<8x128xf32>
    %201 = vector.extract_strided_slice %196 {offsets = [0, 256], sizes = [8, 128], strides = [1, 1]} : vector<8x384xf32> to vector<8x128xf32>
    %202 = vector.extract_strided_slice %198 {offsets = [0, 0], sizes = [8, 128], strides = [1, 1]} : vector<8x384xf32> to vector<8x128xf32>
    %203 = vector.extract_strided_slice %198 {offsets = [0, 128], sizes = [8, 128], strides = [1, 1]} : vector<8x384xf32> to vector<8x128xf32>
    %204 = vector.extract_strided_slice %198 {offsets = [0, 256], sizes = [8, 128], strides = [1, 1]} : vector<8x384xf32> to vector<8x128xf32>
    %205 = arith.addf %199, %202 : vector<8x128xf32>
    %206 = arith.negf %205 : vector<8x128xf32>
    %207 = math.exp %206 : vector<8x128xf32>
    %cst_58 = arith.constant 1.000000e+00 : f32
    %208 = vector.broadcast %cst_58 : f32 to vector<8x128xf32>
    %209 = arith.addf %208, %207 : vector<8x128xf32>
    %210 = arith.divf %208, %209 : vector<8x128xf32>
    %211 = arith.addf %200, %203 : vector<8x128xf32>
    %212 = arith.negf %211 : vector<8x128xf32>
    %213 = math.exp %212 : vector<8x128xf32>
    %cst_59 = arith.constant 1.000000e+00 : f32
    %214 = vector.broadcast %cst_59 : f32 to vector<8x128xf32>
    %215 = arith.addf %214, %213 : vector<8x128xf32>
    %216 = arith.divf %214, %215 : vector<8x128xf32>
    %217 = arith.addf %204, %5 : vector<8x128xf32>
    %218 = arith.mulf %210, %217 : vector<8x128xf32>
    %219 = arith.addf %201, %218 : vector<8x128xf32>
    %220 = math.tanh %219 : vector<8x128xf32>
    %cst_60 = arith.constant 1.000000e+00 : f32
    %221 = vector.broadcast %cst_60 : f32 to vector<8x128xf32>
    %222 = arith.subf %221, %216 : vector<8x128xf32>
    %223 = arith.mulf %222, %220 : vector<8x128xf32>
    %224 = arith.mulf %216, %180 : vector<8x128xf32>
    %225 = arith.addf %223, %224 : vector<8x128xf32>
    %226 = arith.truncf %225 : vector<8x128xf32> to vector<8x128xbf16>
    %227 = arith.index_cast %c4_i32 : i32 to index
    %c0_61 = arith.constant 0 : index
    %c0_62 = arith.constant 0 : index
    %228 = vector.load %arg6[%227, %c0_61, %c0_62] : memref<8x8x128xbf16, #tpu.memory_space<vmem>>, vector<1x8x128xbf16>
    %229 = vector.shape_cast %228 : vector<1x8x128xbf16> to vector<8x128xbf16>
    %230 = vector.shape_cast %226 : vector<8x128xbf16> to vector<1x8x128xbf16>
    tpu.vector_store %arg6[%227, %c0_61, %c0_62], %230 {strides = array<i32>} : memref<8x8x128xbf16, #tpu.memory_space<vmem>>, vector<1x8x128xbf16>,
    %cst_63 = arith.constant dense<0.000000e+00> : vector<8x384xf32>
    %231 = tpu.matmul %226, %7, %cst_63 {dimension_numbers = #tpu.dot_dimension_numbers<[1], [0], [0], [1], [0, 0, 1, 1], [], []>} : vector<8x128xbf16>, vector<128x384xbf16>, vector<8x384xf32> -> vector<8x384xf32>
    %232 = arith.addf %231, %11 : vector<8x384xf32>
    %233 = arith.truncf %232 : vector<8x384xf32> to vector<8x384xbf16>
    %234 = arith.index_cast %c4_i32 : i32 to index
    %c0_64 = arith.constant 0 : index
    %c0_65 = arith.constant 0 : index
    %235 = vector.load %arg7[%234, %c0_64, %c0_65] : memref<8x8x384xbf16, #tpu.memory_space<vmem>>, vector<1x8x384xbf16>
    %236 = vector.shape_cast %235 : vector<1x8x384xbf16> to vector<8x384xbf16>
    %237 = vector.shape_cast %233 : vector<8x384xbf16> to vector<1x8x384xbf16>
    tpu.vector_store %arg7[%234, %c0_64, %c0_65], %237 {strides = array<i32>} : memref<8x8x384xbf16, #tpu.memory_space<vmem>>, vector<1x8x384xbf16>,
    %c5_i32 = arith.constant 5 : i32
    %238 = arith.index_cast %c5_i32 : i32 to index
    %c0_66 = arith.constant 0 : index
    %c0_67 = arith.constant 0 : index
    %239 = vector.load %arg1[%238, %c0_66, %c0_67] : memref<8x8x384xbf16, #tpu.memory_space<vmem>>, vector<1x8x384xbf16>
    %240 = vector.shape_cast %239 : vector<1x8x384xbf16> to vector<8x384xbf16>
    %241 = arith.extf %240 : vector<8x384xbf16> to vector<8x384xf32>
    %242 = arith.truncf %225 : vector<8x128xf32> to vector<8x128xbf16>
    %cst_68 = arith.constant dense<0.000000e+00> : vector<8x384xf32>
    %243 = tpu.matmul %242, %1, %cst_68 {dimension_numbers = #tpu.dot_dimension_numbers<[1], [0], [0], [1], [0, 0, 1, 1], [], []>} : vector<8x128xbf16>, vector<128x384xbf16>, vector<8x384xf32> -> vector<8x384xf32>
    %244 = vector.extract_strided_slice %241 {offsets = [0, 0], sizes = [8, 128], strides = [1, 1]} : vector<8x384xf32> to vector<8x128xf32>
    %245 = vector.extract_strided_slice %241 {offsets = [0, 128], sizes = [8, 128], strides = [1, 1]} : vector<8x384xf32> to vector<8x128xf32>
    %246 = vector.extract_strided_slice %241 {offsets = [0, 256], sizes = [8, 128], strides = [1, 1]} : vector<8x384xf32> to vector<8x128xf32>
    %247 = vector.extract_strided_slice %243 {offsets = [0, 0], sizes = [8, 128], strides = [1, 1]} : vector<8x384xf32> to vector<8x128xf32>
    %248 = vector.extract_strided_slice %243 {offsets = [0, 128], sizes = [8, 128], strides = [1, 1]} : vector<8x384xf32> to vector<8x128xf32>
    %249 = vector.extract_strided_slice %243 {offsets = [0, 256], sizes = [8, 128], strides = [1, 1]} : vector<8x384xf32> to vector<8x128xf32>
    %250 = arith.addf %244, %247 : vector<8x128xf32>
    %251 = arith.negf %250 : vector<8x128xf32>
    %252 = math.exp %251 : vector<8x128xf32>
    %cst_69 = arith.constant 1.000000e+00 : f32
    %253 = vector.broadcast %cst_69 : f32 to vector<8x128xf32>
    %254 = arith.addf %253, %252 : vector<8x128xf32>
    %255 = arith.divf %253, %254 : vector<8x128xf32>
    %256 = arith.addf %245, %248 : vector<8x128xf32>
    %257 = arith.negf %256 : vector<8x128xf32>
    %258 = math.exp %257 : vector<8x128xf32>
    %cst_70 = arith.constant 1.000000e+00 : f32
    %259 = vector.broadcast %cst_70 : f32 to vector<8x128xf32>
    %260 = arith.addf %259, %258 : vector<8x128xf32>
    %261 = arith.divf %259, %260 : vector<8x128xf32>
    %262 = arith.addf %249, %5 : vector<8x128xf32>
    %263 = arith.mulf %255, %262 : vector<8x128xf32>
    %264 = arith.addf %246, %263 : vector<8x128xf32>
    %265 = math.tanh %264 : vector<8x128xf32>
    %cst_71 = arith.constant 1.000000e+00 : f32
    %266 = vector.broadcast %cst_71 : f32 to vector<8x128xf32>
    %267 = arith.subf %266, %261 : vector<8x128xf32>
    %268 = arith.mulf %267, %265 : vector<8x128xf32>
    %269 = arith.mulf %261, %225 : vector<8x128xf32>
    %270 = arith.addf %268, %269 : vector<8x128xf32>
    %271 = arith.truncf %270 : vector<8x128xf32> to vector<8x128xbf16>
    %272 = arith.index_cast %c5_i32 : i32 to index
    %c0_72 = arith.constant 0 : index
    %c0_73 = arith.constant 0 : index
    %273 = vector.load %arg6[%272, %c0_72, %c0_73] : memref<8x8x128xbf16, #tpu.memory_space<vmem>>, vector<1x8x128xbf16>
    %274 = vector.shape_cast %273 : vector<1x8x128xbf16> to vector<8x128xbf16>
    %275 = vector.shape_cast %271 : vector<8x128xbf16> to vector<1x8x128xbf16>
    tpu.vector_store %arg6[%272, %c0_72, %c0_73], %275 {strides = array<i32>} : memref<8x8x128xbf16, #tpu.memory_space<vmem>>, vector<1x8x128xbf16>,
    %cst_74 = arith.constant dense<0.000000e+00> : vector<8x384xf32>
    %276 = tpu.matmul %271, %7, %cst_74 {dimension_numbers = #tpu.dot_dimension_numbers<[1], [0], [0], [1], [0, 0, 1, 1], [], []>} : vector<8x128xbf16>, vector<128x384xbf16>, vector<8x384xf32> -> vector<8x384xf32>
    %277 = arith.addf %276, %11 : vector<8x384xf32>
    %278 = arith.truncf %277 : vector<8x384xf32> to vector<8x384xbf16>
    %279 = arith.index_cast %c5_i32 : i32 to index
    %c0_75 = arith.constant 0 : index
    %c0_76 = arith.constant 0 : index
    %280 = vector.load %arg7[%279, %c0_75, %c0_76] : memref<8x8x384xbf16, #tpu.memory_space<vmem>>, vector<1x8x384xbf16>
    %281 = vector.shape_cast %280 : vector<1x8x384xbf16> to vector<8x384xbf16>
    %282 = vector.shape_cast %278 : vector<8x384xbf16> to vector<1x8x384xbf16>
    tpu.vector_store %arg7[%279, %c0_75, %c0_76], %282 {strides = array<i32>} : memref<8x8x384xbf16, #tpu.memory_space<vmem>>, vector<1x8x384xbf16>,
    %c6_i32 = arith.constant 6 : i32
    %283 = arith.index_cast %c6_i32 : i32 to index
    %c0_77 = arith.constant 0 : index
    %c0_78 = arith.constant 0 : index
    %284 = vector.load %arg1[%283, %c0_77, %c0_78] : memref<8x8x384xbf16, #tpu.memory_space<vmem>>, vector<1x8x384xbf16>
    %285 = vector.shape_cast %284 : vector<1x8x384xbf16> to vector<8x384xbf16>
    %286 = arith.extf %285 : vector<8x384xbf16> to vector<8x384xf32>
    %287 = arith.truncf %270 : vector<8x128xf32> to vector<8x128xbf16>
    %cst_79 = arith.constant dense<0.000000e+00> : vector<8x384xf32>
    %288 = tpu.matmul %287, %1, %cst_79 {dimension_numbers = #tpu.dot_dimension_numbers<[1], [0], [0], [1], [0, 0, 1, 1], [], []>} : vector<8x128xbf16>, vector<128x384xbf16>, vector<8x384xf32> -> vector<8x384xf32>
    %289 = vector.extract_strided_slice %286 {offsets = [0, 0], sizes = [8, 128], strides = [1, 1]} : vector<8x384xf32> to vector<8x128xf32>
    %290 = vector.extract_strided_slice %286 {offsets = [0, 128], sizes = [8, 128], strides = [1, 1]} : vector<8x384xf32> to vector<8x128xf32>
    %291 = vector.extract_strided_slice %286 {offsets = [0, 256], sizes = [8, 128], strides = [1, 1]} : vector<8x384xf32> to vector<8x128xf32>
    %292 = vector.extract_strided_slice %288 {offsets = [0, 0], sizes = [8, 128], strides = [1, 1]} : vector<8x384xf32> to vector<8x128xf32>
    %293 = vector.extract_strided_slice %288 {offsets = [0, 128], sizes = [8, 128], strides = [1, 1]} : vector<8x384xf32> to vector<8x128xf32>
    %294 = vector.extract_strided_slice %288 {offsets = [0, 256], sizes = [8, 128], strides = [1, 1]} : vector<8x384xf32> to vector<8x128xf32>
    %295 = arith.addf %289, %292 : vector<8x128xf32>
    %296 = arith.negf %295 : vector<8x128xf32>
    %297 = math.exp %296 : vector<8x128xf32>
    %cst_80 = arith.constant 1.000000e+00 : f32
    %298 = vector.broadcast %cst_80 : f32 to vector<8x128xf32>
    %299 = arith.addf %298, %297 : vector<8x128xf32>
    %300 = arith.divf %298, %299 : vector<8x128xf32>
    %301 = arith.addf %290, %293 : vector<8x128xf32>
    %302 = arith.negf %301 : vector<8x128xf32>
    %303 = math.exp %302 : vector<8x128xf32>
    %cst_81 = arith.constant 1.000000e+00 : f32
    %304 = vector.broadcast %cst_81 : f32 to vector<8x128xf32>
    %305 = arith.addf %304, %303 : vector<8x128xf32>
    %306 = arith.divf %304, %305 : vector<8x128xf32>
    %307 = arith.addf %294, %5 : vector<8x128xf32>
    %308 = arith.mulf %300, %307 : vector<8x128xf32>
    %309 = arith.addf %291, %308 : vector<8x128xf32>
    %310 = math.tanh %309 : vector<8x128xf32>
    %cst_82 = arith.constant 1.000000e+00 : f32
    %311 = vector.broadcast %cst_82 : f32 to vector<8x128xf32>
    %312 = arith.subf %311, %306 : vector<8x128xf32>
    %313 = arith.mulf %312, %310 : vector<8x128xf32>
    %314 = arith.mulf %306, %270 : vector<8x128xf32>
    %315 = arith.addf %313, %314 : vector<8x128xf32>
    %316 = arith.truncf %315 : vector<8x128xf32> to vector<8x128xbf16>
    %317 = arith.index_cast %c6_i32 : i32 to index
    %c0_83 = arith.constant 0 : index
    %c0_84 = arith.constant 0 : index
    %318 = vector.load %arg6[%317, %c0_83, %c0_84] : memref<8x8x128xbf16, #tpu.memory_space<vmem>>, vector<1x8x128xbf16>
    %319 = vector.shape_cast %318 : vector<1x8x128xbf16> to vector<8x128xbf16>
    %320 = vector.shape_cast %316 : vector<8x128xbf16> to vector<1x8x128xbf16>
    tpu.vector_store %arg6[%317, %c0_83, %c0_84], %320 {strides = array<i32>} : memref<8x8x128xbf16, #tpu.memory_space<vmem>>, vector<1x8x128xbf16>,
    %cst_85 = arith.constant dense<0.000000e+00> : vector<8x384xf32>
    %321 = tpu.matmul %316, %7, %cst_85 {dimension_numbers = #tpu.dot_dimension_numbers<[1], [0], [0], [1], [0, 0, 1, 1], [], []>} : vector<8x128xbf16>, vector<128x384xbf16>, vector<8x384xf32> -> vector<8x384xf32>
    %322 = arith.addf %321, %11 : vector<8x384xf32>
    %323 = arith.truncf %322 : vector<8x384xf32> to vector<8x384xbf16>
    %324 = arith.index_cast %c6_i32 : i32 to index
    %c0_86 = arith.constant 0 : index
    %c0_87 = arith.constant 0 : index
    %325 = vector.load %arg7[%324, %c0_86, %c0_87] : memref<8x8x384xbf16, #tpu.memory_space<vmem>>, vector<1x8x384xbf16>
    %326 = vector.shape_cast %325 : vector<1x8x384xbf16> to vector<8x384xbf16>
    %327 = vector.shape_cast %323 : vector<8x384xbf16> to vector<1x8x384xbf16>
    tpu.vector_store %arg7[%324, %c0_86, %c0_87], %327 {strides = array<i32>} : memref<8x8x384xbf16, #tpu.memory_space<vmem>>, vector<1x8x384xbf16>,
    %c7_i32 = arith.constant 7 : i32
    %328 = arith.index_cast %c7_i32 : i32 to index
    %c0_88 = arith.constant 0 : index
    %c0_89 = arith.constant 0 : index
    %329 = vector.load %arg1[%328, %c0_88, %c0_89] : memref<8x8x384xbf16, #tpu.memory_space<vmem>>, vector<1x8x384xbf16>
    %330 = vector.shape_cast %329 : vector<1x8x384xbf16> to vector<8x384xbf16>
    %331 = arith.extf %330 : vector<8x384xbf16> to vector<8x384xf32>
    %332 = arith.truncf %315 : vector<8x128xf32> to vector<8x128xbf16>
    %cst_90 = arith.constant dense<0.000000e+00> : vector<8x384xf32>
    %333 = tpu.matmul %332, %1, %cst_90 {dimension_numbers = #tpu.dot_dimension_numbers<[1], [0], [0], [1], [0, 0, 1, 1], [], []>} : vector<8x128xbf16>, vector<128x384xbf16>, vector<8x384xf32> -> vector<8x384xf32>
    %334 = vector.extract_strided_slice %331 {offsets = [0, 0], sizes = [8, 128], strides = [1, 1]} : vector<8x384xf32> to vector<8x128xf32>
    %335 = vector.extract_strided_slice %331 {offsets = [0, 128], sizes = [8, 128], strides = [1, 1]} : vector<8x384xf32> to vector<8x128xf32>
    %336 = vector.extract_strided_slice %331 {offsets = [0, 256], sizes = [8, 128], strides = [1, 1]} : vector<8x384xf32> to vector<8x128xf32>
    %337 = vector.extract_strided_slice %333 {offsets = [0, 0], sizes = [8, 128], strides = [1, 1]} : vector<8x384xf32> to vector<8x128xf32>
    %338 = vector.extract_strided_slice %333 {offsets = [0, 128], sizes = [8, 128], strides = [1, 1]} : vector<8x384xf32> to vector<8x128xf32>
    %339 = vector.extract_strided_slice %333 {offsets = [0, 256], sizes = [8, 128], strides = [1, 1]} : vector<8x384xf32> to vector<8x128xf32>
    %340 = arith.addf %334, %337 : vector<8x128xf32>
    %341 = arith.negf %340 : vector<8x128xf32>
    %342 = math.exp %341 : vector<8x128xf32>
    %cst_91 = arith.constant 1.000000e+00 : f32
    %343 = vector.broadcast %cst_91 : f32 to vector<8x128xf32>
    %344 = arith.addf %343, %342 : vector<8x128xf32>
    %345 = arith.divf %343, %344 : vector<8x128xf32>
    %346 = arith.addf %335, %338 : vector<8x128xf32>
    %347 = arith.negf %346 : vector<8x128xf32>
    %348 = math.exp %347 : vector<8x128xf32>
    %cst_92 = arith.constant 1.000000e+00 : f32
    %349 = vector.broadcast %cst_92 : f32 to vector<8x128xf32>
    %350 = arith.addf %349, %348 : vector<8x128xf32>
    %351 = arith.divf %349, %350 : vector<8x128xf32>
    %352 = arith.addf %339, %5 : vector<8x128xf32>
    %353 = arith.mulf %345, %352 : vector<8x128xf32>
    %354 = arith.addf %336, %353 : vector<8x128xf32>
    %355 = math.tanh %354 : vector<8x128xf32>
    %cst_93 = arith.constant 1.000000e+00 : f32
    %356 = vector.broadcast %cst_93 : f32 to vector<8x128xf32>
    %357 = arith.subf %356, %351 : vector<8x128xf32>
    %358 = arith.mulf %357, %355 : vector<8x128xf32>
    %359 = arith.mulf %351, %315 : vector<8x128xf32>
    %360 = arith.addf %358, %359 : vector<8x128xf32>
    %361 = arith.truncf %360 : vector<8x128xf32> to vector<8x128xbf16>
    %362 = arith.index_cast %c7_i32 : i32 to index
    %c0_94 = arith.constant 0 : index
    %c0_95 = arith.constant 0 : index
    %363 = vector.load %arg6[%362, %c0_94, %c0_95] : memref<8x8x128xbf16, #tpu.memory_space<vmem>>, vector<1x8x128xbf16>
    %364 = vector.shape_cast %363 : vector<1x8x128xbf16> to vector<8x128xbf16>
    %365 = vector.shape_cast %361 : vector<8x128xbf16> to vector<1x8x128xbf16>
    tpu.vector_store %arg6[%362, %c0_94, %c0_95], %365 {strides = array<i32>} : memref<8x8x128xbf16, #tpu.memory_space<vmem>>, vector<1x8x128xbf16>,
    %cst_96 = arith.constant dense<0.000000e+00> : vector<8x384xf32>
    %366 = tpu.matmul %361, %7, %cst_96 {dimension_numbers = #tpu.dot_dimension_numbers<[1], [0], [0], [1], [0, 0, 1, 1], [], []>} : vector<8x128xbf16>, vector<128x384xbf16>, vector<8x384xf32> -> vector<8x384xf32>
    %367 = arith.addf %366, %11 : vector<8x384xf32>
    %368 = arith.truncf %367 : vector<8x384xf32> to vector<8x384xbf16>
    %369 = arith.index_cast %c7_i32 : i32 to index
    %c0_97 = arith.constant 0 : index
    %c0_98 = arith.constant 0 : index
    %370 = vector.load %arg7[%369, %c0_97, %c0_98] : memref<8x8x384xbf16, #tpu.memory_space<vmem>>, vector<1x8x384xbf16>
    %371 = vector.shape_cast %370 : vector<1x8x384xbf16> to vector<8x384xbf16>
    %372 = vector.shape_cast %368 : vector<8x384xbf16> to vector<1x8x384xbf16>
    tpu.vector_store %arg7[%369, %c0_97, %c0_98], %372 {strides = array<i32>} : memref<8x8x384xbf16, #tpu.memory_space<vmem>>, vector<1x8x384xbf16>,
    %c8_i32 = arith.constant 8 : i32
    %c1 = arith.constant 1 : index
    %c0_99 = arith.constant 0 : index
    %c0_100 = arith.constant 0 : index
    %373 = vector.load %arg3[%c1, %c0_99, %c0_100] : memref<2x128x384xbf16, #tpu.memory_space<vmem>>, vector<1x128x384xbf16>
    %374 = vector.shape_cast %373 : vector<1x128x384xbf16> to vector<128x384xbf16>
    %c1_101 = arith.constant 1 : index
    %c0_102 = arith.constant 0 : index
    %c0_103 = arith.constant 0 : index
    %375 = vector.load %arg5[%c1_101, %c0_102, %c0_103] : memref<2x1x128xf32, #tpu.memory_space<vmem>>, vector<1x1x128xf32>
    %376 = vector.shape_cast %375 : vector<1x1x128xf32> to vector<1x128xf32>
    %377 = vector.shape_cast %376 : vector<1x128xf32> to vector<1x128xf32>
    %378 = vector.broadcast %377 : vector<1x128xf32> to vector<8x128xf32>
    %cst_104 = arith.constant 0.000000e+00 : f32
    %379 = vector.broadcast %cst_104 : f32 to vector<8x128xf32>
    %c0_i32_105 = arith.constant 0 : i32
    %380 = arith.index_cast %c0_i32_105 : i32 to index
    %c0_106 = arith.constant 0 : index
    %c0_107 = arith.constant 0 : index
    %381 = vector.load %arg7[%380, %c0_106, %c0_107] : memref<8x8x384xbf16, #tpu.memory_space<vmem>>, vector<1x8x384xbf16>
    %382 = vector.shape_cast %381 : vector<1x8x384xbf16> to vector<8x384xbf16>
    %383 = arith.extf %382 : vector<8x384xbf16> to vector<8x384xf32>
    %384 = arith.truncf %379 : vector<8x128xf32> to vector<8x128xbf16>
    %cst_108 = arith.constant dense<0.000000e+00> : vector<8x384xf32>
    %385 = tpu.matmul %384, %374, %cst_108 {dimension_numbers = #tpu.dot_dimension_numbers<[1], [0], [0], [1], [0, 0, 1, 1], [], []>} : vector<8x128xbf16>, vector<128x384xbf16>, vector<8x384xf32> -> vector<8x384xf32>
    %386 = vector.extract_strided_slice %383 {offsets = [0, 0], sizes = [8, 128], strides = [1, 1]} : vector<8x384xf32> to vector<8x128xf32>
    %387 = vector.extract_strided_slice %383 {offsets = [0, 128], sizes = [8, 128], strides = [1, 1]} : vector<8x384xf32> to vector<8x128xf32>
    %388 = vector.extract_strided_slice %383 {offsets = [0, 256], sizes = [8, 128], strides = [1, 1]} : vector<8x384xf32> to vector<8x128xf32>
    %389 = vector.extract_strided_slice %385 {offsets = [0, 0], sizes = [8, 128], strides = [1, 1]} : vector<8x384xf32> to vector<8x128xf32>
    %390 = vector.extract_strided_slice %385 {offsets = [0, 128], sizes = [8, 128], strides = [1, 1]} : vector<8x384xf32> to vector<8x128xf32>
    %391 = vector.extract_strided_slice %385 {offsets = [0, 256], sizes = [8, 128], strides = [1, 1]} : vector<8x384xf32> to vector<8x128xf32>
    %392 = arith.addf %386, %389 : vector<8x128xf32>
    %393 = arith.negf %392 : vector<8x128xf32>
    %394 = math.exp %393 : vector<8x128xf32>
    %cst_109 = arith.constant 1.000000e+00 : f32
    %395 = vector.broadcast %cst_109 : f32 to vector<8x128xf32>
    %396 = arith.addf %395, %394 : vector<8x128xf32>
    %397 = arith.divf %395, %396 : vector<8x128xf32>
    %398 = arith.addf %387, %390 : vector<8x128xf32>
    %399 = arith.negf %398 : vector<8x128xf32>
    %400 = math.exp %399 : vector<8x128xf32>
    %cst_110 = arith.constant 1.000000e+00 : f32
    %401 = vector.broadcast %cst_110 : f32 to vector<8x128xf32>
    %402 = arith.addf %401, %400 : vector<8x128xf32>
    %403 = arith.divf %401, %402 : vector<8x128xf32>
    %404 = arith.addf %391, %378 : vector<8x128xf32>
    %405 = arith.mulf %397, %404 : vector<8x128xf32>
    %406 = arith.addf %388, %405 : vector<8x128xf32>
    %407 = math.tanh %406 : vector<8x128xf32>
    %cst_111 = arith.constant 1.000000e+00 : f32
    %408 = vector.broadcast %cst_111 : f32 to vector<8x128xf32>
    %409 = arith.subf %408, %403 : vector<8x128xf32>
    %410 = arith.mulf %409, %407 : vector<8x128xf32>
    %411 = arith.mulf %403, %379 : vector<8x128xf32>
    %412 = arith.addf %410, %411 : vector<8x128xf32>
    %413 = arith.truncf %412 : vector<8x128xf32> to vector<8x128xbf16>
    %414 = arith.index_cast %c0_i32_105 : i32 to index
    %c0_112 = arith.constant 0 : index
    %c0_113 = arith.constant 0 : index
    %415 = vector.load %arg6[%414, %c0_112, %c0_113] : memref<8x8x128xbf16, #tpu.memory_space<vmem>>, vector<1x8x128xbf16>
    %416 = vector.shape_cast %415 : vector<1x8x128xbf16> to vector<8x128xbf16>
    %417 = vector.shape_cast %413 : vector<8x128xbf16> to vector<1x8x128xbf16>
    tpu.vector_store %arg6[%414, %c0_112, %c0_113], %417 {strides = array<i32>} : memref<8x8x128xbf16, #tpu.memory_space<vmem>>, vector<1x8x128xbf16>,
    %c1_i32_114 = arith.constant 1 : i32
    %418 = arith.index_cast %c1_i32_114 : i32 to index
    %c0_115 = arith.constant 0 : index
    %c0_116 = arith.constant 0 : index
    %419 = vector.load %arg7[%418, %c0_115, %c0_116] : memref<8x8x384xbf16, #tpu.memory_space<vmem>>, vector<1x8x384xbf16>
    %420 = vector.shape_cast %419 : vector<1x8x384xbf16> to vector<8x384xbf16>
    %421 = arith.extf %420 : vector<8x384xbf16> to vector<8x384xf32>
    %422 = arith.truncf %412 : vector<8x128xf32> to vector<8x128xbf16>
    %cst_117 = arith.constant dense<0.000000e+00> : vector<8x384xf32>
    %423 = tpu.matmul %422, %374, %cst_117 {dimension_numbers = #tpu.dot_dimension_numbers<[1], [0], [0], [1], [0, 0, 1, 1], [], []>} : vector<8x128xbf16>, vector<128x384xbf16>, vector<8x384xf32> -> vector<8x384xf32>
    %424 = vector.extract_strided_slice %421 {offsets = [0, 0], sizes = [8, 128], strides = [1, 1]} : vector<8x384xf32> to vector<8x128xf32>
    %425 = vector.extract_strided_slice %421 {offsets = [0, 128], sizes = [8, 128], strides = [1, 1]} : vector<8x384xf32> to vector<8x128xf32>
    %426 = vector.extract_strided_slice %421 {offsets = [0, 256], sizes = [8, 128], strides = [1, 1]} : vector<8x384xf32> to vector<8x128xf32>
    %427 = vector.extract_strided_slice %423 {offsets = [0, 0], sizes = [8, 128], strides = [1, 1]} : vector<8x384xf32> to vector<8x128xf32>
    %428 = vector.extract_strided_slice %423 {offsets = [0, 128], sizes = [8, 128], strides = [1, 1]} : vector<8x384xf32> to vector<8x128xf32>
    %429 = vector.extract_strided_slice %423 {offsets = [0, 256], sizes = [8, 128], strides = [1, 1]} : vector<8x384xf32> to vector<8x128xf32>
    %430 = arith.addf %424, %427 : vector<8x128xf32>
    %431 = arith.negf %430 : vector<8x128xf32>
    %432 = math.exp %431 : vector<8x128xf32>
    %cst_118 = arith.constant 1.000000e+00 : f32
    %433 = vector.broadcast %cst_118 : f32 to vector<8x128xf32>
    %434 = arith.addf %433, %432 : vector<8x128xf32>
    %435 = arith.divf %433, %434 : vector<8x128xf32>
    %436 = arith.addf %425, %428 : vector<8x128xf32>
    %437 = arith.negf %436 : vector<8x128xf32>
    %438 = math.exp %437 : vector<8x128xf32>
    %cst_119 = arith.constant 1.000000e+00 : f32
    %439 = vector.broadcast %cst_119 : f32 to vector<8x128xf32>
    %440 = arith.addf %439, %438 : vector<8x128xf32>
    %441 = arith.divf %439, %440 : vector<8x128xf32>
    %442 = arith.addf %429, %378 : vector<8x128xf32>
    %443 = arith.mulf %435, %442 : vector<8x128xf32>
    %444 = arith.addf %426, %443 : vector<8x128xf32>
    %445 = math.tanh %444 : vector<8x128xf32>
    %cst_120 = arith.constant 1.000000e+00 : f32
    %446 = vector.broadcast %cst_120 : f32 to vector<8x128xf32>
    %447 = arith.subf %446, %441 : vector<8x128xf32>
    %448 = arith.mulf %447, %445 : vector<8x128xf32>
    %449 = arith.mulf %441, %412 : vector<8x128xf32>
    %450 = arith.addf %448, %449 : vector<8x128xf32>
    %451 = arith.truncf %450 : vector<8x128xf32> to vector<8x128xbf16>
    %452 = arith.index_cast %c1_i32_114 : i32 to index
    %c0_121 = arith.constant 0 : index
    %c0_122 = arith.constant 0 : index
    %453 = vector.load %arg6[%452, %c0_121, %c0_122] : memref<8x8x128xbf16, #tpu.memory_space<vmem>>, vector<1x8x128xbf16>
    %454 = vector.shape_cast %453 : vector<1x8x128xbf16> to vector<8x128xbf16>
    %455 = vector.shape_cast %451 : vector<8x128xbf16> to vector<1x8x128xbf16>
    tpu.vector_store %arg6[%452, %c0_121, %c0_122], %455 {strides = array<i32>} : memref<8x8x128xbf16, #tpu.memory_space<vmem>>, vector<1x8x128xbf16>,
    %c2_i32_123 = arith.constant 2 : i32
    %456 = arith.index_cast %c2_i32_123 : i32 to index
    %c0_124 = arith.constant 0 : index
    %c0_125 = arith.constant 0 : index
    %457 = vector.load %arg7[%456, %c0_124, %c0_125] : memref<8x8x384xbf16, #tpu.memory_space<vmem>>, vector<1x8x384xbf16>
    %458 = vector.shape_cast %457 : vector<1x8x384xbf16> to vector<8x384xbf16>
    %459 = arith.extf %458 : vector<8x384xbf16> to vector<8x384xf32>
    %460 = arith.truncf %450 : vector<8x128xf32> to vector<8x128xbf16>
    %cst_126 = arith.constant dense<0.000000e+00> : vector<8x384xf32>
    %461 = tpu.matmul %460, %374, %cst_126 {dimension_numbers = #tpu.dot_dimension_numbers<[1], [0], [0], [1], [0, 0, 1, 1], [], []>} : vector<8x128xbf16>, vector<128x384xbf16>, vector<8x384xf32> -> vector<8x384xf32>
    %462 = vector.extract_strided_slice %459 {offsets = [0, 0], sizes = [8, 128], strides = [1, 1]} : vector<8x384xf32> to vector<8x128xf32>
    %463 = vector.extract_strided_slice %459 {offsets = [0, 128], sizes = [8, 128], strides = [1, 1]} : vector<8x384xf32> to vector<8x128xf32>
    %464 = vector.extract_strided_slice %459 {offsets = [0, 256], sizes = [8, 128], strides = [1, 1]} : vector<8x384xf32> to vector<8x128xf32>
    %465 = vector.extract_strided_slice %461 {offsets = [0, 0], sizes = [8, 128], strides = [1, 1]} : vector<8x384xf32> to vector<8x128xf32>
    %466 = vector.extract_strided_slice %461 {offsets = [0, 128], sizes = [8, 128], strides = [1, 1]} : vector<8x384xf32> to vector<8x128xf32>
    %467 = vector.extract_strided_slice %461 {offsets = [0, 256], sizes = [8, 128], strides = [1, 1]} : vector<8x384xf32> to vector<8x128xf32>
    %468 = arith.addf %462, %465 : vector<8x128xf32>
    %469 = arith.negf %468 : vector<8x128xf32>
    %470 = math.exp %469 : vector<8x128xf32>
    %cst_127 = arith.constant 1.000000e+00 : f32
    %471 = vector.broadcast %cst_127 : f32 to vector<8x128xf32>
    %472 = arith.addf %471, %470 : vector<8x128xf32>
    %473 = arith.divf %471, %472 : vector<8x128xf32>
    %474 = arith.addf %463, %466 : vector<8x128xf32>
    %475 = arith.negf %474 : vector<8x128xf32>
    %476 = math.exp %475 : vector<8x128xf32>
    %cst_128 = arith.constant 1.000000e+00 : f32
    %477 = vector.broadcast %cst_128 : f32 to vector<8x128xf32>
    %478 = arith.addf %477, %476 : vector<8x128xf32>
    %479 = arith.divf %477, %478 : vector<8x128xf32>
    %480 = arith.addf %467, %378 : vector<8x128xf32>
    %481 = arith.mulf %473, %480 : vector<8x128xf32>
    %482 = arith.addf %464, %481 : vector<8x128xf32>
    %483 = math.tanh %482 : vector<8x128xf32>
    %cst_129 = arith.constant 1.000000e+00 : f32
    %484 = vector.broadcast %cst_129 : f32 to vector<8x128xf32>
    %485 = arith.subf %484, %479 : vector<8x128xf32>
    %486 = arith.mulf %485, %483 : vector<8x128xf32>
    %487 = arith.mulf %479, %450 : vector<8x128xf32>
    %488 = arith.addf %486, %487 : vector<8x128xf32>
    %489 = arith.truncf %488 : vector<8x128xf32> to vector<8x128xbf16>
    %490 = arith.index_cast %c2_i32_123 : i32 to index
    %c0_130 = arith.constant 0 : index
    %c0_131 = arith.constant 0 : index
    %491 = vector.load %arg6[%490, %c0_130, %c0_131] : memref<8x8x128xbf16, #tpu.memory_space<vmem>>, vector<1x8x128xbf16>
    %492 = vector.shape_cast %491 : vector<1x8x128xbf16> to vector<8x128xbf16>
    %493 = vector.shape_cast %489 : vector<8x128xbf16> to vector<1x8x128xbf16>
    tpu.vector_store %arg6[%490, %c0_130, %c0_131], %493 {strides = array<i32>} : memref<8x8x128xbf16, #tpu.memory_space<vmem>>, vector<1x8x128xbf16>,
    %c3_i32_132 = arith.constant 3 : i32
    %494 = arith.index_cast %c3_i32_132 : i32 to index
    %c0_133 = arith.constant 0 : index
    %c0_134 = arith.constant 0 : index
    %495 = vector.load %arg7[%494, %c0_133, %c0_134] : memref<8x8x384xbf16, #tpu.memory_space<vmem>>, vector<1x8x384xbf16>
    %496 = vector.shape_cast %495 : vector<1x8x384xbf16> to vector<8x384xbf16>
    %497 = arith.extf %496 : vector<8x384xbf16> to vector<8x384xf32>
    %498 = arith.truncf %488 : vector<8x128xf32> to vector<8x128xbf16>
    %cst_135 = arith.constant dense<0.000000e+00> : vector<8x384xf32>
    %499 = tpu.matmul %498, %374, %cst_135 {dimension_numbers = #tpu.dot_dimension_numbers<[1], [0], [0], [1], [0, 0, 1, 1], [], []>} : vector<8x128xbf16>, vector<128x384xbf16>, vector<8x384xf32> -> vector<8x384xf32>
    %500 = vector.extract_strided_slice %497 {offsets = [0, 0], sizes = [8, 128], strides = [1, 1]} : vector<8x384xf32> to vector<8x128xf32>
    %501 = vector.extract_strided_slice %497 {offsets = [0, 128], sizes = [8, 128], strides = [1, 1]} : vector<8x384xf32> to vector<8x128xf32>
    %502 = vector.extract_strided_slice %497 {offsets = [0, 256], sizes = [8, 128], strides = [1, 1]} : vector<8x384xf32> to vector<8x128xf32>
    %503 = vector.extract_strided_slice %499 {offsets = [0, 0], sizes = [8, 128], strides = [1, 1]} : vector<8x384xf32> to vector<8x128xf32>
    %504 = vector.extract_strided_slice %499 {offsets = [0, 128], sizes = [8, 128], strides = [1, 1]} : vector<8x384xf32> to vector<8x128xf32>
    %505 = vector.extract_strided_slice %499 {offsets = [0, 256], sizes = [8, 128], strides = [1, 1]} : vector<8x384xf32> to vector<8x128xf32>
    %506 = arith.addf %500, %503 : vector<8x128xf32>
    %507 = arith.negf %506 : vector<8x128xf32>
    %508 = math.exp %507 : vector<8x128xf32>
    %cst_136 = arith.constant 1.000000e+00 : f32
    %509 = vector.broadcast %cst_136 : f32 to vector<8x128xf32>
    %510 = arith.addf %509, %508 : vector<8x128xf32>
    %511 = arith.divf %509, %510 : vector<8x128xf32>
    %512 = arith.addf %501, %504 : vector<8x128xf32>
    %513 = arith.negf %512 : vector<8x128xf32>
    %514 = math.exp %513 : vector<8x128xf32>
    %cst_137 = arith.constant 1.000000e+00 : f32
    %515 = vector.broadcast %cst_137 : f32 to vector<8x128xf32>
    %516 = arith.addf %515, %514 : vector<8x128xf32>
    %517 = arith.divf %515, %516 : vector<8x128xf32>
    %518 = arith.addf %505, %378 : vector<8x128xf32>
    %519 = arith.mulf %511, %518 : vector<8x128xf32>
    %520 = arith.addf %502, %519 : vector<8x128xf32>
    %521 = math.tanh %520 : vector<8x128xf32>
    %cst_138 = arith.constant 1.000000e+00 : f32
    %522 = vector.broadcast %cst_138 : f32 to vector<8x128xf32>
    %523 = arith.subf %522, %517 : vector<8x128xf32>
    %524 = arith.mulf %523, %521 : vector<8x128xf32>
    %525 = arith.mulf %517, %488 : vector<8x128xf32>
    %526 = arith.addf %524, %525 : vector<8x128xf32>
    %527 = arith.truncf %526 : vector<8x128xf32> to vector<8x128xbf16>
    %528 = arith.index_cast %c3_i32_132 : i32 to index
    %c0_139 = arith.constant 0 : index
    %c0_140 = arith.constant 0 : index
    %529 = vector.load %arg6[%528, %c0_139, %c0_140] : memref<8x8x128xbf16, #tpu.memory_space<vmem>>, vector<1x8x128xbf16>
    %530 = vector.shape_cast %529 : vector<1x8x128xbf16> to vector<8x128xbf16>
    %531 = vector.shape_cast %527 : vector<8x128xbf16> to vector<1x8x128xbf16>
    tpu.vector_store %arg6[%528, %c0_139, %c0_140], %531 {strides = array<i32>} : memref<8x8x128xbf16, #tpu.memory_space<vmem>>, vector<1x8x128xbf16>,
    %c4_i32_141 = arith.constant 4 : i32
    %532 = arith.index_cast %c4_i32_141 : i32 to index
    %c0_142 = arith.constant 0 : index
    %c0_143 = arith.constant 0 : index
    %533 = vector.load %arg7[%532, %c0_142, %c0_143] : memref<8x8x384xbf16, #tpu.memory_space<vmem>>, vector<1x8x384xbf16>
    %534 = vector.shape_cast %533 : vector<1x8x384xbf16> to vector<8x384xbf16>
    %535 = arith.extf %534 : vector<8x384xbf16> to vector<8x384xf32>
    %536 = arith.truncf %526 : vector<8x128xf32> to vector<8x128xbf16>
    %cst_144 = arith.constant dense<0.000000e+00> : vector<8x384xf32>
    %537 = tpu.matmul %536, %374, %cst_144 {dimension_numbers = #tpu.dot_dimension_numbers<[1], [0], [0], [1], [0, 0, 1, 1], [], []>} : vector<8x128xbf16>, vector<128x384xbf16>, vector<8x384xf32> -> vector<8x384xf32>
    %538 = vector.extract_strided_slice %535 {offsets = [0, 0], sizes = [8, 128], strides = [1, 1]} : vector<8x384xf32> to vector<8x128xf32>
    %539 = vector.extract_strided_slice %535 {offsets = [0, 128], sizes = [8, 128], strides = [1, 1]} : vector<8x384xf32> to vector<8x128xf32>
    %540 = vector.extract_strided_slice %535 {offsets = [0, 256], sizes = [8, 128], strides = [1, 1]} : vector<8x384xf32> to vector<8x128xf32>
    %541 = vector.extract_strided_slice %537 {offsets = [0, 0], sizes = [8, 128], strides = [1, 1]} : vector<8x384xf32> to vector<8x128xf32>
    %542 = vector.extract_strided_slice %537 {offsets = [0, 128], sizes = [8, 128], strides = [1, 1]} : vector<8x384xf32> to vector<8x128xf32>
    %543 = vector.extract_strided_slice %537 {offsets = [0, 256], sizes = [8, 128], strides = [1, 1]} : vector<8x384xf32> to vector<8x128xf32>
    %544 = arith.addf %538, %541 : vector<8x128xf32>
    %545 = arith.negf %544 : vector<8x128xf32>
    %546 = math.exp %545 : vector<8x128xf32>
    %cst_145 = arith.constant 1.000000e+00 : f32
    %547 = vector.broadcast %cst_145 : f32 to vector<8x128xf32>
    %548 = arith.addf %547, %546 : vector<8x128xf32>
    %549 = arith.divf %547, %548 : vector<8x128xf32>
    %550 = arith.addf %539, %542 : vector<8x128xf32>
    %551 = arith.negf %550 : vector<8x128xf32>
    %552 = math.exp %551 : vector<8x128xf32>
    %cst_146 = arith.constant 1.000000e+00 : f32
    %553 = vector.broadcast %cst_146 : f32 to vector<8x128xf32>
    %554 = arith.addf %553, %552 : vector<8x128xf32>
    %555 = arith.divf %553, %554 : vector<8x128xf32>
    %556 = arith.addf %543, %378 : vector<8x128xf32>
    %557 = arith.mulf %549, %556 : vector<8x128xf32>
    %558 = arith.addf %540, %557 : vector<8x128xf32>
    %559 = math.tanh %558 : vector<8x128xf32>
    %cst_147 = arith.constant 1.000000e+00 : f32
    %560 = vector.broadcast %cst_147 : f32 to vector<8x128xf32>
    %561 = arith.subf %560, %555 : vector<8x128xf32>
    %562 = arith.mulf %561, %559 : vector<8x128xf32>
    %563 = arith.mulf %555, %526 : vector<8x128xf32>
    %564 = arith.addf %562, %563 : vector<8x128xf32>
    %565 = arith.truncf %564 : vector<8x128xf32> to vector<8x128xbf16>
    %566 = arith.index_cast %c4_i32_141 : i32 to index
    %c0_148 = arith.constant 0 : index
    %c0_149 = arith.constant 0 : index
    %567 = vector.load %arg6[%566, %c0_148, %c0_149] : memref<8x8x128xbf16, #tpu.memory_space<vmem>>, vector<1x8x128xbf16>
    %568 = vector.shape_cast %567 : vector<1x8x128xbf16> to vector<8x128xbf16>
    %569 = vector.shape_cast %565 : vector<8x128xbf16> to vector<1x8x128xbf16>
    tpu.vector_store %arg6[%566, %c0_148, %c0_149], %569 {strides = array<i32>} : memref<8x8x128xbf16, #tpu.memory_space<vmem>>, vector<1x8x128xbf16>,
    %c5_i32_150 = arith.constant 5 : i32
    %570 = arith.index_cast %c5_i32_150 : i32 to index
    %c0_151 = arith.constant 0 : index
    %c0_152 = arith.constant 0 : index
    %571 = vector.load %arg7[%570, %c0_151, %c0_152] : memref<8x8x384xbf16, #tpu.memory_space<vmem>>, vector<1x8x384xbf16>
    %572 = vector.shape_cast %571 : vector<1x8x384xbf16> to vector<8x384xbf16>
    %573 = arith.extf %572 : vector<8x384xbf16> to vector<8x384xf32>
    %574 = arith.truncf %564 : vector<8x128xf32> to vector<8x128xbf16>
    %cst_153 = arith.constant dense<0.000000e+00> : vector<8x384xf32>
    %575 = tpu.matmul %574, %374, %cst_153 {dimension_numbers = #tpu.dot_dimension_numbers<[1], [0], [0], [1], [0, 0, 1, 1], [], []>} : vector<8x128xbf16>, vector<128x384xbf16>, vector<8x384xf32> -> vector<8x384xf32>
    %576 = vector.extract_strided_slice %573 {offsets = [0, 0], sizes = [8, 128], strides = [1, 1]} : vector<8x384xf32> to vector<8x128xf32>
    %577 = vector.extract_strided_slice %573 {offsets = [0, 128], sizes = [8, 128], strides = [1, 1]} : vector<8x384xf32> to vector<8x128xf32>
    %578 = vector.extract_strided_slice %573 {offsets = [0, 256], sizes = [8, 128], strides = [1, 1]} : vector<8x384xf32> to vector<8x128xf32>
    %579 = vector.extract_strided_slice %575 {offsets = [0, 0], sizes = [8, 128], strides = [1, 1]} : vector<8x384xf32> to vector<8x128xf32>
    %580 = vector.extract_strided_slice %575 {offsets = [0, 128], sizes = [8, 128], strides = [1, 1]} : vector<8x384xf32> to vector<8x128xf32>
    %581 = vector.extract_strided_slice %575 {offsets = [0, 256], sizes = [8, 128], strides = [1, 1]} : vector<8x384xf32> to vector<8x128xf32>
    %582 = arith.addf %576, %579 : vector<8x128xf32>
    %583 = arith.negf %582 : vector<8x128xf32>
    %584 = math.exp %583 : vector<8x128xf32>
    %cst_154 = arith.constant 1.000000e+00 : f32
    %585 = vector.broadcast %cst_154 : f32 to vector<8x128xf32>
    %586 = arith.addf %585, %584 : vector<8x128xf32>
    %587 = arith.divf %585, %586 : vector<8x128xf32>
    %588 = arith.addf %577, %580 : vector<8x128xf32>
    %589 = arith.negf %588 : vector<8x128xf32>
    %590 = math.exp %589 : vector<8x128xf32>
    %cst_155 = arith.constant 1.000000e+00 : f32
    %591 = vector.broadcast %cst_155 : f32 to vector<8x128xf32>
    %592 = arith.addf %591, %590 : vector<8x128xf32>
    %593 = arith.divf %591, %592 : vector<8x128xf32>
    %594 = arith.addf %581, %378 : vector<8x128xf32>
    %595 = arith.mulf %587, %594 : vector<8x128xf32>
    %596 = arith.addf %578, %595 : vector<8x128xf32>
    %597 = math.tanh %596 : vector<8x128xf32>
    %cst_156 = arith.constant 1.000000e+00 : f32
    %598 = vector.broadcast %cst_156 : f32 to vector<8x128xf32>
    %599 = arith.subf %598, %593 : vector<8x128xf32>
    %600 = arith.mulf %599, %597 : vector<8x128xf32>
    %601 = arith.mulf %593, %564 : vector<8x128xf32>
    %602 = arith.addf %600, %601 : vector<8x128xf32>
    %603 = arith.truncf %602 : vector<8x128xf32> to vector<8x128xbf16>
    %604 = arith.index_cast %c5_i32_150 : i32 to index
    %c0_157 = arith.constant 0 : index
    %c0_158 = arith.constant 0 : index
    %605 = vector.load %arg6[%604, %c0_157, %c0_158] : memref<8x8x128xbf16, #tpu.memory_space<vmem>>, vector<1x8x128xbf16>
    %606 = vector.shape_cast %605 : vector<1x8x128xbf16> to vector<8x128xbf16>
    %607 = vector.shape_cast %603 : vector<8x128xbf16> to vector<1x8x128xbf16>
    tpu.vector_store %arg6[%604, %c0_157, %c0_158], %607 {strides = array<i32>} : memref<8x8x128xbf16, #tpu.memory_space<vmem>>, vector<1x8x128xbf16>,
    %c6_i32_159 = arith.constant 6 : i32
    %608 = arith.index_cast %c6_i32_159 : i32 to index
    %c0_160 = arith.constant 0 : index
    %c0_161 = arith.constant 0 : index
    %609 = vector.load %arg7[%608, %c0_160, %c0_161] : memref<8x8x384xbf16, #tpu.memory_space<vmem>>, vector<1x8x384xbf16>
    %610 = vector.shape_cast %609 : vector<1x8x384xbf16> to vector<8x384xbf16>
    %611 = arith.extf %610 : vector<8x384xbf16> to vector<8x384xf32>
    %612 = arith.truncf %602 : vector<8x128xf32> to vector<8x128xbf16>
    %cst_162 = arith.constant dense<0.000000e+00> : vector<8x384xf32>
    %613 = tpu.matmul %612, %374, %cst_162 {dimension_numbers = #tpu.dot_dimension_numbers<[1], [0], [0], [1], [0, 0, 1, 1], [], []>} : vector<8x128xbf16>, vector<128x384xbf16>, vector<8x384xf32> -> vector<8x384xf32>
    %614 = vector.extract_strided_slice %611 {offsets = [0, 0], sizes = [8, 128], strides = [1, 1]} : vector<8x384xf32> to vector<8x128xf32>
    %615 = vector.extract_strided_slice %611 {offsets = [0, 128], sizes = [8, 128], strides = [1, 1]} : vector<8x384xf32> to vector<8x128xf32>
    %616 = vector.extract_strided_slice %611 {offsets = [0, 256], sizes = [8, 128], strides = [1, 1]} : vector<8x384xf32> to vector<8x128xf32>
    %617 = vector.extract_strided_slice %613 {offsets = [0, 0], sizes = [8, 128], strides = [1, 1]} : vector<8x384xf32> to vector<8x128xf32>
    %618 = vector.extract_strided_slice %613 {offsets = [0, 128], sizes = [8, 128], strides = [1, 1]} : vector<8x384xf32> to vector<8x128xf32>
    %619 = vector.extract_strided_slice %613 {offsets = [0, 256], sizes = [8, 128], strides = [1, 1]} : vector<8x384xf32> to vector<8x128xf32>
    %620 = arith.addf %614, %617 : vector<8x128xf32>
    %621 = arith.negf %620 : vector<8x128xf32>
    %622 = math.exp %621 : vector<8x128xf32>
    %cst_163 = arith.constant 1.000000e+00 : f32
    %623 = vector.broadcast %cst_163 : f32 to vector<8x128xf32>
    %624 = arith.addf %623, %622 : vector<8x128xf32>
    %625 = arith.divf %623, %624 : vector<8x128xf32>
    %626 = arith.addf %615, %618 : vector<8x128xf32>
    %627 = arith.negf %626 : vector<8x128xf32>
    %628 = math.exp %627 : vector<8x128xf32>
    %cst_164 = arith.constant 1.000000e+00 : f32
    %629 = vector.broadcast %cst_164 : f32 to vector<8x128xf32>
    %630 = arith.addf %629, %628 : vector<8x128xf32>
    %631 = arith.divf %629, %630 : vector<8x128xf32>
    %632 = arith.addf %619, %378 : vector<8x128xf32>
    %633 = arith.mulf %625, %632 : vector<8x128xf32>
    %634 = arith.addf %616, %633 : vector<8x128xf32>
    %635 = math.tanh %634 : vector<8x128xf32>
    %cst_165 = arith.constant 1.000000e+00 : f32
    %636 = vector.broadcast %cst_165 : f32 to vector<8x128xf32>
    %637 = arith.subf %636, %631 : vector<8x128xf32>
    %638 = arith.mulf %637, %635 : vector<8x128xf32>
    %639 = arith.mulf %631, %602 : vector<8x128xf32>
    %640 = arith.addf %638, %639 : vector<8x128xf32>
    %641 = arith.truncf %640 : vector<8x128xf32> to vector<8x128xbf16>
    %642 = arith.index_cast %c6_i32_159 : i32 to index
    %c0_166 = arith.constant 0 : index
    %c0_167 = arith.constant 0 : index
    %643 = vector.load %arg6[%642, %c0_166, %c0_167] : memref<8x8x128xbf16, #tpu.memory_space<vmem>>, vector<1x8x128xbf16>
    %644 = vector.shape_cast %643 : vector<1x8x128xbf16> to vector<8x128xbf16>
    %645 = vector.shape_cast %641 : vector<8x128xbf16> to vector<1x8x128xbf16>
    tpu.vector_store %arg6[%642, %c0_166, %c0_167], %645 {strides = array<i32>} : memref<8x8x128xbf16, #tpu.memory_space<vmem>>, vector<1x8x128xbf16>,
    %c7_i32_168 = arith.constant 7 : i32
    %646 = arith.index_cast %c7_i32_168 : i32 to index
    %c0_169 = arith.constant 0 : index
    %c0_170 = arith.constant 0 : index
    %647 = vector.load %arg7[%646, %c0_169, %c0_170] : memref<8x8x384xbf16, #tpu.memory_space<vmem>>, vector<1x8x384xbf16>
    %648 = vector.shape_cast %647 : vector<1x8x384xbf16> to vector<8x384xbf16>
    %649 = arith.extf %648 : vector<8x384xbf16> to vector<8x384xf32>
    %650 = arith.truncf %640 : vector<8x128xf32> to vector<8x128xbf16>
    %cst_171 = arith.constant dense<0.000000e+00> : vector<8x384xf32>
    %651 = tpu.matmul %650, %374, %cst_171 {dimension_numbers = #tpu.dot_dimension_numbers<[1], [0], [0], [1], [0, 0, 1, 1], [], []>} : vector<8x128xbf16>, vector<128x384xbf16>, vector<8x384xf32> -> vector<8x384xf32>
    %652 = vector.extract_strided_slice %649 {offsets = [0, 0], sizes = [8, 128], strides = [1, 1]} : vector<8x384xf32> to vector<8x128xf32>
    %653 = vector.extract_strided_slice %649 {offsets = [0, 128], sizes = [8, 128], strides = [1, 1]} : vector<8x384xf32> to vector<8x128xf32>
    %654 = vector.extract_strided_slice %649 {offsets = [0, 256], sizes = [8, 128], strides = [1, 1]} : vector<8x384xf32> to vector<8x128xf32>
    %655 = vector.extract_strided_slice %651 {offsets = [0, 0], sizes = [8, 128], strides = [1, 1]} : vector<8x384xf32> to vector<8x128xf32>
    %656 = vector.extract_strided_slice %651 {offsets = [0, 128], sizes = [8, 128], strides = [1, 1]} : vector<8x384xf32> to vector<8x128xf32>
    %657 = vector.extract_strided_slice %651 {offsets = [0, 256], sizes = [8, 128], strides = [1, 1]} : vector<8x384xf32> to vector<8x128xf32>
    %658 = arith.addf %652, %655 : vector<8x128xf32>
    %659 = arith.negf %658 : vector<8x128xf32>
    %660 = math.exp %659 : vector<8x128xf32>
    %cst_172 = arith.constant 1.000000e+00 : f32
    %661 = vector.broadcast %cst_172 : f32 to vector<8x128xf32>
    %662 = arith.addf %661, %660 : vector<8x128xf32>
    %663 = arith.divf %661, %662 : vector<8x128xf32>
    %664 = arith.addf %653, %656 : vector<8x128xf32>
    %665 = arith.negf %664 : vector<8x128xf32>
    %666 = math.exp %665 : vector<8x128xf32>
    %cst_173 = arith.constant 1.000000e+00 : f32
    %667 = vector.broadcast %cst_173 : f32 to vector<8x128xf32>
    %668 = arith.addf %667, %666 : vector<8x128xf32>
    %669 = arith.divf %667, %668 : vector<8x128xf32>
    %670 = arith.addf %657, %378 : vector<8x128xf32>
    %671 = arith.mulf %663, %670 : vector<8x128xf32>
    %672 = arith.addf %654, %671 : vector<8x128xf32>
    %673 = math.tanh %672 : vector<8x128xf32>
    %cst_174 = arith.constant 1.000000e+00 : f32
    %674 = vector.broadcast %cst_174 : f32 to vector<8x128xf32>
    %675 = arith.subf %674, %669 : vector<8x128xf32>
    %676 = arith.mulf %675, %673 : vector<8x128xf32>
    %677 = arith.mulf %669, %640 : vector<8x128xf32>
    %678 = arith.addf %676, %677 : vector<8x128xf32>
    %679 = arith.truncf %678 : vector<8x128xf32> to vector<8x128xbf16>
    %680 = arith.index_cast %c7_i32_168 : i32 to index
    %c0_175 = arith.constant 0 : index
    %c0_176 = arith.constant 0 : index
    %681 = vector.load %arg6[%680, %c0_175, %c0_176] : memref<8x8x128xbf16, #tpu.memory_space<vmem>>, vector<1x8x128xbf16>
    %682 = vector.shape_cast %681 : vector<1x8x128xbf16> to vector<8x128xbf16>
    %683 = vector.shape_cast %679 : vector<8x128xbf16> to vector<1x8x128xbf16>
    tpu.vector_store %arg6[%680, %c0_175, %c0_176], %683 {strides = array<i32>} : memref<8x8x128xbf16, #tpu.memory_space<vmem>>, vector<1x8x128xbf16>,
    %c8_i32_177 = arith.constant 8 : i32
    return
  }
  func.func @transform_0(%arg0: i32) -> (i32, i32, i32) {
    %c0_i32 = arith.constant 0 : i32
    %c0_i32_0 = arith.constant 0 : i32
    %c0_i32_1 = arith.constant 0 : i32
    %c0_i32_2 = arith.constant 0 : i32
    return %c0_i32, %c0_i32_0, %c0_i32_1 : i32, i32, i32
  }
  func.func @transform_1(%arg0: i32) -> (i32, i32, i32) {
    %c0_i32 = arith.constant 0 : i32
    %c0_i32_0 = arith.constant 0 : i32
    %c0_i32_1 = arith.constant 0 : i32
    %c0_i32_2 = arith.constant 0 : i32
    return %c0_i32, %c0_i32_0, %c0_i32_1 : i32, i32, i32
  }
  func.func @transform_2(%arg0: i32) -> (i32, i32, i32) {
    %c0_i32 = arith.constant 0 : i32
    %c0_i32_0 = arith.constant 0 : i32
    %c0_i32_1 = arith.constant 0 : i32
    %c0_i32_2 = arith.constant 0 : i32
    return %c0_i32, %c0_i32_0, %c0_i32_1 : i32, i32, i32
  }
  func.func @transform_3(%arg0: i32) -> (i32, i32, i32) {
    %c0_i32 = arith.constant 0 : i32
    %c0_i32_0 = arith.constant 0 : i32
    %c0_i32_1 = arith.constant 0 : i32
    %c0_i32_2 = arith.constant 0 : i32
    return %c0_i32, %c0_i32_0, %c0_i32_1 : i32, i32, i32
  }
  func.func @transform_4(%arg0: i32) -> (i32, i32, i32) {
    %c0_i32 = arith.constant 0 : i32
    %c0_i32_0 = arith.constant 0 : i32
    %c0_i32_1 = arith.constant 0 : i32
    %c0_i32_2 = arith.constant 0 : i32
    return %c0_i32, %c0_i32_0, %c0_i32_1 : i32, i32, i32
  }
  func.func @transform_5(%arg0: i32) -> (i32, i32, i32) {
    %c0_i32 = arith.constant 0 : i32
    %c0_i32_0 = arith.constant 0 : i32
    %c0_i32_1 = arith.constant 0 : i32
    %c0_i32_2 = arith.constant 0 : i32
    return %c0_i32, %c0_i32_0, %c0_i32_1 : i32, i32, i32
  }
}

</mosaic_0001>

<bundles_post_ra>
// kernel: rnn_decoder_forward.1
= control target key start
LH: loop header
LB: loop body
LE: loop exit
PB: predicated region body
PF: predicated region fallthrough
CT: control target
= control target key end

     0   :  { %10 = vsyncpa [#allocation4], 0  ;;  %s4074_s0 = inlined_call_operand.vmem [shape: bf16[8,8,384], index: 0, kind: input, shape index: {}]   ;;  %s4075_s1 = inlined_call_operand.hbm [shape: bf16[1,128,384], index: 1, kind: input, shape index: {}]   ;;  %s4076_s2 = inlined_call_operand.hbm [shape: bf16[2,128,384], index: 2, kind: input, shape index: {}]   ;;  %s4077_s3 = inlined_call_operand.vmem [shape: f32[1,1,384], index: 3, kind: input, shape index: {}]   ;;  %s4078_s4 = inlined_call_operand.vmem [shape: f32[2,1,128], index: 4, kind: input, shape index: {}]   ;;  %s4079_s5 = inlined_call_operand.vmem [shape: bf16[8,8,128], index: 5, kind: output, shape index: {}]  }
   0x1   :  { %s18_s20 = sshll.u32 %s4075_s1, 4  ;;  %s19_s20 = int_to_ptr.hbm [resolvable:$true] %s18_s20 }
   0x2   :  { %11 = vsyncpa [#allocation6], 0  ;;  %s3068_s21 = smov [#allocation3]   ;;  %s31_s25 = sshll.u32 %s4076_s2, 4  ;;  %s32_s25 = int_to_ptr.hbm [resolvable:$true] %s31_s25 }
   0x3   :  { %s20_s22 = sshll.u32 %s3068_s21, 4  ;;  %s3069_s26 = smov 192   ;;  %s21_s22 = int_to_ptr.vmem [resolvable:$true] %s20_s22 }
   0x4   :  { %s3070_s27 = smov 12   ;;  %s3071_s28 = smov [#allocation5]  }
   0x5   :  { %26 = dma.hbm_to_vmem [thread:$0]  %s19_s20, 3072, %s21_s22, [#allocation4], %s3069_s26, %s3069_s26, %s3070_s27  }
   0x6   :  { %s33_s29 = sshll.u32 %s3071_s28, 4  ;;  %s34_s29 = int_to_ptr.vmem [resolvable:$true] %s33_s29 }
   0x7   :  { %39 = dma.hbm_to_vmem [thread:$0]  %s32_s25, 6144, %s34_s29, [#allocation6], %s3069_s26, %s3069_s26, %s3070_s27  }
   0x8   :  { %3064 = dma.done.wait [#allocation4], 3072  }
   0x9   :  { %3065 = vsyncadd [#allocation4], 4294964224 }
   0xa   :  { %3066 = dma.done.wait [#allocation6], 6144  }
   0xb   :  { %3067 = vsyncadd [#allocation6], 4294961152  ;;  %v2512_v0 = vld [vmem:[#allocation5 + $0xa8] sm:$0xf]  ;;  %v2797_v1 = vld [vmem:[#allocation5 + $0xb0] sm:$0xf0] }
   0xc   :  { %v2796_v2 = vld [vmem:[#allocation5 + $0xac] sm:$0xf]  ;;  %v3109_v3 = vor.u32 %v2797_v1, %v2512_v0  ;;  %v2514_v4 = vld [vmem:[#allocation5 + $0xb4] sm:$0xf0]  ;;  %v2500_v5 = vld [vmem:[#allocation5 + $0x90] sm:$0xf] }
   0xd   :  { %v2794_v6 = vld [vmem:[#allocation5 + $0x98] sm:$0xf0]  ;;  %v3111_v7 = vor.u32 %v2796_v2, %v2514_v4  ;;  %v2793_v8 = vld [vmem:[#allocation5 + $0x94] sm:$0xf]  ;;  %v2502_v9 = vld [vmem:[#allocation5 + $0x9c] sm:$0xf0] }
   0xe   :  { %262 = vmatpush.bf16.msra.mxu0 %v3109_v3  ;;  %v3114_v10 = vor.u32 %v2794_v6, %v2500_v5  ;;  %v3117_v11 = vor.u32 %v2793_v8, %v2502_v9  ;;  %v2488_v12 = vld [vmem:[#allocation5 + $0x78] sm:$0xf]  ;;  %v2791_v13 = vld [vmem:[#allocation5 + $0x80] sm:$0xf0]  ;;  %v2790_v14 = vld [vmem:[#allocation5 + $0x7c] sm:$0xf] }
   0xf   :  { %275 = vmatpush.bf16.msra.mxu1 %v3111_v7  ;;  %v2490_v15 = vld [vmem:[#allocation5 + $0x84] sm:$0xf0]  ;;  %v2520_v16 = vld [vmem:[#allocation5 + $0xb0] sm:$0xf]  ;;  %v2798_v17 = vld [vmem:[#allocation5 + $0xb8] sm:$0xf0]  ;;  %v3122_v19 = vor.u32 %v2791_v13, %v2488_v12 }
  0x10   :  { %v3119_v18 = vor.u32 %v2798_v17, %v2520_v16  ;;  %v2508_v20 = vld [vmem:[#allocation5 + $0x98] sm:$0xf]  ;;  %v2795_v21 = vld [vmem:[#allocation5 + $0xa0] sm:$0xf0]  ;;  %v3125_v22 = vor.u32 %v2790_v14, %v2490_v15  ;;  %v2476_v23 = vld [vmem:[#allocation5 + $0x60] sm:$0xf] }
  0x11   :  { %v2788_v24 = vld [vmem:[#allocation5 + $0x68] sm:$0xf0]  ;;  %v2787_v25 = vld [vmem:[#allocation5 + $0x64] sm:$0xf]  ;;  %v3128_v26 = vor.u32 %v2795_v21, %v2508_v20  ;;  %v2478_v27 = vld [vmem:[#allocation5 + $0x6c] sm:$0xf0] }
  0x12   :  { %263 = vmatpush.bf16.msra.mxu0 %v3114_v10  ;;  %288 = vmatpush.bf16.msra.mxu2 %v3119_v18  ;;  %v2496_v28 = vld [vmem:[#allocation5 + $0x80] sm:$0xf]  ;;  %v2792_v29 = vld [vmem:[#allocation5 + $0x88] sm:$0xf0]  ;;  %v3131_v30 = vor.u32 %v2788_v24, %v2476_v23  ;;  %v3134_v31 = vor.u32 %v2787_v25, %v2478_v27  ;;  %v2464_v32 = vld [vmem:[#allocation5 + $0x48] sm:$0xf] }
  0x13   :  { %276 = vmatpush.bf16.msra.mxu1 %v3117_v11  ;;  %v2785_v33 = vld [vmem:[#allocation5 + $0x50] sm:$0xf0]  ;;  %v2784_v34 = vld [vmem:[#allocation5 + $0x4c] sm:$0xf]  ;;  %v3137_v35 = vor.u32 %v2792_v29, %v2496_v28  ;;  %v2466_v36 = vld [vmem:[#allocation5 + $0x54] sm:$0xf0] }
  0x14   :  { %v2484_v37 = vld [vmem:[#allocation5 + $0x68] sm:$0xf]  ;;  %v2789_v38 = vld [vmem:[#allocation5 + $0x70] sm:$0xf0]  ;;  %v3140_v39 = vor.u32 %v2785_v33, %v2464_v32  ;;  %v2452_v40 = vld [vmem:[#allocation5 + $0x30] sm:$0xf]  ;;  %v3143_v42 = vor.u32 %v2784_v34, %v2466_v36 }
  0x15   :  { %v2782_v41 = vld [vmem:[#allocation5 + $0x38] sm:$0xf0]  ;;  %v2781_v43 = vld [vmem:[#allocation5 + $0x34] sm:$0xf]  ;;  %v3146_v44 = vor.u32 %v2789_v38, %v2484_v37  ;;  %v2454_v45 = vld [vmem:[#allocation5 + $0x3c] sm:$0xf0] }
  0x16   :  { %264 = vmatpush.bf16.msra.mxu0 %v3122_v19  ;;  %289 = vmatpush.bf16.msra.mxu2 %v3128_v26  ;;  %v2472_v46 = vld [vmem:[#allocation5 + $0x50] sm:$0xf]  ;;  %v2786_v47 = vld [vmem:[#allocation5 + $0x58] sm:$0xf0]  ;;  %v3149_v48 = vor.u32 %v2782_v41, %v2452_v40  ;;  %v3152_v49 = vor.u32 %v2781_v43, %v2454_v45  ;;  %v2440_v50 = vld [vmem:[#allocation5 + $0x18] sm:$0xf] }
  0x17   :  { %277 = vmatpush.bf16.msra.mxu1 %v3125_v22  ;;  %v2779_v51 = vld [vmem:[#allocation5 + $0x20] sm:$0xf0]  ;;  %v2778_v52 = vld [vmem:[#allocation5 + $0x1c] sm:$0xf]  ;;  %v3155_v53 = vor.u32 %v2786_v47, %v2472_v46  ;;  %v2442_v54 = vld [vmem:[#allocation5 + $0x24] sm:$0xf0] }
  0x18   :  { %v2460_v55 = vld [vmem:[#allocation5 + $0x38] sm:$0xf]  ;;  %v2783_v56 = vld [vmem:[#allocation5 + $0x40] sm:$0xf0]  ;;  %v3158_v57 = vor.u32 %v2779_v51, %v2440_v50  ;;  %v3161_v58 = vor.u32 %v2778_v52, %v2442_v54  ;;  %v2428_v59 = vld [vmem:[#allocation5] sm:$0xf] }
  0x19   :  { %v2776_v60 = vld [vmem:[#allocation5 + $0x8] sm:$0xf0]  ;;  %v2775_v61 = vld [vmem:[#allocation5 + $0x4] sm:$0xf]  ;;  %v3164_v62 = vor.u32 %v2783_v56, %v2460_v55  ;;  %v2430_v63 = vld [vmem:[#allocation5 + $0xc] sm:$0xf0] }
  0x1a   :  { %265 = vmatpush.bf16.msra.mxu0 %v3131_v30  ;;  %290 = vmatpush.bf16.msra.mxu2 %v3137_v35  ;;  %v2448_v0 = vld [vmem:[#allocation5 + $0x20] sm:$0xf]  ;;  %v2780_v1 = vld [vmem:[#allocation5 + $0x28] sm:$0xf0]  ;;  %v3167_v2 = vor.u32 %v2776_v60, %v2428_v59  ;;  %v3170_v4 = vor.u32 %v2775_v61, %v2430_v63  ;;  %v2436_v6 = vld [vmem:[#allocation5 + $0x8] sm:$0xf] }
  0x1b   :  { %278 = vmatpush.bf16.msra.mxu1 %v3134_v31  ;;  %v3173_v5 = vor.u32 %v2780_v1, %v2448_v0  ;;  %v2777_v8 = vld [vmem:[#allocation5 + $0x10] sm:$0xf0]  ;;  %v4080_v12 = vmov 0   ;;  %v2610_v13 = vld [vmem:[#allocation3 + $0xa8] sm:$0xf] }
  0x1c   :  { %v3178_v9 = vor.u32 %v2777_v8, %v2436_v6  ;;  %v2821_v14 = vld [vmem:[#allocation3 + $0xb0] sm:$0xf0]  ;;  %v2820_v15 = vld [vmem:[#allocation3 + $0xac] sm:$0xf]  ;;  %v2612_v17 = vld [vmem:[#allocation3 + $0xb4] sm:$0xf0] }
  0x1d   :  { %v3192_v16 = vor.u32 %v2821_v14, %v2610_v13  ;;  %v3194_v20 = vor.u32 %v2820_v15, %v2612_v17  ;;  %v2598_v21 = vld [vmem:[#allocation3 + $0x90] sm:$0xf]  ;;  %v2818_v23 = vld [vmem:[#allocation3 + $0x98] sm:$0xf0]  ;;  %v2817_v24 = vld [vmem:[#allocation3 + $0x94] sm:$0xf] }
  0x1e   :  { %266 = vmatpush.bf16.msra.mxu0 %v3140_v39  ;;  %291 = vmatpush.bf16.msra.mxu2 %v3146_v44  ;;  %v3199_v25 = vor.u32 %v2818_v23, %v2598_v21  ;;  %v2600_v27 = vld [vmem:[#allocation3 + $0x9c] sm:$0xf0]  ;;  %v2586_v29 = vld [vmem:[#allocation3 + $0x78] sm:$0xf]  ;;  %v2815_v32 = vld [vmem:[#allocation3 + $0x80] sm:$0xf0] }
  0x1f   :  { %279 = vmatpush.bf16.msra.mxu1 %v3143_v42  ;;  %479 = vmatpush.bf16.msra.mxu3 %v3192_v16  ;;  %v3201_v28 = vor.u32 %v2817_v24, %v2600_v27  ;;  %v2814_v33 = vld [vmem:[#allocation3 + $0x7c] sm:$0xf]  ;;  %v3206_v34 = vor.u32 %v2815_v32, %v2586_v29  ;;  %v2588_v36 = vld [vmem:[#allocation3 + $0x84] sm:$0xf0]  ;;  %v2574_v38 = vld [vmem:[#allocation3 + $0x60] sm:$0xf] }
  0x20   :  { %v3208_v37 = vor.u32 %v2814_v33, %v2588_v36  ;;  %v2812_v40 = vld [vmem:[#allocation3 + $0x68] sm:$0xf0]  ;;  %v2811_v41 = vld [vmem:[#allocation3 + $0x64] sm:$0xf]  ;;  %v2576_v45 = vld [vmem:[#allocation3 + $0x6c] sm:$0xf0] }
  0x21   :  { %v3213_v43 = vor.u32 %v2812_v40, %v2574_v38  ;;  %v2618_v46 = vld [vmem:[#allocation3 + $0xb0] sm:$0xf]  ;;  %v2822_v47 = vld [vmem:[#allocation3 + $0xb8] sm:$0xf0]  ;;  %v3215_v50 = vor.u32 %v2811_v41, %v2576_v45  ;;  %v2562_v52 = vld [vmem:[#allocation3 + $0x48] sm:$0xf] }
  0x22   :  { %267 = vmatpush.bf16.msra.mxu0 %v3149_v48  ;;  %292 = vmatpush.bf16.msra.mxu2 %v3155_v53  ;;  %v3217_v51 = vor.u32 %v2822_v47, %v2618_v46  ;;  %v2809_v54 = vld [vmem:[#allocation3 + $0x50] sm:$0xf0]  ;;  %v2808_v55 = vld [vmem:[#allocation3 + $0x4c] sm:$0xf]  ;;  %v2564_v59 = vld [vmem:[#allocation3 + $0x54] sm:$0xf0] }
  0x23   :  { %280 = vmatpush.bf16.msra.mxu1 %v3152_v49  ;;  %480 = vmatpush.bf16.msra.mxu3 %v3199_v25  ;;  %v3222_v56 = vor.u32 %v2809_v54, %v2562_v52  ;;  %v2606_v60 = vld [vmem:[#allocation3 + $0x98] sm:$0xf]  ;;  %v2819_v61 = vld [vmem:[#allocation3 + $0xa0] sm:$0xf0]  ;;  %v3225_v63 = vor.u32 %v2808_v55, %v2564_v59  ;;  %v2550_v1 = vld [vmem:[#allocation3 + $0x30] sm:$0xf] }
  0x24   :  { %v3227_v0 = vor.u32 %v2819_v61, %v2606_v60  ;;  %v2806_v6 = vld [vmem:[#allocation3 + $0x38] sm:$0xf0]  ;;  %v2805_v8 = vld [vmem:[#allocation3 + $0x34] sm:$0xf]  ;;  %v2552_v14 = vld [vmem:[#allocation3 + $0x3c] sm:$0xf0] }
  0x25   :  { %4110 = vst [vmem:[#allocation9_spill] sm:$0xff] %v3222_v56  ;;  %v3232_v13 = vor.u32 %v2806_v6, %v2550_v1  ;;  %v2594_v15 = vld [vmem:[#allocation3 + $0x80] sm:$0xf]  ;;  %v2816_v17 = vld [vmem:[#allocation3 + $0x88] sm:$0xf0]  ;;  %v3235_v21 = vor.u32 %v2805_v8, %v2552_v14 }
  0x26   :  { %268 = vmatpush.bf16.msra.mxu0 %v3158_v57  ;;  %293 = vmatpush.bf16.msra.mxu2 %v3164_v62  ;;  %4111 = vst [vmem:[#allocation10_spill] sm:$0xff] %v3225_v63  ;;  %v3237_v23 = vor.u32 %v2816_v17, %v2594_v15  ;;  %v129_v24 = vld [vmem:[%s4074_s0] sm:$0xff]  ;;  %v2538_v27 = vld [vmem:[#allocation3 + $0x18] sm:$0xf]  ;;  %v2803_v29 = vld [vmem:[#allocation3 + $0x20] sm:$0xf0] }
  0x27   :  { %281 = vmatpush.bf16.msra.mxu1 %v3161_v58  ;;  %481 = vmatpush.bf16.msra.mxu3 %v3206_v34  ;;  %4112 = vst [vmem:[#allocation11_spill] sm:$0xff] %v3232_v13  ;;  %v2802_v32 = vld [vmem:[#allocation3 + $0x1c] sm:$0xf]  ;;  %v3245_v33 = vor.u32 %v2803_v29, %v2538_v27  ;;  %v2540_v36 = vld [vmem:[#allocation3 + $0x24] sm:$0xf0]  ;;  %v131_v46 = vunpack.c.l.bf16 %v129_v24  ;;  %v132_v47 = vunpack.c.h.bf16 %v129_v24 }
  0x28   :  { %4113 = vst [vmem:[#allocation12_spill] sm:$0xff] %v3235_v21  ;;  %v2582_v38 = vld [vmem:[#allocation3 + $0x68] sm:$0xf]  ;;  %v2813_v40 = vld [vmem:[#allocation3 + $0x70] sm:$0xf0]  ;;  %v3248_v41 = vor.u32 %v2802_v32, %v2540_v36 }
  0x29   :  { %4114 = vst [vmem:[#allocation13_spill] sm:$0xff] %v3245_v33  ;;  %v3250_v45 = vor.u32 %v2813_v40, %v2582_v38  ;;  %v2526_v52 = vld [vmem:[#allocation3] sm:$0xf]  ;;  %v2800_v54 = vld [vmem:[#allocation3 + $0x8] sm:$0xf0] }
  0x2a   :  { %269 = vmatpush.bf16.msra.mxu0 %v3167_v2  ;;  %294 = vmatpush.bf16.msra.mxu2 %v3173_v5  ;;  %4115 = vst [vmem:[#allocation14_spill] sm:$0xff] %v3248_v41  ;;  %v2799_v55 = vld [vmem:[#allocation3 + $0x4] sm:$0xf]  ;;  %v3255_v59 = vor.u32 %v2800_v54, %v2526_v52  ;;  %v2528_v60 = vld [vmem:[#allocation3 + $0xc] sm:$0xf0] }
  0x2b   :  { %282 = vmatpush.bf16.msra.mxu1 %v3170_v4  ;;  %482 = vmatpush.bf16.msra.mxu3 %v3213_v43  ;;  %v2570_v61 = vld [vmem:[#allocation3 + $0x50] sm:$0xf]  ;;  %v2810_v1 = vld [vmem:[#allocation3 + $0x58] sm:$0xf0]  ;;  %v3258_v8 = vor.u32 %v2799_v55, %v2528_v60  ;;  %v2558_v29 = vld [vmem:[#allocation3 + $0x38] sm:$0xf] }
  0x2c   :  { %4116 = vst [vmem:[#allocation15_spill] sm:$0xff] %v3255_v59  ;;  %v3260_v14 = vor.u32 %v2810_v1, %v2570_v61  ;;  %v2807_v32 = vld [vmem:[#allocation3 + $0x40] sm:$0xf0]  ;;  %v2546_v40 = vld [vmem:[#allocation3 + $0x20] sm:$0xf] }
  0x2d   :  { %270 = vmatmul.bf16.vlgmr.msra.gmra.mxu0 %v4080_v12  ;;  %4117 = vst [vmem:[#allocation16_spill] sm:$0xff] %v3258_v8  ;;  %v3267_v38 = vor.u32 %v2807_v32, %v2558_v29  ;;  %v2534_v61 = vld [vmem:[#allocation3 + $0x8] sm:$0xf]  ;;  %v2801_v1 = vld [vmem:[#allocation3 + $0x10] sm:$0xf0] }
  0x2e   :  { %283 = vmatmul.bf16.vlgmr.msra.gmra.mxu1 %v4080_v12  ;;  %295 = vmatpush.bf16.msra.mxu2 %v3178_v9 }
  0x2f   :  { %492 = vmatpush.bf16.msrb.mxu0 %v3194_v20  ;;  %505 = vmatpush.bf16.msrb.mxu1 %v3217_v51 }
  0x30   :  { %483 = vmatpush.bf16.msra.mxu3 %v3222_v56 }
  0x31   :  { %296 = vmatmul.bf16.vlgmr.msra.gmra.mxu2 %v4080_v12 }
  0x32   :  { %528 = vmatpush.bf16.msrb.mxu2 %v3109_v3 }
  0x33   :  { %493 = vmatpush.bf16.msrb.mxu0 %v3201_v28  ;;  %506 = vmatpush.bf16.msrb.mxu1 %v3227_v0 }
  0x34   :  { %484 = vmatpush.bf16.msra.mxu3 %v3232_v13 }
  0x36   :  { %529 = vmatpush.bf16.msrb.mxu2 %v3114_v10 }
  0x37   :  { %494 = vmatpush.bf16.msrb.mxu0 %v3208_v37  ;;  %507 = vmatpush.bf16.msrb.mxu1 %v3237_v23 }
  0x38   :  { %485 = vmatpush.bf16.msra.mxu3 %v3245_v33 }
  0x3a   :  { %530 = vmatpush.bf16.msrb.mxu2 %v3122_v19 }
  0x3b   :  { %495 = vmatpush.bf16.msrb.mxu0 %v3215_v50  ;;  %508 = vmatpush.bf16.msrb.mxu1 %v3250_v45 }
  0x3c   :  { %486 = vmatpush.bf16.msra.mxu3 %v3255_v59 }
  0x3e   :  { %531 = vmatpush.bf16.msrb.mxu2 %v3131_v30 }
  0x3f   :  { %496 = vmatpush.bf16.msrb.mxu0 %v3225_v63  ;;  %509 = vmatpush.bf16.msrb.mxu1 %v3260_v14 }
  0x40   :  { %541 = vmatpush.bf16.msrb.mxu3 %v3111_v7 }
  0x42   :  { %532 = vmatpush.bf16.msrb.mxu2 %v3140_v39 }
  0x43   :  { %497 = vmatpush.bf16.msrb.mxu0 %v3235_v21  ;;  %510 = vmatpush.bf16.msrb.mxu1 %v3267_v38 }
  0x44   :  { %542 = vmatpush.bf16.msrb.mxu3 %v3117_v11 }
  0x46   :  { %533 = vmatpush.bf16.msrb.mxu2 %v3149_v48 }
  0x47   :  { %498 = vmatpush.bf16.msrb.mxu0 %v3248_v41 }
  0x48   :  { %543 = vmatpush.bf16.msrb.mxu3 %v3125_v22 }
  0x4a   :  { %534 = vmatpush.bf16.msrb.mxu2 %v3158_v57 }
  0x4b   :  { %499 = vmatpush.bf16.msrb.mxu0 %v3258_v8 }
  0x4c   :  { %544 = vmatpush.bf16.msrb.mxu3 %v3134_v31 }
  0x4e   :  { %535 = vmatpush.bf16.msrb.mxu2 %v3167_v2 }
  0x4f   :  { %554 = vmatpush.bf16.msra.mxu0 %v3119_v18 }
  0x50   :  { %545 = vmatpush.bf16.msrb.mxu3 %v3143_v42 }
  0x52   :  { %631 = vmatpush.bf16.msra.mxu2 %v3194_v20 }
  0x53   :  { %555 = vmatpush.bf16.msra.mxu0 %v3128_v26 }
  0x54   :  { %546 = vmatpush.bf16.msrb.mxu3 %v3152_v49 }
  0x56   :  { %632 = vmatpush.bf16.msra.mxu2 %v3201_v28 }
  0x57   :  { %556 = vmatpush.bf16.msra.mxu0 %v3137_v35 }
  0x58   :  { %547 = vmatpush.bf16.msrb.mxu3 %v3161_v58 }
  0x5a   :  { %633 = vmatpush.bf16.msra.mxu2 %v3208_v37 }
  0x5b   :  { %557 = vmatpush.bf16.msra.mxu0 %v3146_v44 }
  0x5c   :  { %548 = vmatpush.bf16.msrb.mxu3 %v3170_v4 }
  0x5e   :  { %634 = vmatpush.bf16.msra.mxu2 %v3215_v50 }
  0x5f   :  { %558 = vmatpush.bf16.msra.mxu0 %v3155_v53 }
  0x62   :  { %635 = vmatpush.bf16.msra.mxu2 %v3225_v63 }
  0x63   :  { %559 = vmatpush.bf16.msra.mxu0 %v3164_v62 }
  0x66   :  { %636 = vmatpush.bf16.msra.mxu2 %v3235_v21 }
  0x67   :  { %560 = vmatpush.bf16.msra.mxu0 %v3173_v5 }
  0x6a   :  { %637 = vmatpush.bf16.msra.mxu2 %v3248_v41 }
  0x6b   :  { %561 = vmatpush.bf16.msra.mxu0 %v3178_v9 }
  0x6e   :  { %638 = vmatpush.bf16.msra.mxu2 %v3258_v8 }
  0xaa   :  { %v271_v6 = vpop.f32.mrf.mxu0 }
  0xab   :  { %v301_v15 = vadd.f32 %v271_v6, %v131_v46  ;;  %v284_v17 = vpop.f32.mrf.mxu1  ;;  %v2804_v46 = vld [vmem:[#allocation3 + $0x28] sm:$0xf0] }
  0xac   :  { %v321_v24 = vadd.f32 %v284_v17, %v132_v47  ;;  %v3273_v52 = vor.u32 %v2804_v46, %v2546_v40  ;;  %v3278_v17 = vor.u32 %v2801_v1, %v2534_v61  ;;  %v3290_v46 = vld [vmem:[%s4078_s4] ss:$0 sm:$0xff] }
  0xad   :  { %v2522_v27 = vmul.f32 -1.442695, %v301_v15  ;;  %4118 = vst [vmem:[#allocation17_spill] sm:$0xff] %v3290_v46 }
  0xae   :  { %v2523_v36 = vmul.f32 -1.442695, %v321_v24  ;;  %511 = vmatpush.bf16.msrb.mxu1 %v3273_v52 }
  0xaf   :  { %2854 = vpow2.f32 %v2522_v27 }
  0xb0   :  { %2856 = vpow2.f32 %v2523_v36 }
  0xb2   :  { %v273_v47 = vpop.f32.mrf.mxu0  ;;  %512 = vmatpush.bf16.msrb.mxu1 %v3278_v17 }
  0xb3   :  { %v286_v54 = vpop.f32.mrf.mxu1 }
  0xb4   :  { %v297_v60 = vpop.f32.mrf.mxu2 }
  0xb5   :  { %v2855_v55 = vpop.eup %2854 }
  0xb6   :  { %v2857_v6 = vpop.eup %2856  ;;  %v305_v15 = vadd.f32 1.0, %v2855_v55  ;;  %618 = vmatpush.bf16.msra.mxu1 %v3192_v16 }
  0xb7   :  { %v325_v24 = vadd.f32 1.0, %v2857_v6 }
  0xb8   :  { %2858 = vrcp.f32 %v305_v15  ;;  %v317_v55 = vand.u32 2147483648, %v305_v15  ;;  %v315_v1 = vand.u32 2147483647, %v305_v15  ;;  %vm311_vm1 = vweird.f32 %v305_v15 }
  0xb9   :  { %2860 = vrcp.f32 %v325_v24  ;;  %vm331_vm4 = vweird.f32 %v325_v24  ;;  %v337_v21 = vand.u32 2147483648, %v325_v24 }
  0xba   :  { %619 = vmatpush.bf16.msra.mxu1 %v3199_v25  ;;  %vm316_vm3 = vcmp.eq.f32.partialorder %v315_v1, 8.507059e+37 }
  0xbc   :  { %v299_v27 = vpop.f32.mrf.mxu2 }
  0xbd   :  { %v130_v27 = vld [vmem:[%s4074_s0 + $0x8] sm:$0xf] }
  0xbe   :  { %v2859_v29 = vpop.eup %2858  ;;  %620 = vmatpush.bf16.msra.mxu1 %v3206_v34 }
  0xbf   :  { %v2861_v32 = vpop.eup %2860  ;;  %v307_v36 = vmul.f32 %v2859_v29, %v305_v15  ;;  %vm312_vm0 = vweird.f32 %v2859_v29 }
  0xc0   :  { %v327_v40 = vmul.f32 %v2861_v32, %v325_v24  ;;  %vm313_vm2 = vmor %vm311_vm1, %vm312_vm0  ;;  %vm332_vm5 = vweird.f32 %v2861_v32 }
  0xc1   :  { %v308_v47 = vsub.f32 1.0, %v307_v36  ;;  %v341_v36 = vadd.f32 %v3290_v46, %v297_v60  ;;  %v335_v60 = vand.u32 2147483647, %v325_v24  ;;  %vm333_vm6 = vmor %vm331_vm4, %vm332_vm5  ;;  %v338_v46 = vor.u32 1.1754944e-38, %v337_v21  ;;  %v4119_v21 = vld [vmem:[#allocation12_spill] sm:$0xff] }
  0xc2   :  { %v328_v54 = vsub.f32 1.0, %v327_v40  ;;  %v318_v40 = vor.u32 1.1754944e-38, %v317_v55  ;;  %621 = vmatpush.bf16.msra.mxu1 %v3213_v43 }
  0xc3   :  { %v309_v61 = vmul.f32 %v2859_v29, %v308_v47  ;;  %v133_v47 = vunpack.c.l.bf16 %v130_v27  ;;  %vm336_vm7 = vcmp.eq.f32.partialorder %v335_v60, 8.507059e+37  ;;  %v121_v27 = vld [vmem:[%s4077_s3] sm:$0x7] }
  0xc4   :  { %v329_v6 = vmul.f32 %v2861_v32, %v328_v54  ;;  %v3372_v60 = vperm.slane %v121_v27, 1 }
  0xc5   :  { %v310_v12 = vadd.f32 %v2859_v29, %v309_v61 }
  0xc6   :  { %v330_v54 = vadd.f32 %v2861_v32, %v329_v6  ;;  %622 = vmatpush.bf16.msra.mxu1 %v3222_v56  ;;  %4123 = vst [vmem:[#allocation19_spill] sm:$0xff] %v3372_v60 }
  0xc7   :  { %v314_v8 = vsel %vm313_vm2, %v2859_v29, %v310_v12 }
  0xc8   :  { %v319_v41 = vsel %vm316_vm3, %v318_v40, %v314_v8  ;;  %v334_v55 = vsel %vm333_vm6, %v2861_v32, %v330_v54  ;;  %v4120_v32 = vld [vmem:[#allocation14_spill] sm:$0xff]  ;;  %v2620_v54 = vld [vmem:[%s4074_s0 + $0xc] sm:$0xff] }
  0xc9   :  { %v342_v61 = vmul.f32 %v341_v36, %v319_v41  ;;  %v339_v12 = vsel %vm336_vm7, %v338_v46, %v334_v55  ;;  %v4121_v46 = vld [vmem:[#allocation16_spill] sm:$0xff]  ;;  %v3366_v36 = vperm.slane %v121_v27, 2 }
  0xca   :  { %623 = vmatpush.bf16.msra.mxu1 %v3232_v13  ;;  %v345_v29 = vsub.f32 1.0, %v339_v12  ;;  %v347_v1 = vmul.f32 0.0, %v339_v12  ;;  %v525_v12 = vunpack.c.l.bf16 %v2620_v54 }
  0xcb   :  { %v343_v15 = vadd.f32 %v342_v61, %v133_v47  ;;  %4122 = vst [vmem:[#allocation18_spill] sm:$0xff] %v3366_v36 }
  0xcd   :  { %2862 = vtanh.f32 %v343_v15  ;;  %v3374_v15 = vperm.slane %v121_v27, 0 }
  0xce   :  { %624 = vmatpush.bf16.msra.mxu1 %v3245_v33 }
  0xcf   :  { %4124 = vst [vmem:[#allocation20_spill] sm:$0xff] %v3374_v15 }
  0xd2   :  { %625 = vmatpush.bf16.msra.mxu1 %v3255_v59 }
  0xd3   :  { %v2863_v41 = vpop.eup %2862 }
  0xd4   :  { %v346_v8 = vmul.f32 %v2863_v41, %v345_v29 }
  0xd6   :  { %v3307_v6 = vadd.f32 %v347_v1, %v346_v8 }
  0xd8   :  { %v349_v24 = vpack.c.bf16 %v3307_v6, %v3307_v6 }
  0xda   :  { %350 = vst [vmem:[%s4079_s5] sm:$0xf] %v349_v24  ;;  %487 = vmatmul.bf16.vlgmr.msra.gmra.mxu3 %v349_v24  ;;  %500 = vmatmul.bf16.vlgmr.msrb.gmra.mxu0 %v349_v24 }
  0xdb   :  { %513 = vmatmul.bf16.vlgmr.msrb.gmra.mxu1 %v349_v24  ;;  %536 = vmatmul.bf16.vlgmr.msrb.gmra.mxu2 %v349_v24 }
  0xdc   :  { %644 = vmatpush.bf16.msra.mxu3 %v3217_v51  ;;  %668 = vmatpush.bf16.msrb.mxu0 %v3109_v3 }
  0xdd   :  { %681 = vmatpush.bf16.msrb.mxu1 %v3111_v7  ;;  %694 = vmatpush.bf16.msrb.mxu2 %v3119_v18 }
  0xe0   :  { %645 = vmatpush.bf16.msra.mxu3 %v3227_v0  ;;  %669 = vmatpush.bf16.msrb.mxu0 %v3114_v10 }
  0xe1   :  { %682 = vmatpush.bf16.msrb.mxu1 %v3117_v11  ;;  %695 = vmatpush.bf16.msrb.mxu2 %v3128_v26 }
  0xe4   :  { %646 = vmatpush.bf16.msra.mxu3 %v3237_v23  ;;  %670 = vmatpush.bf16.msrb.mxu0 %v3122_v19 }
  0xe5   :  { %683 = vmatpush.bf16.msrb.mxu1 %v3125_v22  ;;  %696 = vmatpush.bf16.msrb.mxu2 %v3137_v35 }
  0xe8   :  { %647 = vmatpush.bf16.msra.mxu3 %v3250_v45  ;;  %671 = vmatpush.bf16.msrb.mxu0 %v3131_v30 }
  0xe9   :  { %684 = vmatpush.bf16.msrb.mxu1 %v3134_v31  ;;  %697 = vmatpush.bf16.msrb.mxu2 %v3146_v44 }
  0xea   :  { %549 = vmatmul.bf16.vlgmr.msrb.gmra.mxu3 %v349_v24  ;;  %562 = vmatmul.bf16.vlgmr.msra.gmra.mxu0 %v349_v24 }
  0xec   :  { %648 = vmatpush.bf16.msra.mxu3 %v3260_v14  ;;  %672 = vmatpush.bf16.msrb.mxu0 %v3140_v39 }
  0xed   :  { %685 = vmatpush.bf16.msrb.mxu1 %v3143_v42  ;;  %698 = vmatpush.bf16.msrb.mxu2 %v3155_v53 }
  0xf0   :  { %649 = vmatpush.bf16.msra.mxu3 %v3267_v38  ;;  %673 = vmatpush.bf16.msrb.mxu0 %v3149_v48 }
  0xf1   :  { %686 = vmatpush.bf16.msrb.mxu1 %v3152_v49  ;;  %699 = vmatpush.bf16.msrb.mxu2 %v3164_v62 }
  0xf4   :  { %650 = vmatpush.bf16.msra.mxu3 %v3273_v52  ;;  %674 = vmatpush.bf16.msrb.mxu0 %v3158_v57 }
  0xf5   :  { %687 = vmatpush.bf16.msrb.mxu1 %v3161_v58  ;;  %700 = vmatpush.bf16.msrb.mxu2 %v3173_v5 }
  0xf8   :  { %651 = vmatpush.bf16.msra.mxu3 %v3278_v17  ;;  %675 = vmatpush.bf16.msrb.mxu0 %v3167_v2 }
  0xf9   :  { %688 = vmatpush.bf16.msrb.mxu1 %v3170_v4  ;;  %701 = vmatpush.bf16.msrb.mxu2 %v3178_v9 }
  0xfc   :  { %758 = vmatpush.bf16.msrb.mxu3 %v3192_v16  ;;  %771 = vmatpush.bf16.msra.mxu0 %v3194_v20 }
 0x100   :  { %759 = vmatpush.bf16.msrb.mxu3 %v3199_v25  ;;  %772 = vmatpush.bf16.msra.mxu0 %v3201_v28 }
 0x104   :  { %760 = vmatpush.bf16.msrb.mxu3 %v3206_v34  ;;  %773 = vmatpush.bf16.msra.mxu0 %v3208_v37 }
 0x108   :  { %761 = vmatpush.bf16.msrb.mxu3 %v3213_v43  ;;  %774 = vmatpush.bf16.msra.mxu0 %v3215_v50 }
 0x10c   :  { %762 = vmatpush.bf16.msrb.mxu3 %v3222_v56  ;;  %775 = vmatpush.bf16.msra.mxu0 %v3225_v63 }
 0x110   :  { %763 = vmatpush.bf16.msrb.mxu3 %v3232_v13  ;;  %776 = vmatpush.bf16.msra.mxu0 %v4119_v21  ;;  %v526_v13 = vunpack.c.h.bf16 %v2620_v54 }
 0x114   :  { %764 = vmatpush.bf16.msrb.mxu3 %v3245_v33  ;;  %777 = vmatpush.bf16.msra.mxu0 %v4120_v32 }
 0x118   :  { %765 = vmatpush.bf16.msrb.mxu3 %v3255_v59  ;;  %778 = vmatpush.bf16.msra.mxu0 %v4121_v46 }
 0x157   :  { %v501_v40 = vpop.f32.mrf.mxu0 }
 0x158   :  { %v514_v47 = vpop.f32.mrf.mxu1  ;;  %v502_v41 = vadd.f32 %v501_v40, %v3372_v60 }
 0x159   :  { %v515_v61 = vadd.f32 %v514_v47, %v3366_v36 }
 0x15b   :  { %v519_v55 = vpack.c.bf16 %v515_v61, %v515_v61 }
 0x15d   :  { %521 = vst [vmem:[#allocation2 + $0x8] sm:$0xf] %v519_v55  ;;  %v488_v29 = vpop.f32.mrf.mxu3 }
 0x15e   :  { %v489_v8 = vadd.f32 %v488_v29, %v3374_v15  ;;  %v537_v1 = vpop.f32.mrf.mxu2 }
 0x15f   :  { %v567_v24 = vadd.f32 %v537_v1, %v525_v12  ;;  %v503_v46 = vpop.f32.mrf.mxu0 }
 0x160   :  { %v518_v59 = vpack.c.bf16 %v502_v41, %v489_v8  ;;  %v516_v32 = vpop.f32.mrf.mxu1 }
 0x161   :  { %v2622_v33 = vmul.f32 -1.442695, %v567_v24 }
 0x162   :  { %520 = vst [vmem:[#allocation2] sm:$0xff] %v518_v59 }
 0x163   :  { %2864 = vpow2.f32 %v2622_v33 }
 0x165   :  { %v490_v47 = vpop.f32.mrf.mxu3 }
 0x166   :  { %v539_v36 = vpop.f32.mrf.mxu2 }
 0x167   :  { %v563_v27 = vpop.f32.mrf.mxu0 }
 0x169   :  { %v2865_v21 = vpop.eup %2864 }
 0x16a   :  { %v571_v61 = vadd.f32 1.0, %v2865_v21 }
 0x16c   :  { %2866 = vrcp.f32 %v571_v61  ;;  %v583_v32 = vand.u32 2147483648, %v571_v61  ;;  %v581_v33 = vand.u32 2147483647, %v571_v61  ;;  %vm577_vm9 = vweird.f32 %v571_v61 }
 0x16d   :  { %v550_v55 = vpop.f32.mrf.mxu3 }
 0x16e   :  { %v587_v63 = vadd.f32 %v550_v55, %v526_v13  ;;  %v584_v21 = vor.u32 1.1754944e-38, %v583_v32  ;;  %vm582_vm11 = vcmp.eq.f32.partialorder %v581_v33, 8.507059e+37 }
 0x16f   :  { %v565_v40 = vpop.f32.mrf.mxu0 }
 0x170   :  { %v2623_v60 = vmul.f32 -1.442695, %v587_v63  ;;  %v2621_v63 = vld [vmem:[%s4074_s0 + $0x14] sm:$0xf] }
 0x171   :  { %v527_v47 = vunpack.c.l.bf16 %v2621_v63 }
 0x172   :  { %v2867_v29 = vpop.eup %2866  ;;  %2868 = vpow2.f32 %v2623_v60  ;;  %v4125_v60 = vld [vmem:[#allocation17_spill] sm:$0xff] }
 0x173   :  { %v573_v12 = vmul.f32 %v2867_v29, %v571_v61  ;;  %vm578_vm8 = vweird.f32 %v2867_v29  ;;  %v607_v24 = vadd.f32 %v4125_v60, %v563_v27 }
 0x174   :  { %vm579_vm10 = vmor %vm577_vm9, %vm578_vm8 }
 0x175   :  { %v574_v46 = vsub.f32 1.0, %v573_v12  ;;  %v552_v41 = vpop.f32.mrf.mxu3 }
 0x177   :  { %v575_v8 = vmul.f32 %v2867_v29, %v574_v46 }
 0x178   :  { %v2869_v59 = vpop.eup %2868 }
 0x179   :  { %v576_v36 = vadd.f32 %v2867_v29, %v575_v8  ;;  %v591_v1 = vadd.f32 1.0, %v2869_v59 }
 0x17b   :  { %v580_v54 = vsel %vm579_vm10, %v2867_v29, %v576_v36  ;;  %2870 = vrcp.f32 %v591_v1  ;;  %v603_v61 = vand.u32 2147483648, %v591_v1  ;;  %v601_v32 = vand.u32 2147483647, %v591_v1 }
 0x17c   :  { %v585_v13 = vsel %vm582_vm11, %v584_v21, %v580_v54  ;;  %vm597_vm13 = vweird.f32 %v591_v1 }
 0x17d   :  { %v608_v55 = vmul.f32 %v607_v24, %v585_v13  ;;  %v604_v33 = vor.u32 1.1754944e-38, %v603_v61  ;;  %vm602_vm15 = vcmp.eq.f32.partialorder %v601_v32, 8.507059e+37 }
 0x17f   :  { %v609_v46 = vadd.f32 %v608_v55, %v527_v47  ;;  %v4128_v47 = vld [vmem:[#allocation12_spill] sm:$0xff]  ;;  %v4129_v55 = vld [vmem:[#allocation13_spill] sm:$0xff] }
 0x181   :  { %v2871_v40 = vpop.eup %2870  ;;  %2872 = vtanh.f32 %v609_v46  ;;  %v4132_v46 = vld [vmem:[#allocation16_spill] sm:$0xff] }
 0x182   :  { %v593_v12 = vmul.f32 %v2871_v40, %v591_v1  ;;  %vm598_vm12 = vweird.f32 %v2871_v40  ;;  %v4127_v1 = vld [vmem:[#allocation11_spill] sm:$0xff] }
 0x183   :  { %vm599_vm14 = vmor %vm597_vm13, %vm598_vm12 }
 0x184   :  { %v594_v41 = vsub.f32 1.0, %v593_v12  ;;  %v4131_v12 = vld [vmem:[#allocation15_spill] sm:$0xff] }
 0x186   :  { %v595_v8 = vmul.f32 %v2871_v40, %v594_v41  ;;  %v2625_v41 = vld [vmem:[%s4074_s0 + $0x18] sm:$0xff] }
 0x187   :  { %v2873_v27 = vpop.eup %2872  ;;  %v665_v61 = vunpack.c.l.bf16 %v2625_v41 }
 0x188   :  { %v596_v29 = vadd.f32 %v2871_v40, %v595_v8 }
 0x18a   :  { %v600_v59 = vsel %vm599_vm14, %v2871_v40, %v596_v29  ;;  %v4130_v40 = vld [vmem:[#allocation14_spill] sm:$0xff] }
 0x18b   :  { %v605_v36 = vsel %vm602_vm15, %v604_v33, %v600_v59 }
 0x18c   :  { %v611_v21 = vsub.f32 1.0, %v605_v36  ;;  %v613_v63 = vmul.f32 %v605_v36, %v3307_v6  ;;  %v4126_v6 = vld [vmem:[#allocation10_spill] sm:$0xff] }
 0x18e   :  { %v612_v54 = vmul.f32 %v2873_v27, %v611_v21  ;;  %v4133_v21 = vld [vmem:[#allocation19_spill] sm:$0xff] }
 0x190   :  { %v3383_v13 = vadd.f32 %v613_v63, %v612_v54  ;;  %v4134_v63 = vld [vmem:[#allocation18_spill] sm:$0xff] }
 0x192   :  { %v615_v24 = vpack.c.bf16 %v3383_v13, %v3383_v13 }
 0x194   :  { %2624 = vst [vmem:[%s4079_s5 + $0x4] sm:$0xf] %v615_v24  ;;  %626 = vmatmul.bf16.vlgmr.msra.gmra.mxu1 %v615_v24  ;;  %639 = vmatmul.bf16.vlgmr.msra.gmra.mxu2 %v615_v24 }
 0x195   :  { %652 = vmatmul.bf16.vlgmr.msra.gmra.mxu3 %v615_v24  ;;  %676 = vmatmul.bf16.vlgmr.msrb.gmra.mxu0 %v615_v24 }
 0x196   :  { %784 = vmatpush.bf16.msra.mxu1 %v3217_v51  ;;  %808 = vmatpush.bf16.msra.mxu2 %v3109_v3 }
 0x197   :  { %821 = vmatpush.bf16.msra.mxu3 %v3111_v7  ;;  %834 = vmatpush.bf16.msrb.mxu0 %v3119_v18 }
 0x19a   :  { %785 = vmatpush.bf16.msra.mxu1 %v3227_v0  ;;  %809 = vmatpush.bf16.msra.mxu2 %v3114_v10 }
 0x19b   :  { %822 = vmatpush.bf16.msra.mxu3 %v3117_v11  ;;  %835 = vmatpush.bf16.msrb.mxu0 %v3128_v26 }
 0x19e   :  { %786 = vmatpush.bf16.msra.mxu1 %v3237_v23  ;;  %810 = vmatpush.bf16.msra.mxu2 %v3122_v19 }
 0x19f   :  { %823 = vmatpush.bf16.msra.mxu3 %v3125_v22  ;;  %836 = vmatpush.bf16.msrb.mxu0 %v3137_v35 }
 0x1a2   :  { %787 = vmatpush.bf16.msra.mxu1 %v3250_v45  ;;  %811 = vmatpush.bf16.msra.mxu2 %v3131_v30 }
 0x1a3   :  { %824 = vmatpush.bf16.msra.mxu3 %v3134_v31  ;;  %837 = vmatpush.bf16.msrb.mxu0 %v3146_v44 }
 0x1a4   :  { %689 = vmatmul.bf16.vlgmr.msrb.gmra.mxu1 %v615_v24  ;;  %702 = vmatmul.bf16.vlgmr.msrb.gmra.mxu2 %v615_v24 }
 0x1a6   :  { %788 = vmatpush.bf16.msra.mxu1 %v3260_v14  ;;  %812 = vmatpush.bf16.msra.mxu2 %v3140_v39 }
 0x1a7   :  { %825 = vmatpush.bf16.msra.mxu3 %v3143_v42  ;;  %838 = vmatpush.bf16.msrb.mxu0 %v3155_v53 }
 0x1aa   :  { %789 = vmatpush.bf16.msra.mxu1 %v3267_v38  ;;  %813 = vmatpush.bf16.msra.mxu2 %v3149_v48 }
 0x1ab   :  { %826 = vmatpush.bf16.msra.mxu3 %v3152_v49  ;;  %839 = vmatpush.bf16.msrb.mxu0 %v3164_v62 }
 0x1ae   :  { %790 = vmatpush.bf16.msra.mxu1 %v3273_v52  ;;  %814 = vmatpush.bf16.msra.mxu2 %v3158_v57 }
 0x1af   :  { %827 = vmatpush.bf16.msra.mxu3 %v3161_v58  ;;  %840 = vmatpush.bf16.msrb.mxu0 %v3173_v5 }
 0x1b2   :  { %791 = vmatpush.bf16.msra.mxu1 %v3278_v17  ;;  %815 = vmatpush.bf16.msra.mxu2 %v3167_v2 }
 0x1b3   :  { %828 = vmatpush.bf16.msra.mxu3 %v3170_v4  ;;  %841 = vmatpush.bf16.msrb.mxu0 %v3178_v9 }
 0x1b6   :  { %898 = vmatpush.bf16.msrb.mxu1 %v3192_v16  ;;  %911 = vmatpush.bf16.msrb.mxu2 %v3194_v20 }
 0x1ba   :  { %899 = vmatpush.bf16.msrb.mxu1 %v3199_v25  ;;  %912 = vmatpush.bf16.msrb.mxu2 %v3201_v28 }
 0x1be   :  { %900 = vmatpush.bf16.msrb.mxu1 %v3206_v34  ;;  %913 = vmatpush.bf16.msrb.mxu2 %v3208_v37 }
 0x1c2   :  { %901 = vmatpush.bf16.msrb.mxu1 %v3213_v43  ;;  %914 = vmatpush.bf16.msrb.mxu2 %v3215_v50 }
 0x1c6   :  { %902 = vmatpush.bf16.msrb.mxu1 %v3222_v56  ;;  %915 = vmatpush.bf16.msrb.mxu2 %v4126_v6  ;;  %v666_v6 = vunpack.c.h.bf16 %v2625_v41 }
 0x1ca   :  { %903 = vmatpush.bf16.msrb.mxu1 %v4127_v1  ;;  %916 = vmatpush.bf16.msrb.mxu2 %v4128_v47 }
 0x1ce   :  { %904 = vmatpush.bf16.msrb.mxu1 %v4129_v55  ;;  %917 = vmatpush.bf16.msrb.mxu2 %v4130_v40 }
 0x1d2   :  { %905 = vmatpush.bf16.msrb.mxu1 %v4131_v12  ;;  %918 = vmatpush.bf16.msrb.mxu2 %v4132_v46 }
 0x211   :  { %v627_v8 = vpop.f32.mrf.mxu1 }
 0x212   :  { %v677_v32 = vpop.f32.mrf.mxu0  ;;  %v628_v36 = vadd.f32 %v627_v8, %v3374_v15 }
 0x213   :  { %v707_v29 = vadd.f32 %v677_v32, %v665_v61 }
 0x215   :  { %v2627_v33 = vmul.f32 -1.442695, %v707_v29 }
 0x217   :  { %2874 = vpow2.f32 %v2627_v33  ;;  %v640_v59 = vpop.f32.mrf.mxu2 }
 0x218   :  { %v641_v27 = vadd.f32 %v640_v59, %v4133_v21  ;;  %v653_v54 = vpop.f32.mrf.mxu3 }
 0x219   :  { %v654_v24 = vadd.f32 %v653_v54, %v4134_v63  ;;  %v629_v12 = vpop.f32.mrf.mxu1 }
 0x21a   :  { %v657_v46 = vpack.c.bf16 %v641_v27, %v628_v36  ;;  %v679_v40 = vpop.f32.mrf.mxu0 }
 0x21b   :  { %v658_v55 = vpack.c.bf16 %v654_v24, %v654_v24 }
 0x21c   :  { %660 = vst [vmem:[#allocation2 + $0xc] sm:$0xff] %v657_v46 }
 0x21d   :  { %v2875_v47 = vpop.eup %2874  ;;  %661 = vst [vmem:[#allocation2 + $0x14] sm:$0xf] %v658_v55 }
 0x21e   :  { %v711_v1 = vadd.f32 1.0, %v2875_v47 }
 0x21f   :  { %v642_v61 = vpop.f32.mrf.mxu2 }
 0x220   :  { %2876 = vrcp.f32 %v711_v1  ;;  %v655_v32 = vpop.f32.mrf.mxu3  ;;  %v723_v40 = vand.u32 2147483648, %v711_v1  ;;  %v721_v46 = vand.u32 2147483647, %v711_v1  ;;  %vm717_vm1 = vweird.f32 %v711_v1 }
 0x221   :  { %v690_v29 = vpop.f32.mrf.mxu1 }
 0x222   :  { %v727_v33 = vadd.f32 %v690_v29, %v666_v6  ;;  %v724_v41 = vor.u32 1.1754944e-38, %v723_v40  ;;  %v2626_v6 = vld [vmem:[%s4074_s0 + $0x20] sm:$0xf]  ;;  %vm722_vm3 = vcmp.eq.f32.partialorder %v721_v46, 8.507059e+37 }
 0x223   :  { %v667_v29 = vunpack.c.l.bf16 %v2626_v6 }
 0x224   :  { %v2628_v8 = vmul.f32 -1.442695, %v727_v33 }
 0x226   :  { %v2877_v15 = vpop.eup %2876  ;;  %2878 = vpow2.f32 %v2628_v8 }
 0x227   :  { %v703_v59 = vpop.f32.mrf.mxu2  ;;  %v713_v21 = vmul.f32 %v2877_v15, %v711_v1  ;;  %vm718_vm0 = vweird.f32 %v2877_v15 }
 0x228   :  { %vm719_vm2 = vmor %vm717_vm1, %vm718_vm0  ;;  %v747_v32 = vadd.f32 %v4125_v60, %v703_v59 }
 0x229   :  { %v714_v54 = vsub.f32 1.0, %v713_v21  ;;  %v692_v12 = vpop.f32.mrf.mxu1 }
 0x22b   :  { %v715_v36 = vmul.f32 %v2877_v15, %v714_v54 }
 0x22c   :  { %v2879_v27 = vpop.eup %2878 }
 0x22d   :  { %v731_v55 = vadd.f32 1.0, %v2879_v27  ;;  %v716_v47 = vadd.f32 %v2877_v15, %v715_v36 }
 0x22f   :  { %2880 = vrcp.f32 %v731_v55  ;;  %v705_v24 = vpop.f32.mrf.mxu2  ;;  %v720_v61 = vsel %vm719_vm2, %v2877_v15, %v716_v47  ;;  %v743_v1 = vand.u32 2147483648, %v731_v55  ;;  %v741_v40 = vand.u32 2147483647, %v731_v55 }
 0x230   :  { %v725_v21 = vsel %vm722_vm3, %v724_v41, %v720_v61  ;;  %vm737_vm5 = vweird.f32 %v731_v55 }
 0x231   :  { %v748_v33 = vmul.f32 %v747_v32, %v725_v21  ;;  %v744_v63 = vor.u32 1.1754944e-38, %v743_v1  ;;  %vm742_vm7 = vcmp.eq.f32.partialorder %v741_v40, 8.507059e+37  ;;  %v4138_v32 = vld [vmem:[#allocation13_spill] sm:$0xff]  ;;  %v4142_v1 = vld [vmem:[#allocation18_spill] sm:$0xff] }
 0x233   :  { %v749_v12 = vadd.f32 %v748_v33, %v667_v29  ;;  %v4139_v29 = vld [vmem:[#allocation14_spill] sm:$0xff]  ;;  %v4140_v33 = vld [vmem:[#allocation15_spill] sm:$0xff] }
 0x235   :  { %v2881_v8 = vpop.eup %2880  ;;  %2882 = vtanh.f32 %v749_v12 }
 0x236   :  { %v733_v54 = vmul.f32 %v2881_v8, %v731_v55  ;;  %vm738_vm4 = vweird.f32 %v2881_v8  ;;  %v4137_v55 = vld [vmem:[#allocation12_spill] sm:$0xff] }
 0x237   :  { %vm739_vm6 = vmor %vm737_vm5, %vm738_vm4 }
 0x238   :  { %v734_v36 = vsub.f32 1.0, %v733_v54 }
 0x23a   :  { %v735_v27 = vmul.f32 %v2881_v8, %v734_v36  ;;  %v2630_v36 = vld [vmem:[%s4074_s0 + $0x24] sm:$0xff] }
 0x23b   :  { %v2883_v59 = vpop.eup %2882 }
 0x23c   :  { %v736_v24 = vadd.f32 %v2881_v8, %v735_v27 }
 0x23e   :  { %v740_v15 = vsel %vm739_vm6, %v2881_v8, %v736_v24  ;;  %v4141_v8 = vld [vmem:[#allocation16_spill] sm:$0xff]  ;;  %v805_v24 = vunpack.c.l.bf16 %v2630_v36 }
 0x23f   :  { %v745_v46 = vsel %vm742_vm7, %v744_v63, %v740_v15  ;;  %v4136_v63 = vld [vmem:[#allocation11_spill] sm:$0xff] }
 0x240   :  { %v751_v47 = vsub.f32 1.0, %v745_v46  ;;  %v753_v6 = vmul.f32 %v745_v46, %v3383_v13  ;;  %v4135_v13 = vld [vmem:[#allocation10_spill] sm:$0xff]  ;;  %v4143_v46 = vld [vmem:[#allocation19_spill] sm:$0xff] }
 0x242   :  { %v752_v41 = vmul.f32 %v2883_v59, %v751_v47  ;;  %v4144_v59 = vld [vmem:[#allocation20_spill] sm:$0xff] }
 0x244   :  { %v3449_v61 = vadd.f32 %v753_v6, %v752_v41 }
 0x246   :  { %v755_v21 = vpack.c.bf16 %v3449_v61, %v3449_v61 }
 0x248   :  { %2629 = vst [vmem:[%s4079_s5 + $0x8] sm:$0xf] %v755_v21  ;;  %766 = vmatmul.bf16.vlgmr.msrb.gmra.mxu3 %v755_v21  ;;  %779 = vmatmul.bf16.vlgmr.msra.gmra.mxu0 %v755_v21 }
 0x249   :  { %792 = vmatmul.bf16.vlgmr.msra.gmra.mxu1 %v755_v21  ;;  %816 = vmatmul.bf16.vlgmr.msra.gmra.mxu2 %v755_v21 }
 0x24a   :  { %924 = vmatpush.bf16.msrb.mxu3 %v3217_v51  ;;  %948 = vmatpush.bf16.msra.mxu0 %v3109_v3 }
 0x24b   :  { %961 = vmatpush.bf16.msra.mxu1 %v3111_v7  ;;  %974 = vmatpush.bf16.msra.mxu2 %v3119_v18 }
 0x24e   :  { %925 = vmatpush.bf16.msrb.mxu3 %v3227_v0  ;;  %949 = vmatpush.bf16.msra.mxu0 %v3114_v10 }
 0x24f   :  { %962 = vmatpush.bf16.msra.mxu1 %v3117_v11  ;;  %975 = vmatpush.bf16.msra.mxu2 %v3128_v26 }
 0x252   :  { %926 = vmatpush.bf16.msrb.mxu3 %v3237_v23  ;;  %950 = vmatpush.bf16.msra.mxu0 %v3122_v19 }
 0x253   :  { %963 = vmatpush.bf16.msra.mxu1 %v3125_v22  ;;  %976 = vmatpush.bf16.msra.mxu2 %v3137_v35 }
 0x256   :  { %927 = vmatpush.bf16.msrb.mxu3 %v3250_v45  ;;  %951 = vmatpush.bf16.msra.mxu0 %v3131_v30 }
 0x257   :  { %964 = vmatpush.bf16.msra.mxu1 %v3134_v31  ;;  %977 = vmatpush.bf16.msra.mxu2 %v3146_v44 }
 0x258   :  { %829 = vmatmul.bf16.vlgmr.msra.gmra.mxu3 %v755_v21  ;;  %842 = vmatmul.bf16.vlgmr.msrb.gmra.mxu0 %v755_v21 }
 0x25a   :  { %928 = vmatpush.bf16.msrb.mxu3 %v3260_v14  ;;  %952 = vmatpush.bf16.msra.mxu0 %v3140_v39 }
 0x25b   :  { %965 = vmatpush.bf16.msra.mxu1 %v3143_v42  ;;  %978 = vmatpush.bf16.msra.mxu2 %v3155_v53 }
 0x25e   :  { %929 = vmatpush.bf16.msrb.mxu3 %v3267_v38  ;;  %953 = vmatpush.bf16.msra.mxu0 %v3149_v48 }
 0x25f   :  { %966 = vmatpush.bf16.msra.mxu1 %v3152_v49  ;;  %979 = vmatpush.bf16.msra.mxu2 %v3164_v62 }
 0x262   :  { %930 = vmatpush.bf16.msrb.mxu3 %v3273_v52  ;;  %954 = vmatpush.bf16.msra.mxu0 %v3158_v57 }
 0x263   :  { %967 = vmatpush.bf16.msra.mxu1 %v3161_v58  ;;  %980 = vmatpush.bf16.msra.mxu2 %v3173_v5 }
 0x266   :  { %931 = vmatpush.bf16.msrb.mxu3 %v3278_v17  ;;  %955 = vmatpush.bf16.msra.mxu0 %v3167_v2 }
 0x267   :  { %968 = vmatpush.bf16.msra.mxu1 %v3170_v4  ;;  %981 = vmatpush.bf16.msra.mxu2 %v3178_v9 }
 0x26a   :  { %1038 = vmatpush.bf16.msra.mxu3 %v3192_v16  ;;  %1051 = vmatpush.bf16.msrb.mxu0 %v3194_v20 }
 0x26e   :  { %1039 = vmatpush.bf16.msra.mxu3 %v3199_v25  ;;  %1052 = vmatpush.bf16.msrb.mxu0 %v3201_v28 }
 0x272   :  { %1040 = vmatpush.bf16.msra.mxu3 %v3206_v34  ;;  %1053 = vmatpush.bf16.msrb.mxu0 %v3208_v37 }
 0x276   :  { %1041 = vmatpush.bf16.msra.mxu3 %v3213_v43  ;;  %1054 = vmatpush.bf16.msrb.mxu0 %v3215_v50 }
 0x27a   :  { %1042 = vmatpush.bf16.msra.mxu3 %v3222_v56  ;;  %1055 = vmatpush.bf16.msrb.mxu0 %v4135_v13 }
 0x27e   :  { %1043 = vmatpush.bf16.msra.mxu3 %v4136_v63  ;;  %1056 = vmatpush.bf16.msrb.mxu0 %v4137_v55 }
 0x282   :  { %1044 = vmatpush.bf16.msra.mxu3 %v4138_v32  ;;  %1057 = vmatpush.bf16.msrb.mxu0 %v4139_v29 }
 0x286   :  { %1045 = vmatpush.bf16.msra.mxu3 %v4140_v33  ;;  %1058 = vmatpush.bf16.msrb.mxu0 %v4141_v8 }
 0x2c5   :  { %v780_v54 = vpop.f32.mrf.mxu0 }
 0x2c6   :  { %v793_v12 = vpop.f32.mrf.mxu1  ;;  %v781_v47 = vadd.f32 %v780_v54, %v4143_v46 }
 0x2c7   :  { %v794_v27 = vadd.f32 %v793_v12, %v4142_v1  ;;  %v806_v1 = vunpack.c.h.bf16 %v2630_v36 }
 0x2c9   :  { %v798_v40 = vpack.c.bf16 %v794_v27, %v794_v27 }
 0x2cb   :  { %801 = vst [vmem:[#allocation2 + $0x20] sm:$0xf] %v798_v40  ;;  %v767_v15 = vpop.f32.mrf.mxu3 }
 0x2cc   :  { %v768_v41 = vadd.f32 %v767_v15, %v4144_v59  ;;  %v817_v6 = vpop.f32.mrf.mxu2 }
 0x2cd   :  { %v847_v21 = vadd.f32 %v817_v6, %v805_v24  ;;  %v782_v33 = vpop.f32.mrf.mxu0 }
 0x2ce   :  { %v797_v8 = vpack.c.bf16 %v781_v47, %v768_v41  ;;  %v795_v29 = vpop.f32.mrf.mxu1 }
 0x2cf   :  { %v2632_v32 = vmul.f32 -1.442695, %v847_v21 }
 0x2d0   :  { %800 = vst [vmem:[#allocation2 + $0x18] sm:$0xff] %v797_v8 }
 0x2d1   :  { %2884 = vpow2.f32 %v2632_v32 }
 0x2d3   :  { %v769_v55 = vpop.f32.mrf.mxu3 }
 0x2d4   :  { %v819_v63 = vpop.f32.mrf.mxu2 }
 0x2d5   :  { %v843_v13 = vpop.f32.mrf.mxu0 }
 0x2d7   :  { %v2885_v12 = vpop.eup %2884 }
 0x2d8   :  { %v851_v27 = vadd.f32 1.0, %v2885_v12 }
 0x2da   :  { %2886 = vrcp.f32 %v851_v27  ;;  %v863_v29 = vand.u32 2147483648, %v851_v27  ;;  %v861_v32 = vand.u32 2147483647, %v851_v27  ;;  %vm857_vm9 = vweird.f32 %v851_v27 }
 0x2db   :  { %v830_v40 = vpop.f32.mrf.mxu3 }
 0x2dc   :  { %v867_v56 = vadd.f32 %v830_v40, %v806_v1  ;;  %v864_v36 = vor.u32 1.1754944e-38, %v863_v29  ;;  %vm862_vm11 = vcmp.eq.f32.partialorder %v861_v32, 8.507059e+37 }
 0x2dd   :  { %v845_v54 = vpop.f32.mrf.mxu0 }
 0x2de   :  { %v2633_v46 = vmul.f32 -1.442695, %v867_v56  ;;  %v2631_v56 = vld [vmem:[%s4074_s0 + $0x2c] sm:$0xf] }
 0x2df   :  { %v807_v21 = vunpack.c.l.bf16 %v2631_v56 }
 0x2e0   :  { %v2887_v15 = vpop.eup %2886  ;;  %2888 = vpow2.f32 %v2633_v46  ;;  %v887_v46 = vadd.f32 %v4125_v60, %v843_v13 }
 0x2e1   :  { %v853_v24 = vmul.f32 %v2887_v15, %v851_v27  ;;  %vm858_vm8 = vweird.f32 %v2887_v15 }
 0x2e2   :  { %vm859_vm10 = vmor %vm857_vm9, %vm858_vm8 }
 0x2e3   :  { %v854_v33 = vsub.f32 1.0, %v853_v24  ;;  %v832_v47 = vpop.f32.mrf.mxu3 }
 0x2e5   :  { %v855_v41 = vmul.f32 %v2887_v15, %v854_v33 }
 0x2e6   :  { %v2889_v55 = vpop.eup %2888 }
 0x2e7   :  { %v856_v63 = vadd.f32 %v2887_v15, %v855_v41  ;;  %v871_v8 = vadd.f32 1.0, %v2889_v55 }
 0x2e9   :  { %v860_v6 = vsel %vm859_vm10, %v2887_v15, %v856_v63  ;;  %2890 = vrcp.f32 %v871_v8  ;;  %v883_v27 = vand.u32 2147483648, %v871_v8  ;;  %v881_v29 = vand.u32 2147483647, %v871_v8 }
 0x2ea   :  { %v865_v1 = vsel %vm862_vm11, %v864_v36, %v860_v6  ;;  %vm877_vm13 = vweird.f32 %v871_v8 }
 0x2eb   :  { %v888_v12 = vmul.f32 %v887_v46, %v865_v1  ;;  %v884_v41 = vor.u32 1.1754944e-38, %v883_v27  ;;  %vm882_vm15 = vcmp.eq.f32.partialorder %v881_v29, 8.507059e+37  ;;  %v4147_v1 = vld [vmem:[#allocation11_spill] sm:$0xff]  ;;  %v4148_v46 = vld [vmem:[#allocation12_spill] sm:$0xff] }
 0x2ed   :  { %v889_v24 = vadd.f32 %v888_v12, %v807_v21  ;;  %v4149_v21 = vld [vmem:[#allocation13_spill] sm:$0xff]  ;;  %v4150_v12 = vld [vmem:[#allocation14_spill] sm:$0xff] }
 0x2ef   :  { %v2891_v40 = vpop.eup %2890  ;;  %2892 = vtanh.f32 %v889_v24  ;;  %v2635_v24 = vld [vmem:[%s4074_s0 + $0x30] sm:$0xff] }
 0x2f0   :  { %v873_v54 = vmul.f32 %v2891_v40, %v871_v8  ;;  %vm878_vm12 = vweird.f32 %v2891_v40  ;;  %v4146_v8 = vld [vmem:[#allocation10_spill] sm:$0xff] }
 0x2f1   :  { %vm879_vm14 = vmor %vm877_vm13, %vm878_vm12 }
 0x2f2   :  { %v874_v33 = vsub.f32 1.0, %v873_v54  ;;  %v4152_v54 = vld [vmem:[#allocation16_spill] sm:$0xff] }
 0x2f4   :  { %v875_v47 = vmul.f32 %v2891_v40, %v874_v33  ;;  %v945_v33 = vunpack.c.l.bf16 %v2635_v24 }
 0x2f5   :  { %v2893_v60 = vpop.eup %2892 }
 0x2f6   :  { %v876_v15 = vadd.f32 %v2891_v40, %v875_v47 }
 0x2f8   :  { %v880_v32 = vsel %vm879_vm14, %v2891_v40, %v876_v15  ;;  %v4151_v40 = vld [vmem:[#allocation15_spill] sm:$0xff] }
 0x2f9   :  { %v885_v55 = vsel %vm882_vm15, %v884_v41, %v880_v32 }
 0x2fa   :  { %v891_v63 = vsub.f32 1.0, %v885_v55  ;;  %v893_v36 = vmul.f32 %v885_v55, %v3449_v61  ;;  %v4145_v61 = vld [vmem:[#allocation9_spill] sm:$0xff]  ;;  %v4153_v55 = vld [vmem:[#allocation19_spill] sm:$0xff] }
 0x2fc   :  { %v892_v13 = vmul.f32 %v2893_v60, %v891_v63 }
 0x2fe   :  { %v3515_v6 = vadd.f32 %v893_v36, %v892_v13  ;;  %v4154_v13 = vld [vmem:[#allocation18_spill] sm:$0xff] }
 0x300   :  { %v895_v56 = vpack.c.bf16 %v3515_v6, %v3515_v6 }
 0x302   :  { %2634 = vst [vmem:[%s4079_s5 + $0xc] sm:$0xf] %v895_v56  ;;  %906 = vmatmul.bf16.vlgmr.msrb.gmra.mxu1 %v895_v56  ;;  %919 = vmatmul.bf16.vlgmr.msrb.gmra.mxu2 %v895_v56 }
 0x303   :  { %932 = vmatmul.bf16.vlgmr.msrb.gmra.mxu3 %v895_v56  ;;  %956 = vmatmul.bf16.vlgmr.msra.gmra.mxu0 %v895_v56 }
 0x304   :  { %1064 = vmatpush.bf16.msrb.mxu1 %v3217_v51  ;;  %1088 = vmatpush.bf16.msrb.mxu2 %v3109_v3 }
 0x305   :  { %1101 = vmatpush.bf16.msrb.mxu3 %v3111_v7  ;;  %1114 = vmatpush.bf16.msra.mxu0 %v3119_v18 }
 0x308   :  { %1065 = vmatpush.bf16.msrb.mxu1 %v3227_v0  ;;  %1089 = vmatpush.bf16.msrb.mxu2 %v3114_v10 }
 0x309   :  { %1102 = vmatpush.bf16.msrb.mxu3 %v3117_v11  ;;  %1115 = vmatpush.bf16.msra.mxu0 %v3128_v26 }
 0x30c   :  { %1066 = vmatpush.bf16.msrb.mxu1 %v3237_v23  ;;  %1090 = vmatpush.bf16.msrb.mxu2 %v3122_v19 }
 0x30d   :  { %1103 = vmatpush.bf16.msrb.mxu3 %v3125_v22  ;;  %1116 = vmatpush.bf16.msra.mxu0 %v3137_v35 }
 0x310   :  { %1067 = vmatpush.bf16.msrb.mxu1 %v3250_v45  ;;  %1091 = vmatpush.bf16.msrb.mxu2 %v3131_v30 }
 0x311   :  { %1104 = vmatpush.bf16.msrb.mxu3 %v3134_v31  ;;  %1117 = vmatpush.bf16.msra.mxu0 %v3146_v44 }
 0x312   :  { %969 = vmatmul.bf16.vlgmr.msra.gmra.mxu1 %v895_v56  ;;  %982 = vmatmul.bf16.vlgmr.msra.gmra.mxu2 %v895_v56 }
 0x314   :  { %1068 = vmatpush.bf16.msrb.mxu1 %v3260_v14  ;;  %1092 = vmatpush.bf16.msrb.mxu2 %v3140_v39 }
 0x315   :  { %1105 = vmatpush.bf16.msrb.mxu3 %v3143_v42  ;;  %1118 = vmatpush.bf16.msra.mxu0 %v3155_v53 }
 0x318   :  { %1069 = vmatpush.bf16.msrb.mxu1 %v3267_v38  ;;  %1093 = vmatpush.bf16.msrb.mxu2 %v3149_v48 }
 0x319   :  { %1106 = vmatpush.bf16.msrb.mxu3 %v3152_v49  ;;  %1119 = vmatpush.bf16.msra.mxu0 %v3164_v62 }
 0x31c   :  { %1070 = vmatpush.bf16.msrb.mxu1 %v3273_v52  ;;  %1094 = vmatpush.bf16.msrb.mxu2 %v3158_v57 }
 0x31d   :  { %1107 = vmatpush.bf16.msrb.mxu3 %v3161_v58  ;;  %1120 = vmatpush.bf16.msra.mxu0 %v3173_v5 }
 0x320   :  { %1071 = vmatpush.bf16.msrb.mxu1 %v3278_v17  ;;  %1095 = vmatpush.bf16.msrb.mxu2 %v3167_v2 }
 0x321   :  { %1108 = vmatpush.bf16.msrb.mxu3 %v3170_v4  ;;  %1121 = vmatpush.bf16.msra.mxu0 %v3178_v9 }
 0x324   :  { %1178 = vmatpush.bf16.msra.mxu1 %v3192_v16  ;;  %1191 = vmatpush.bf16.msra.mxu2 %v3194_v20 }
 0x328   :  { %1179 = vmatpush.bf16.msra.mxu1 %v3199_v25  ;;  %1192 = vmatpush.bf16.msra.mxu2 %v3201_v28 }
 0x32c   :  { %1180 = vmatpush.bf16.msra.mxu1 %v3206_v34  ;;  %1193 = vmatpush.bf16.msra.mxu2 %v3208_v37 }
 0x330   :  { %1181 = vmatpush.bf16.msra.mxu1 %v3213_v43  ;;  %1194 = vmatpush.bf16.msra.mxu2 %v3215_v50 }
 0x334   :  { %1182 = vmatpush.bf16.msra.mxu1 %v4145_v61  ;;  %1195 = vmatpush.bf16.msra.mxu2 %v4146_v8 }
 0x338   :  { %1183 = vmatpush.bf16.msra.mxu1 %v4147_v1  ;;  %1196 = vmatpush.bf16.msra.mxu2 %v4148_v46  ;;  %v946_v46 = vunpack.c.h.bf16 %v2635_v24 }
 0x33c   :  { %1184 = vmatpush.bf16.msra.mxu1 %v4149_v21  ;;  %1197 = vmatpush.bf16.msra.mxu2 %v4150_v12 }
 0x340   :  { %1185 = vmatpush.bf16.msra.mxu1 %v4151_v40  ;;  %1198 = vmatpush.bf16.msra.mxu2 %v4152_v54 }
 0x37f   :  { %v907_v27 = vpop.f32.mrf.mxu1 }
 0x380   :  { %v957_v47 = vpop.f32.mrf.mxu0  ;;  %v908_v32 = vadd.f32 %v907_v27, %v4144_v59 }
 0x381   :  { %v987_v29 = vadd.f32 %v957_v47, %v945_v33 }
 0x383   :  { %v2637_v15 = vmul.f32 -1.442695, %v987_v29 }
 0x385   :  { %2894 = vpow2.f32 %v2637_v15  ;;  %v920_v41 = vpop.f32.mrf.mxu2 }
 0x386   :  { %v921_v63 = vadd.f32 %v920_v41, %v4153_v55  ;;  %v933_v60 = vpop.f32.mrf.mxu3 }
 0x387   :  { %v934_v36 = vadd.f32 %v933_v60, %v4154_v13  ;;  %v909_v56 = vpop.f32.mrf.mxu1 }
 0x388   :  { %v937_v40 = vpack.c.bf16 %v921_v63, %v908_v32  ;;  %v959_v54 = vpop.f32.mrf.mxu0 }
 0x389   :  { %v938_v21 = vpack.c.bf16 %v934_v36, %v934_v36 }
 0x38a   :  { %940 = vst [vmem:[#allocation2 + $0x24] sm:$0xff] %v937_v40 }
 0x38b   :  { %v2895_v12 = vpop.eup %2894  ;;  %941 = vst [vmem:[#allocation2 + $0x2c] sm:$0xf] %v938_v21 }
 0x38c   :  { %v991_v1 = vadd.f32 1.0, %v2895_v12 }
 0x38d   :  { %v922_v33 = vpop.f32.mrf.mxu2 }
 0x38e   :  { %2896 = vrcp.f32 %v991_v1  ;;  %v935_v47 = vpop.f32.mrf.mxu3  ;;  %v1003_v54 = vand.u32 2147483648, %v991_v1  ;;  %v1001_v40 = vand.u32 2147483647, %v991_v1  ;;  %vm997_vm1 = vweird.f32 %v991_v1 }
 0x38f   :  { %v970_v29 = vpop.f32.mrf.mxu1  ;;  %v3582_v47 = vld [vmem:[%s4078_s4] ss:$0 sm:$0xff] }
 0x390   :  { %v1007_v15 = vadd.f32 %v970_v29, %v946_v46  ;;  %v1004_v24 = vor.u32 1.1754944e-38, %v1003_v54  ;;  %v2636_v46 = vld [vmem:[%s4074_s0 + $0x38] sm:$0xf]  ;;  %vm1002_vm3 = vcmp.eq.f32.partialorder %v1001_v40, 8.507059e+37 }
 0x392   :  { %v2638_v27 = vmul.f32 -1.442695, %v1007_v15  ;;  %v947_v15 = vunpack.c.l.bf16 %v2636_v46 }
 0x394   :  { %v2897_v59 = vpop.eup %2896  ;;  %2898 = vpow2.f32 %v2638_v27 }
 0x395   :  { %v983_v41 = vpop.f32.mrf.mxu2  ;;  %v993_v55 = vmul.f32 %v2897_v59, %v991_v1  ;;  %vm998_vm0 = vweird.f32 %v2897_v59 }
 0x396   :  { %vm999_vm2 = vmor %vm997_vm1, %vm998_vm0  ;;  %v1027_v29 = vadd.f32 %v3582_v47, %v983_v41 }
 0x397   :  { %v994_v60 = vsub.f32 1.0, %v993_v55  ;;  %v972_v56 = vpop.f32.mrf.mxu1 }
 0x399   :  { %v995_v32 = vmul.f32 %v2897_v59, %v994_v60 }
 0x39a   :  { %v2899_v63 = vpop.eup %2898 }
 0x39b   :  { %v1011_v21 = vadd.f32 1.0, %v2899_v63  ;;  %v996_v12 = vadd.f32 %v2897_v59, %v995_v32 }
 0x39d   :  { %2900 = vrcp.f32 %v1011_v21  ;;  %v985_v36 = vpop.f32.mrf.mxu2  ;;  %v1000_v33 = vsel %vm999_vm2, %v2897_v59, %v996_v12  ;;  %v1023_v54 = vand.u32 2147483648, %v1011_v21  ;;  %vm1017_vm5 = vweird.f32 %v1011_v21 }
 0x39e   :  { %v1005_v55 = vsel %vm1002_vm3, %v1004_v24, %v1000_v33  ;;  %v1021_v36 = vand.u32 2147483647, %v1011_v21 }
 0x39f   :  { %v1028_v1 = vmul.f32 %v1027_v29, %v1005_v55  ;;  %v1024_v40 = vor.u32 1.1754944e-38, %v1023_v54 }
 0x3a0   :  { %vm1022_vm7 = vcmp.eq.f32.partialorder %v1021_v36, 8.507059e+37 }
 0x3a1   :  { %v1029_v56 = vadd.f32 %v1028_v1, %v947_v15  ;;  %v4157_v1 = vld [vmem:[#allocation14_spill] sm:$0xff] }
 0x3a3   :  { %v2901_v27 = vpop.eup %2900  ;;  %2902 = vtanh.f32 %v1029_v56  ;;  %v4160_v56 = vld [vmem:[#allocation15_spill] sm:$0xff] }
 0x3a4   :  { %v1013_v60 = vmul.f32 %v2901_v27, %v1011_v21  ;;  %vm1018_vm4 = vweird.f32 %v2901_v27  ;;  %v4156_v21 = vld [vmem:[#allocation11_spill] sm:$0xff] }
 0x3a5   :  { %vm1019_vm6 = vmor %vm1017_vm5, %vm1018_vm4 }
 0x3a6   :  { %v1014_v32 = vsub.f32 1.0, %v1013_v60  ;;  %v4159_v60 = vld [vmem:[#allocation16_spill] sm:$0xff] }
 0x3a8   :  { %v1015_v63 = vmul.f32 %v2901_v27, %v1014_v32 }
 0x3a9   :  { %v2903_v41 = vpop.eup %2902 }
 0x3aa   :  { %v1016_v59 = vadd.f32 %v2901_v27, %v1015_v63  ;;  %v2640_v63 = vld [vmem:[%s4074_s0 + $0x3c] sm:$0xff] }
 0x3ac   :  { %v1020_v12 = vsel %vm1019_vm6, %v2901_v27, %v1016_v59  ;;  %v4158_v27 = vld [vmem:[#allocation13_spill] sm:$0xff] }
 0x3ad   :  { %v1025_v24 = vsel %vm1022_vm7, %v1024_v40, %v1020_v12  ;;  %v1085_v40 = vunpack.c.l.bf16 %v2640_v63 }
 0x3ae   :  { %v1031_v33 = vsub.f32 1.0, %v1025_v24  ;;  %v1033_v55 = vmul.f32 %v1025_v24, %v3515_v6  ;;  %v4155_v6 = vld [vmem:[#allocation12_spill] sm:$0xff]  ;;  %v4161_v24 = vld [vmem:[#allocation19_spill] sm:$0xff] }
 0x3b0   :  { %v1032_v46 = vmul.f32 %v2903_v41, %v1031_v33  ;;  %v4162_v41 = vld [vmem:[#allocation20_spill] sm:$0xff] }
 0x3b2   :  { %v3586_v29 = vadd.f32 %v1033_v55, %v1032_v46 }
 0x3b4   :  { %v1035_v15 = vpack.c.bf16 %v3586_v29, %v3586_v29 }
 0x3b6   :  { %2639 = vst [vmem:[%s4079_s5 + $0x10] sm:$0xf] %v1035_v15  ;;  %1046 = vmatmul.bf16.vlgmr.msra.gmra.mxu3 %v1035_v15  ;;  %1059 = vmatmul.bf16.vlgmr.msrb.gmra.mxu0 %v1035_v15 }
 0x3b7   :  { %1072 = vmatmul.bf16.vlgmr.msrb.gmra.mxu1 %v1035_v15  ;;  %1096 = vmatmul.bf16.vlgmr.msrb.gmra.mxu2 %v1035_v15 }
 0x3b8   :  { %1204 = vmatpush.bf16.msra.mxu3 %v3217_v51  ;;  %1228 = vmatpush.bf16.msrb.mxu0 %v3109_v3 }
 0x3b9   :  { %1241 = vmatpush.bf16.msrb.mxu1 %v3111_v7  ;;  %1254 = vmatpush.bf16.msrb.mxu2 %v3119_v18 }
 0x3bc   :  { %1205 = vmatpush.bf16.msra.mxu3 %v3227_v0  ;;  %1229 = vmatpush.bf16.msrb.mxu0 %v3114_v10 }
 0x3bd   :  { %1242 = vmatpush.bf16.msrb.mxu1 %v3117_v11  ;;  %1255 = vmatpush.bf16.msrb.mxu2 %v3128_v26 }
 0x3c0   :  { %1206 = vmatpush.bf16.msra.mxu3 %v3237_v23  ;;  %1230 = vmatpush.bf16.msrb.mxu0 %v3122_v19 }
 0x3c1   :  { %1243 = vmatpush.bf16.msrb.mxu1 %v3125_v22  ;;  %1256 = vmatpush.bf16.msrb.mxu2 %v3137_v35 }
 0x3c4   :  { %1207 = vmatpush.bf16.msra.mxu3 %v3250_v45  ;;  %1231 = vmatpush.bf16.msrb.mxu0 %v3131_v30 }
 0x3c5   :  { %1244 = vmatpush.bf16.msrb.mxu1 %v3134_v31  ;;  %1257 = vmatpush.bf16.msrb.mxu2 %v3146_v44 }
 0x3c6   :  { %1109 = vmatmul.bf16.vlgmr.msrb.gmra.mxu3 %v1035_v15  ;;  %1122 = vmatmul.bf16.vlgmr.msra.gmra.mxu0 %v1035_v15 }
 0x3c8   :  { %1208 = vmatpush.bf16.msra.mxu3 %v3260_v14  ;;  %1232 = vmatpush.bf16.msrb.mxu0 %v3140_v39 }
 0x3c9   :  { %1245 = vmatpush.bf16.msrb.mxu1 %v3143_v42  ;;  %1258 = vmatpush.bf16.msrb.mxu2 %v3155_v53 }
 0x3cc   :  { %1209 = vmatpush.bf16.msra.mxu3 %v3267_v38  ;;  %1233 = vmatpush.bf16.msrb.mxu0 %v3149_v48 }
 0x3cd   :  { %1246 = vmatpush.bf16.msrb.mxu1 %v3152_v49  ;;  %1259 = vmatpush.bf16.msrb.mxu2 %v3164_v62 }
 0x3d0   :  { %1210 = vmatpush.bf16.msra.mxu3 %v3273_v52  ;;  %1234 = vmatpush.bf16.msrb.mxu0 %v3158_v57 }
 0x3d1   :  { %1247 = vmatpush.bf16.msrb.mxu1 %v3161_v58  ;;  %1260 = vmatpush.bf16.msrb.mxu2 %v3173_v5 }
 0x3d4   :  { %1211 = vmatpush.bf16.msra.mxu3 %v3278_v17  ;;  %1235 = vmatpush.bf16.msrb.mxu0 %v3167_v2 }
 0x3d5   :  { %1248 = vmatpush.bf16.msrb.mxu1 %v3170_v4  ;;  %1261 = vmatpush.bf16.msrb.mxu2 %v3178_v9 }
 0x3d8   :  { %1331 = vmatpush.bf16.msra.mxu0 %v3194_v20  ;;  %1318 = vmatpush.bf16.msrb.mxu3 %v3192_v16 }
 0x3dc   :  { %1332 = vmatpush.bf16.msra.mxu0 %v3201_v28  ;;  %1319 = vmatpush.bf16.msrb.mxu3 %v3199_v25 }
 0x3e0   :  { %1333 = vmatpush.bf16.msra.mxu0 %v3208_v37  ;;  %1320 = vmatpush.bf16.msrb.mxu3 %v3206_v34 }
 0x3e4   :  { %1334 = vmatpush.bf16.msra.mxu0 %v3215_v50  ;;  %1321 = vmatpush.bf16.msrb.mxu3 %v3213_v43 }
 0x3e8   :  { %1335 = vmatpush.bf16.msra.mxu0 %v4146_v8  ;;  %1322 = vmatpush.bf16.msrb.mxu3 %v4145_v61 }
 0x3ec   :  { %1336 = vmatpush.bf16.msra.mxu0 %v4155_v6  ;;  %1323 = vmatpush.bf16.msrb.mxu3 %v4156_v21 }
 0x3f0   :  { %1337 = vmatpush.bf16.msra.mxu0 %v4157_v1  ;;  %1324 = vmatpush.bf16.msrb.mxu3 %v4158_v27 }
 0x3f4   :  { %1338 = vmatpush.bf16.msra.mxu0 %v4159_v60  ;;  %1325 = vmatpush.bf16.msrb.mxu3 %v4160_v56 }
 0x433   :  { %v1060_v32 = vpop.f32.mrf.mxu0 }
 0x434   :  { %v1073_v54 = vpop.f32.mrf.mxu1  ;;  %v1061_v33 = vadd.f32 %v1060_v32, %v4161_v24 }
 0x435   :  { %v1074_v36 = vadd.f32 %v1073_v54, %v4154_v13  ;;  %v1086_v13 = vunpack.c.h.bf16 %v2640_v63 }
 0x437   :  { %v1078_v59 = vpack.c.bf16 %v1074_v36, %v1074_v36 }
 0x439   :  { %1081 = vst [vmem:[#allocation2 + $0x38] sm:$0xf] %v1078_v59  ;;  %v1047_v12 = vpop.f32.mrf.mxu3 }
 0x43a   :  { %v1048_v46 = vadd.f32 %v1047_v12, %v4162_v41  ;;  %v1097_v55 = vpop.f32.mrf.mxu2 }
 0x43b   :  { %v1127_v15 = vadd.f32 %v1097_v55, %v1085_v40  ;;  %v1062_v60 = vpop.f32.mrf.mxu0 }
 0x43c   :  { %v1077_v56 = vpack.c.bf16 %v1061_v33, %v1048_v46  ;;  %v1075_v1 = vpop.f32.mrf.mxu1 }
 0x43d   :  { %v2642_v27 = vmul.f32 -1.442695, %v1127_v15 }
 0x43e   :  { %1080 = vst [vmem:[#allocation2 + $0x30] sm:$0xff] %v1077_v56 }
 0x43f   :  { %2904 = vpow2.f32 %v2642_v27 }
 0x441   :  { %v1049_v6 = vpop.f32.mrf.mxu3 }
 0x442   :  { %v1099_v21 = vpop.f32.mrf.mxu2 }
 0x443   :  { %v1123_v8 = vpop.f32.mrf.mxu0 }
 0x445   :  { %v2905_v54 = vpop.eup %2904 }
 0x446   :  { %v1131_v36 = vadd.f32 1.0, %v2905_v54 }
 0x448   :  { %2906 = vrcp.f32 %v1131_v36  ;;  %v1143_v1 = vand.u32 2147483648, %v1131_v36  ;;  %v1141_v27 = vand.u32 2147483647, %v1131_v36  ;;  %vm1137_vm9 = vweird.f32 %v1131_v36 }
 0x449   :  { %v1110_v59 = vpop.f32.mrf.mxu3 }
 0x44a   :  { %v1147_v61 = vadd.f32 %v1110_v59, %v1086_v13  ;;  %v1144_v63 = vor.u32 1.1754944e-38, %v1143_v1  ;;  %vm1142_vm11 = vcmp.eq.f32.partialorder %v1141_v27, 8.507059e+37 }
 0x44b   :  { %v1125_v32 = vpop.f32.mrf.mxu0 }
 0x44c   :  { %v2643_v24 = vmul.f32 -1.442695, %v1147_v61  ;;  %v2641_v61 = vld [vmem:[%s4074_s0 + $0x44] sm:$0xf] }
 0x44d   :  { %v1087_v15 = vunpack.c.l.bf16 %v2641_v61 }
 0x44e   :  { %v2907_v12 = vpop.eup %2906  ;;  %2908 = vpow2.f32 %v2643_v24  ;;  %v1167_v24 = vadd.f32 %v3582_v47, %v1123_v8 }
 0x44f   :  { %v1133_v40 = vmul.f32 %v2907_v12, %v1131_v36  ;;  %vm1138_vm8 = vweird.f32 %v2907_v12 }
 0x450   :  { %vm1139_vm10 = vmor %vm1137_vm9, %vm1138_vm8 }
 0x451   :  { %v1134_v60 = vsub.f32 1.0, %v1133_v40  ;;  %v1112_v33 = vpop.f32.mrf.mxu3 }
 0x453   :  { %v1135_v46 = vmul.f32 %v2907_v12, %v1134_v60 }
 0x454   :  { %v2909_v6 = vpop.eup %2908 }
 0x455   :  { %v1136_v21 = vadd.f32 %v2907_v12, %v1135_v46  ;;  %v1151_v56 = vadd.f32 1.0, %v2909_v6 }
 0x457   :  { %v1140_v55 = vsel %vm1139_vm10, %v2907_v12, %v1136_v21  ;;  %2910 = vrcp.f32 %v1151_v56  ;;  %v1163_v36 = vand.u32 2147483648, %v1151_v56  ;;  %v1161_v1 = vand.u32 2147483647, %v1151_v56 }
 0x458   :  { %v1145_v13 = vsel %vm1142_vm11, %v1144_v63, %v1140_v55  ;;  %vm1157_vm13 = vweird.f32 %v1151_v56 }
 0x459   :  { %v1168_v54 = vmul.f32 %v1167_v24, %v1145_v13  ;;  %v1164_v46 = vor.u32 1.1754944e-38, %v1163_v36  ;;  %vm1162_vm15 = vcmp.eq.f32.partialorder %v1161_v1, 8.507059e+37 }
 0x45b   :  { %v1169_v40 = vadd.f32 %v1168_v54, %v1087_v15 }
 0x45d   :  { %v2911_v59 = vpop.eup %2910  ;;  %2912 = vtanh.f32 %v1169_v40 }
 0x45e   :  { %v1153_v32 = vmul.f32 %v2911_v59, %v1151_v56  ;;  %vm1158_vm12 = vweird.f32 %v2911_v59 }
 0x45f   :  { %vm1159_vm14 = vmor %vm1157_vm13, %vm1158_vm12 }
 0x460   :  { %v1154_v60 = vsub.f32 1.0, %v1153_v32 }
 0x462   :  { %v1155_v33 = vmul.f32 %v2911_v59, %v1154_v60 }
 0x463   :  { %v2913_v8 = vpop.eup %2912 }
 0x464   :  { %v1156_v12 = vadd.f32 %v2911_v59, %v1155_v33 }
 0x466   :  { %v1160_v27 = vsel %vm1159_vm14, %v2911_v59, %v1156_v12 }
 0x467   :  { %v1165_v6 = vsel %vm1162_vm15, %v1164_v46, %v1160_v27  ;;  %v2646_v27 = vld [vmem:[%s4074_s0 + $0x50] sm:$0xf] }
 0x468   :  { %v1171_v21 = vsub.f32 1.0, %v1165_v6  ;;  %v1173_v55 = vmul.f32 %v1165_v6, %v3586_v29 }
 0x46a   :  { %v1172_v63 = vmul.f32 %v2913_v8, %v1171_v21 }
 0x46c   :  { %v3652_v61 = vadd.f32 %v1173_v55, %v1172_v63  ;;  %v1227_v63 = vunpack.c.l.bf16 %v2646_v27 }
 0x46e   :  { %v1175_v13 = vpack.c.bf16 %v3652_v61, %v3652_v61 }
 0x470   :  { %2644 = vst [vmem:[%s4079_s5 + $0x14] sm:$0xf] %v1175_v13  ;;  %1186 = vmatmul.bf16.vlgmr.msra.gmra.mxu1 %v1175_v13  ;;  %1199 = vmatmul.bf16.vlgmr.msra.gmra.mxu2 %v1175_v13 }
 0x471   :  { %1212 = vmatmul.bf16.vlgmr.msra.gmra.mxu3 %v1175_v13  ;;  %1236 = vmatmul.bf16.vlgmr.msrb.gmra.mxu0 %v1175_v13 }
 0x472   :  { %1344 = vmatpush.bf16.msra.mxu1 %v3217_v51  ;;  %1368 = vmatpush.bf16.msra.mxu2 %v3109_v3  ;;  %v4163_v3 = vld [vmem:[#allocation9_spill] sm:$0xff] }
 0x473   :  { %1394 = vmatpush.bf16.msrb.mxu0 %v3119_v18  ;;  %1381 = vmatpush.bf16.msra.mxu3 %v3111_v7  ;;  %v4164_v7 = vld [vmem:[#allocation10_spill] sm:$0xff]  ;;  %v4167_v18 = vld [vmem:[#allocation13_spill] sm:$0xff] }
 0x476   :  { %1345 = vmatpush.bf16.msra.mxu1 %v3227_v0  ;;  %1369 = vmatpush.bf16.msra.mxu2 %v3114_v10  ;;  %v4165_v10 = vld [vmem:[#allocation11_spill] sm:$0xff] }
 0x477   :  { %1395 = vmatpush.bf16.msrb.mxu0 %v3128_v26  ;;  %1382 = vmatpush.bf16.msra.mxu3 %v3117_v11  ;;  %v4166_v11 = vld [vmem:[#allocation12_spill] sm:$0xff] }
 0x478   :  { %v4170_v26 = vld [vmem:[#allocation16_spill] sm:$0xff] }
 0x47a   :  { %1346 = vmatpush.bf16.msra.mxu1 %v3237_v23  ;;  %1370 = vmatpush.bf16.msra.mxu2 %v3122_v19  ;;  %v4168_v19 = vld [vmem:[#allocation14_spill] sm:$0xff] }
 0x47b   :  { %1396 = vmatpush.bf16.msrb.mxu0 %v3137_v35  ;;  %1383 = vmatpush.bf16.msra.mxu3 %v3125_v22  ;;  %v4169_v22 = vld [vmem:[#allocation15_spill] sm:$0xff] }
 0x47e   :  { %1347 = vmatpush.bf16.msra.mxu1 %v3250_v45  ;;  %1371 = vmatpush.bf16.msra.mxu2 %v3131_v30  ;;  %v2645_v30 = vld [vmem:[%s4074_s0 + $0x48] sm:$0xff] }
 0x47f   :  { %1397 = vmatpush.bf16.msrb.mxu0 %v3146_v44  ;;  %1384 = vmatpush.bf16.msra.mxu3 %v3134_v31  ;;  %v1225_v31 = vunpack.c.l.bf16 %v2645_v30 }
 0x480   :  { %1249 = vmatmul.bf16.vlgmr.msrb.gmra.mxu1 %v1175_v13  ;;  %1262 = vmatmul.bf16.vlgmr.msrb.gmra.mxu2 %v1175_v13 }
 0x482   :  { %1348 = vmatpush.bf16.msra.mxu1 %v3260_v14  ;;  %1372 = vmatpush.bf16.msra.mxu2 %v3140_v39 }
 0x483   :  { %1398 = vmatpush.bf16.msrb.mxu0 %v3155_v53  ;;  %1385 = vmatpush.bf16.msra.mxu3 %v3143_v42  ;;  %v4171_v53 = vld [vmem:[#allocation19_spill] sm:$0xff] }
 0x486   :  { %1349 = vmatpush.bf16.msra.mxu1 %v3267_v38  ;;  %1373 = vmatpush.bf16.msra.mxu2 %v3149_v48 }
 0x487   :  { %1399 = vmatpush.bf16.msrb.mxu0 %v3164_v62  ;;  %1386 = vmatpush.bf16.msra.mxu3 %v3152_v49  ;;  %v4172_v62 = vld [vmem:[#allocation18_spill] sm:$0xff] }
 0x48a   :  { %1350 = vmatpush.bf16.msra.mxu1 %v3273_v52  ;;  %1374 = vmatpush.bf16.msra.mxu2 %v3158_v57 }
 0x48b   :  { %1400 = vmatpush.bf16.msrb.mxu0 %v3173_v5  ;;  %1387 = vmatpush.bf16.msra.mxu3 %v3161_v58 }
 0x48e   :  { %1351 = vmatpush.bf16.msra.mxu1 %v3278_v17  ;;  %1375 = vmatpush.bf16.msra.mxu2 %v3167_v2 }
 0x48f   :  { %1401 = vmatpush.bf16.msrb.mxu0 %v3178_v9  ;;  %1388 = vmatpush.bf16.msra.mxu3 %v3170_v4 }
 0x492   :  { %1458 = vmatpush.bf16.msrb.mxu1 %v3192_v16  ;;  %1471 = vmatpush.bf16.msrb.mxu2 %v3194_v20 }
 0x496   :  { %1459 = vmatpush.bf16.msrb.mxu1 %v3199_v25  ;;  %1472 = vmatpush.bf16.msrb.mxu2 %v3201_v28  ;;  %v1226_v28 = vunpack.c.h.bf16 %v2645_v30 }
 0x49a   :  { %1460 = vmatpush.bf16.msrb.mxu1 %v3206_v34  ;;  %1473 = vmatpush.bf16.msrb.mxu2 %v3208_v37 }
 0x49e   :  { %1461 = vmatpush.bf16.msrb.mxu1 %v3213_v43  ;;  %1474 = vmatpush.bf16.msrb.mxu2 %v3215_v50 }
 0x4a2   :  { %1462 = vmatpush.bf16.msrb.mxu1 %v4163_v3  ;;  %1475 = vmatpush.bf16.msrb.mxu2 %v4164_v7 }
 0x4a6   :  { %1463 = vmatpush.bf16.msrb.mxu1 %v4165_v10  ;;  %1476 = vmatpush.bf16.msrb.mxu2 %v4166_v11 }
 0x4aa   :  { %1464 = vmatpush.bf16.msrb.mxu1 %v4167_v18  ;;  %1477 = vmatpush.bf16.msrb.mxu2 %v4168_v19 }
 0x4ae   :  { %1465 = vmatpush.bf16.msrb.mxu1 %v4169_v22  ;;  %1478 = vmatpush.bf16.msrb.mxu2 %v4170_v26 }
 0x4ed   :  { %v1187_v35 = vpop.f32.mrf.mxu1 }
 0x4ee   :  { %v1237_v39 = vpop.f32.mrf.mxu0  ;;  %v1188_v49 = vadd.f32 %v1187_v35, %v4162_v41 }
 0x4ef   :  { %v1267_v42 = vadd.f32 %v1237_v39, %v1225_v31 }
 0x4f1   :  { %v2647_v44 = vmul.f32 -1.442695, %v1267_v42 }
 0x4f3   :  { %2914 = vpow2.f32 %v2647_v44  ;;  %v1200_v48 = vpop.f32.mrf.mxu2 }
 0x4f4   :  { %v1201_v57 = vadd.f32 %v1200_v48, %v4171_v53  ;;  %v1213_v58 = vpop.f32.mrf.mxu3  ;;  %v2742_v48 = vld [vmem:[#allocation5 + $0x168] sm:$0xf] }
 0x4f5   :  { %v1214_v2 = vadd.f32 %v1213_v58, %v4172_v62  ;;  %v1189_v4 = vpop.f32.mrf.mxu1 }
 0x4f6   :  { %v1217_v5 = vpack.c.bf16 %v1201_v57, %v1188_v49  ;;  %v1239_v9 = vpop.f32.mrf.mxu0  ;;  %v2845_v49 = vld [vmem:[#allocation5 + $0x170] sm:$0xf0]  ;;  %v2730_v4 = vld [vmem:[#allocation5 + $0x150] sm:$0xf] }
 0x4f7   :  { %v1218_v16 = vpack.c.bf16 %v1214_v2, %v1214_v2  ;;  %v3722_v2 = vor.u32 %v2845_v49, %v2742_v48  ;;  %v2718_v9 = vld [vmem:[#allocation5 + $0x138] sm:$0xf]  ;;  %v2726_v48 = vld [vmem:[#allocation5 + $0x140] sm:$0xf]  ;;  %v2840_v49 = vld [vmem:[#allocation5 + $0x148] sm:$0xf0] }
 0x4f8   :  { %1220 = vst [vmem:[#allocation2 + $0x3c] sm:$0xff] %v1217_v5  ;;  %v2842_v5 = vld [vmem:[#allocation5 + $0x158] sm:$0xf0] }
 0x4f9   :  { %v2915_v20 = vpop.eup %2914  ;;  %1221 = vst [vmem:[#allocation2 + $0x44] sm:$0xf] %v1218_v16  ;;  %v2839_v16 = vld [vmem:[#allocation5 + $0x140] sm:$0xf0] }
 0x4fa   :  { %v1271_v25 = vadd.f32 1.0, %v2915_v20  ;;  %v3732_v20 = vor.u32 %v2839_v16, %v2718_v9  ;;  %v3790_v9 = vor.u32 %v2840_v49, %v2726_v48  ;;  %v2835_v16 = vld [vmem:[#allocation5 + $0x124] sm:$0xf] }
 0x4fb   :  { %v1202_v34 = vpop.f32.mrf.mxu2  ;;  %v2651_v49 = vld [vmem:[%s4074_s0 + $0x5c] sm:$0xf] }
 0x4fc   :  { %2916 = vrcp.f32 %v1271_v25  ;;  %v1215_v37 = vpop.f32.mrf.mxu3  ;;  %v1283_v40 = vand.u32 2147483648, %v1271_v25  ;;  %v1281_v36 = vand.u32 2147483647, %v1271_v25  ;;  %vm1277_vm1 = vweird.f32 %v1271_v25 }
 0x4fd   :  { %v1250_v43 = vpop.f32.mrf.mxu1  ;;  %v2694_v37 = vld [vmem:[#allocation5 + $0x108] sm:$0xf] }
 0x4fe   :  { %v1287_v50 = vadd.f32 %v1250_v43, %v1226_v28  ;;  %v1284_v12 = vor.u32 1.1754944e-38, %v1283_v40  ;;  %vm1282_vm3 = vcmp.eq.f32.partialorder %v1281_v36, 8.507059e+37  ;;  %v2836_v28 = vld [vmem:[#allocation5 + $0x128] sm:$0xf0]  ;;  %v2833_v43 = vld [vmem:[#allocation5 + $0x110] sm:$0xf0] }
 0x500   :  { %v2648_v29 = vmul.f32 -1.442695, %v1287_v50  ;;  %v2682_v50 = vld [vmem:[#allocation5 + $0xf0] sm:$0xf] }
 0x502   :  { %v2917_v56 = vpop.eup %2916  ;;  %2918 = vpow2.f32 %v2648_v29  ;;  %v2830_v29 = vld [vmem:[#allocation5 + $0xf8] sm:$0xf0] }
 0x503   :  { %v1263_v24 = vpop.f32.mrf.mxu2  ;;  %v1273_v15 = vmul.f32 %v2917_v56, %v1271_v25  ;;  %vm1278_vm0 = vweird.f32 %v2917_v56  ;;  %v2706_v25 = vld [vmem:[#allocation5 + $0x120] sm:$0xf] }
 0x504   :  { %vm1279_vm2 = vmor %vm1277_vm1, %vm1278_vm0  ;;  %v1307_v8 = vadd.f32 %v3582_v47, %v1263_v24  ;;  %v3736_v34 = vor.u32 %v2836_v28, %v2706_v25  ;;  %v2708_v25 = vld [vmem:[#allocation5 + $0x12c] sm:$0xf0] }
 0x505   :  { %v1274_v54 = vsub.f32 1.0, %v1273_v15  ;;  %v1252_v59 = vpop.f32.mrf.mxu1  ;;  %v2658_v15 = vld [vmem:[#allocation5 + $0xc0] sm:$0xf] }
 0x507   :  { %v1275_v32 = vmul.f32 %v2917_v56, %v1274_v54 }
 0x508   :  { %v2919_v60 = vpop.eup %2918 }
 0x509   :  { %v1291_v33 = vadd.f32 1.0, %v2919_v60  ;;  %v1276_v1 = vadd.f32 %v2917_v56, %v1275_v32 }
 0x50b   :  { %2920 = vrcp.f32 %v1291_v33  ;;  %v1265_v46 = vpop.f32.mrf.mxu2  ;;  %v1280_v6 = vsel %vm1279_vm2, %v2917_v56, %v1276_v1  ;;  %v1303_v11 = vand.u32 2147483648, %v1291_v33  ;;  %v1301_v19 = vand.u32 2147483647, %v1291_v33  ;;  %v2670_v56 = vld [vmem:[#allocation5 + $0xd8] sm:$0xf] }
 0x50c   :  { %v1285_v21 = vsel %vm1282_vm3, %v1284_v12, %v1280_v6  ;;  %vm1297_vm5 = vweird.f32 %v1291_v33 }
 0x50d   :  { %v1308_v55 = vmul.f32 %v1307_v8, %v1285_v21  ;;  %v1304_v26 = vor.u32 1.1754944e-38, %v1303_v11  ;;  %vm1302_vm7 = vcmp.eq.f32.partialorder %v1301_v19, 8.507059e+37  ;;  %v2844_v8 = vld [vmem:[#allocation5 + $0x16c] sm:$0xf]  ;;  %v2841_v19 = vld [vmem:[#allocation5 + $0x154] sm:$0xf] }
 0x50f   :  { %v1309_v7 = vadd.f32 %v1308_v55, %v1227_v63  ;;  %v2744_v63 = vld [vmem:[#allocation5 + $0x174] sm:$0xf0]  ;;  %v2750_v55 = vld [vmem:[#allocation5 + $0x170] sm:$0xf] }
 0x511   :  { %v2921_v13 = vpop.eup %2920  ;;  %2922 = vtanh.f32 %v1309_v7  ;;  %v2846_v7 = vld [vmem:[#allocation5 + $0x178] sm:$0xf0] }
 0x512   :  { %v1293_v3 = vmul.f32 %v2921_v13, %v1291_v33  ;;  %vm1298_vm4 = vweird.f32 %v2921_v13  ;;  %v3774_v11 = vor.u32 %v2846_v7, %v2750_v55 }
 0x513   :  { %vm1299_vm6 = vmor %vm1297_vm5, %vm1298_vm4 }
 0x514   :  { %v1294_v10 = vsub.f32 1.0, %v1293_v3  ;;  %v3772_v3 = vor.u32 %v2844_v8, %v2744_v63  ;;  %v2831_v63 = vld [vmem:[#allocation5 + $0x100] sm:$0xf0] }
 0x516   :  { %v1295_v18 = vmul.f32 %v2921_v13, %v1294_v10 }
 0x517   :  { %v2923_v39 = vpop.eup %2922 }
 0x518   :  { %v1296_v22 = vadd.f32 %v2921_v13, %v1295_v18 }
 0x51a   :  { %v1300_v30 = vsel %vm1299_vm6, %v2921_v13, %v1296_v22  ;;  %v2732_v22 = vld [vmem:[#allocation5 + $0x15c] sm:$0xf0] }
 0x51b   :  { %v1305_v31 = vsel %vm1302_vm7, %v1304_v26, %v1300_v30  ;;  %v2738_v26 = vld [vmem:[#allocation5 + $0x158] sm:$0xf]  ;;  %v3781_v30 = vor.u32 %v2841_v19, %v2732_v22  ;;  %v2672_v19 = vld [vmem:[#allocation5 + $0xe4] sm:$0xf0] }
 0x51c   :  { %v1311_v35 = vsub.f32 1.0, %v1305_v31  ;;  %v1313_v44 = vmul.f32 %v1305_v31, %v3652_v61  ;;  %v3728_v61 = vor.u32 %v2842_v5, %v2730_v4  ;;  %v2843_v31 = vld [vmem:[#allocation5 + $0x160] sm:$0xf0] }
 0x51e   :  { %v1312_v42 = vmul.f32 %v2923_v39, %v1311_v35  ;;  %v2838_v35 = vld [vmem:[#allocation5 + $0x13c] sm:$0xf]  ;;  %v2720_v39 = vld [vmem:[#allocation5 + $0x144] sm:$0xf0] }
 0x51f   :  { %v3786_v5 = vor.u32 %v2838_v35, %v2720_v39  ;;  %v2828_v35 = vld [vmem:[#allocation5 + $0xe8] sm:$0xf0] }
 0x520   :  { %v3718_v57 = vadd.f32 %v1313_v44, %v1312_v42  ;;  %v3783_v44 = vor.u32 %v2843_v31, %v2738_v26  ;;  %v2678_v31 = vld [vmem:[#allocation5 + $0xe0] sm:$0xf] }
 0x522   :  { %v1315_v58 = vpack.c.bf16 %v3718_v57, %v3718_v57 }
 0x524   :  { %2649 = vst [vmem:[%s4079_s5 + $0x18] sm:$0xf] %v1315_v58  ;;  %1326 = vmatmul.bf16.vlgmr.msrb.gmra.mxu3 %v1315_v58  ;;  %1339 = vmatmul.bf16.vlgmr.msra.gmra.mxu0 %v1315_v58 }
 0x525   :  { %1352 = vmatmul.bf16.vlgmr.msra.gmra.mxu1 %v1315_v58  ;;  %1376 = vmatmul.bf16.vlgmr.msra.gmra.mxu2 %v1315_v58 }
 0x526   :  { %1673 = vmatpush.bf16.msra.mxu0 %v3722_v2  ;;  %1484 = vmatpush.bf16.msrb.mxu3 %v3217_v51  ;;  %v3740_v51 = vor.u32 %v2833_v43, %v2694_v37  ;;  %v2714_v37 = vld [vmem:[#allocation5 + $0x128] sm:$0xf]  ;;  %v2837_v43 = vld [vmem:[#allocation5 + $0x130] sm:$0xf0] }
 0x527   :  { %1686 = vmatpush.bf16.msra.mxu1 %v3772_v3  ;;  %1699 = vmatpush.bf16.msra.mxu2 %v3774_v11 }
 0x52a   :  { %1674 = vmatpush.bf16.msra.mxu0 %v3728_v61  ;;  %1485 = vmatpush.bf16.msrb.mxu3 %v3227_v0  ;;  %v3744_v0 = vor.u32 %v2830_v29, %v2682_v50 }
 0x52b   :  { %1687 = vmatpush.bf16.msra.mxu1 %v3781_v30  ;;  %1700 = vmatpush.bf16.msra.mxu2 %v3783_v44 }
 0x52e   :  { %1675 = vmatpush.bf16.msra.mxu0 %v3732_v20  ;;  %1486 = vmatpush.bf16.msrb.mxu3 %v3237_v23  ;;  %v2827_v23 = vld [vmem:[#allocation5 + $0xe0] sm:$0xf0] }
 0x52f   :  { %v3748_v24 = vor.u32 %v2827_v23, %v2670_v56  ;;  %1688 = vmatpush.bf16.msra.mxu1 %v3786_v5  ;;  %v3793_v56 = vor.u32 %v2835_v16, %v2708_v25  ;;  %1701 = vmatpush.bf16.msra.mxu2 %v3790_v9  ;;  %v2823_v16 = vld [vmem:[#allocation5 + $0xc4] sm:$0xf]  ;;  %v2660_v25 = vld [vmem:[#allocation5 + $0xcc] sm:$0xf0] }
 0x532   :  { %1676 = vmatpush.bf16.msra.mxu0 %v3736_v34  ;;  %1487 = vmatpush.bf16.msrb.mxu3 %v3250_v45  ;;  %v2824_v45 = vld [vmem:[#allocation5 + $0xc8] sm:$0xf0] }
 0x533   :  { %v3752_v54 = vor.u32 %v2824_v45, %v2658_v15  ;;  %v3797_v15 = vor.u32 %v2837_v43, %v2714_v37  ;;  %1689 = vmatpush.bf16.msra.mxu1 %v3793_v56  ;;  %v2666_v37 = vld [vmem:[#allocation5 + $0xc8] sm:$0xf]  ;;  %v2825_v43 = vld [vmem:[#allocation5 + $0xd0] sm:$0xf0] }
 0x534   :  { %1389 = vmatmul.bf16.vlgmr.msra.gmra.mxu3 %v1315_v58  ;;  %1402 = vmatmul.bf16.vlgmr.msrb.gmra.mxu0 %v1315_v58 }
 0x535   :  { %1702 = vmatpush.bf16.msra.mxu2 %v3797_v15 }
 0x536   :  { %1677 = vmatpush.bf16.msra.mxu0 %v3740_v51  ;;  %1488 = vmatpush.bf16.msrb.mxu3 %v3260_v14  ;;  %v4173_v14 = vmov 0  }
 0x53a   :  { %1678 = vmatpush.bf16.msra.mxu0 %v3744_v0  ;;  %1489 = vmatpush.bf16.msrb.mxu3 %v3267_v38 }
 0x53e   :  { %1679 = vmatpush.bf16.msra.mxu0 %v3748_v24  ;;  %1490 = vmatpush.bf16.msrb.mxu3 %v3273_v52 }
 0x542   :  { %1680 = vmatpush.bf16.msra.mxu0 %v3752_v54  ;;  %1491 = vmatpush.bf16.msrb.mxu3 %v3278_v17  ;;  %v2650_v17 = vld [vmem:[%s4074_s0 + $0x54] sm:$0xff] }
 0x543   :  { %v1365_v40 = vunpack.c.l.bf16 %v2650_v17  ;;  %v1366_v4 = vunpack.c.h.bf16 %v2650_v17  ;;  %v2696_v17 = vld [vmem:[#allocation5 + $0x114] sm:$0xf0] }
 0x545   :  { %1681 = vmatmul.bf16.vlgmr.msra.gmra.mxu0 %v4173_v14 }
 0x546   :  { %1767 = vmatpush.bf16.msra.mxu3 %v3722_v2  ;;  %1780 = vmatpush.bf16.msrb.mxu0 %v3772_v3 }
 0x54a   :  { %1768 = vmatpush.bf16.msra.mxu3 %v3728_v61  ;;  %1781 = vmatpush.bf16.msrb.mxu0 %v3781_v30 }
 0x54e   :  { %1769 = vmatpush.bf16.msra.mxu3 %v3732_v20  ;;  %1782 = vmatpush.bf16.msrb.mxu0 %v3786_v5 }
 0x552   :  { %1770 = vmatpush.bf16.msra.mxu3 %v3736_v34  ;;  %1783 = vmatpush.bf16.msrb.mxu0 %v3793_v56 }
 0x556   :  { %1771 = vmatpush.bf16.msra.mxu3 %v3740_v51 }
 0x55a   :  { %1772 = vmatpush.bf16.msra.mxu3 %v3744_v0 }
 0x55e   :  { %1773 = vmatpush.bf16.msra.mxu3 %v3748_v24 }
 0x562   :  { %1774 = vmatpush.bf16.msra.mxu3 %v3752_v54 }
 0x5a1   :  { %v1340_v38 = vpop.f32.mrf.mxu0 }
 0x5a2   :  { %v1353_v52 = vpop.f32.mrf.mxu1  ;;  %v1341_v36 = vadd.f32 %v1340_v38, %v4171_v53 }
 0x5a3   :  { %v1354_v59 = vadd.f32 %v1353_v52, %v4172_v62  ;;  %v2832_v52 = vld [vmem:[#allocation5 + $0x10c] sm:$0xf] }
 0x5a5   :  { %v1358_v32 = vpack.c.bf16 %v1354_v59, %v1354_v59 }
 0x5a7   :  { %1361 = vst [vmem:[#allocation2 + $0x50] sm:$0xf] %v1358_v32  ;;  %v1327_v60 = vpop.f32.mrf.mxu3 }
 0x5a8   :  { %v1328_v33 = vadd.f32 %v1327_v60, %v4162_v41  ;;  %v1377_v1 = vpop.f32.mrf.mxu2  ;;  %v3802_v60 = vor.u32 %v2832_v52, %v2696_v17 }
 0x5a9   :  { %v1407_v12 = vadd.f32 %v1377_v1, %v1365_v40  ;;  %v1342_v46 = vpop.f32.mrf.mxu0 }
 0x5aa   :  { %v1357_v27 = vpack.c.bf16 %v1341_v36, %v1328_v33  ;;  %v1355_v6 = vpop.f32.mrf.mxu1  ;;  %v2702_v36 = vld [vmem:[#allocation5 + $0x110] sm:$0xf]  ;;  %v2834_v33 = vld [vmem:[#allocation5 + $0x118] sm:$0xf0]  ;;  %v2684_v46 = vld [vmem:[#allocation5 + $0xfc] sm:$0xf0]  ;;  %1690 = vmatpush.bf16.msra.mxu1 %v3802_v60  ;;  %1784 = vmatpush.bf16.msrb.mxu0 %v3802_v60 }
 0x5ab   :  { %v2652_v21 = vmul.f32 -1.442695, %v1407_v12  ;;  %v3804_v1 = vor.u32 %v2834_v33, %v2702_v36  ;;  %v2829_v12 = vld [vmem:[#allocation5 + $0xf4] sm:$0xf] }
 0x5ac   :  { %1360 = vst [vmem:[#allocation2 + $0x48] sm:$0xff] %v1357_v27  ;;  %v2690_v27 = vld [vmem:[#allocation5 + $0xf8] sm:$0xf]  ;;  %v3807_v8 = vor.u32 %v2829_v12, %v2684_v46 }
 0x5ad   :  { %2924 = vpow2.f32 %v2652_v21  ;;  %1703 = vmatpush.bf16.msra.mxu2 %v3804_v1  ;;  %v3813_v7 = vor.u32 %v2831_v63, %v2690_v27 }
 0x5ae   :  { %1691 = vmatpush.bf16.msra.mxu1 %v3807_v8  ;;  %1785 = vmatpush.bf16.msrb.mxu0 %v3807_v8 }
 0x5af   :  { %v1329_v13 = vpop.f32.mrf.mxu3 }
 0x5b0   :  { %v1379_v10 = vpop.f32.mrf.mxu2 }
 0x5b1   :  { %v3776_v18 = vpop.f32.mrf.mxu0  ;;  %v2826_v10 = vld [vmem:[#allocation5 + $0xdc] sm:$0xf]  ;;  %1704 = vmatpush.bf16.msra.mxu2 %v3813_v7 }
 0x5b2   :  { %v3817_v48 = vor.u32 %v2826_v10, %v2672_v19 }
 0x5b3   :  { %v2925_v42 = vpop.eup %2924 }
 0x5b4   :  { %v1411_v58 = vadd.f32 1.0, %v2925_v42  ;;  %1692 = vmatpush.bf16.msra.mxu1 %v3817_v48  ;;  %1786 = vmatpush.bf16.msrb.mxu0 %v3817_v48 }
 0x5b6   :  { %2926 = vrcp.f32 %v1411_v58  ;;  %v1423_v32 = vand.u32 2147483648, %v1411_v58  ;;  %v1421_v21 = vand.u32 2147483647, %v1411_v58  ;;  %vm1417_vm9 = vweird.f32 %v1411_v58 }
 0x5b7   :  { %v1390_v28 = vpop.f32.mrf.mxu3 }
 0x5b8   :  { %v1427_v50 = vadd.f32 %v1390_v28, %v1366_v4  ;;  %v1424_v39 = vor.u32 1.1754944e-38, %v1423_v32  ;;  %vm1422_vm11 = vcmp.eq.f32.partialorder %v1421_v21, 8.507059e+37  ;;  %v3824_v4 = vor.u32 %v2828_v35, %v2678_v31 }
 0x5b9   :  { %v1405_v29 = vpop.f32.mrf.mxu0  ;;  %v1447_v28 = vadd.f32 %v3582_v47, %v3776_v18 }
 0x5ba   :  { %v2653_v23 = vmul.f32 -1.442695, %v1427_v50  ;;  %v1367_v50 = vunpack.c.l.bf16 %v2651_v49  ;;  %1705 = vmatpush.bf16.msra.mxu2 %v3824_v4 }
 0x5bc   :  { %v2927_v45 = vpop.eup %2926  ;;  %2928 = vpow2.f32 %v2653_v23  ;;  %v3829_v23 = vor.u32 %v2823_v16, %v2660_v25 }
 0x5bd   :  { %v1413_v38 = vmul.f32 %v2927_v45, %v1411_v58  ;;  %vm1418_vm8 = vweird.f32 %v2927_v45 }
 0x5be   :  { %vm1419_vm10 = vmor %vm1417_vm9, %vm1418_vm8  ;;  %1693 = vmatpush.bf16.msra.mxu1 %v3829_v23  ;;  %1787 = vmatpush.bf16.msrb.mxu0 %v3829_v23 }
 0x5bf   :  { %v1414_v59 = vsub.f32 1.0, %v1413_v38  ;;  %v1392_v40 = vpop.f32.mrf.mxu3 }
 0x5c1   :  { %v1415_v6 = vmul.f32 %v2927_v45, %v1414_v59 }
 0x5c2   :  { %v2929_v55 = vpop.eup %2928  ;;  %v3810_v13 = vpop.f32.mrf.mxu0  ;;  %1887 = vmatpush.bf16.msra.mxu0 %v3774_v11 }
 0x5c3   :  { %v1416_v22 = vadd.f32 %v2927_v45, %v1415_v6  ;;  %v1431_v26 = vadd.f32 1.0, %v2929_v55 }
 0x5c5   :  { %v1420_v42 = vsel %vm1419_vm10, %v2927_v45, %v1416_v22  ;;  %2930 = vrcp.f32 %v1431_v26  ;;  %v3833_v45 = vor.u32 %v2825_v43, %v2666_v37  ;;  %v1443_v18 = vand.u32 2147483648, %v1431_v26 }
 0x5c6   :  { %v1425_v58 = vsel %vm1422_vm11, %v1424_v39, %v1420_v42  ;;  %v1441_v40 = vand.u32 2147483647, %v1431_v26  ;;  %vm1437_vm13 = vweird.f32 %v1431_v26  ;;  %1888 = vmatpush.bf16.msra.mxu0 %v3783_v44 }
 0x5c7   :  { %v1448_v29 = vmul.f32 %v1447_v28, %v1425_v58  ;;  %1706 = vmatpush.bf16.msra.mxu2 %v3833_v45  ;;  %v1444_v33 = vor.u32 1.1754944e-38, %v1443_v18 }
 0x5c8   :  { %vm1442_vm15 = vcmp.eq.f32.partialorder %v1441_v40, 8.507059e+37 }
 0x5c9   :  { %v1449_v59 = vadd.f32 %v1448_v29, %v1367_v50 }
 0x5ca   :  { %v1684_v38 = vpop.f32.mrf.mxu0  ;;  %1889 = vmatpush.bf16.msra.mxu0 %v3790_v9 }
 0x5cb   :  { %v2931_v52 = vpop.eup %2930  ;;  %2932 = vtanh.f32 %v1449_v59 }
 0x5cc   :  { %v1433_v17 = vmul.f32 %v2931_v52, %v1431_v26  ;;  %vm1438_vm12 = vweird.f32 %v2931_v52 }
 0x5cd   :  { %vm1439_vm14 = vmor %vm1437_vm13, %vm1438_vm12 }
 0x5ce   :  { %v1434_v47 = vsub.f32 1.0, %v1433_v17  ;;  %1890 = vmatpush.bf16.msra.mxu0 %v3797_v15 }
 0x5d0   :  { %v1435_v32 = vmul.f32 %v2931_v52, %v1434_v47 }
 0x5d1   :  { %v2933_v6 = vpop.eup %2932 }
 0x5d2   :  { %v1436_v36 = vadd.f32 %v2931_v52, %v1435_v32  ;;  %1891 = vmatpush.bf16.msra.mxu0 %v3804_v1 }
 0x5d4   :  { %v1440_v12 = vsel %vm1439_vm14, %v2931_v52, %v1436_v36 }
 0x5d5   :  { %v1445_v46 = vsel %vm1442_vm15, %v1444_v33, %v1440_v12 }
 0x5d6   :  { %v1451_v27 = vsub.f32 1.0, %v1445_v46  ;;  %v1453_v63 = vmul.f32 %v1445_v46, %v3718_v57  ;;  %1892 = vmatpush.bf16.msra.mxu0 %v3813_v7  ;;  %v1540_v57 = vld [vmem:[#allocation2] sm:$0xff] }
 0x5d7   :  { %v1543_v38 = vunpack.c.h.bf16 %v1540_v57 }
 0x5d8   :  { %v1452_v21 = vmul.f32 %v2933_v6, %v1451_v27 }
 0x5da   :  { %v1454_v55 = vadd.f32 %v1453_v63, %v1452_v21  ;;  %1893 = vmatpush.bf16.msra.mxu0 %v3824_v4  ;;  %v1541_v63 = vld [vmem:[#allocation2 + $0x8] sm:$0xf] }
 0x5dc   :  { %v1455_v10 = vpack.c.bf16 %v1454_v55, %v1454_v55 }
 0x5de   :  { %2654 = vst [vmem:[%s4079_s5 + $0x1c] sm:$0xf] %v1455_v10  ;;  %1466 = vmatmul.bf16.vlgmr.msrb.gmra.mxu1 %v1455_v10  ;;  %1479 = vmatmul.bf16.vlgmr.msrb.gmra.mxu2 %v1455_v10 }
 0x5df   :  { %1492 = vmatmul.bf16.vlgmr.msrb.gmra.mxu3 %v1455_v10  ;;  %1793 = vmatpush.bf16.msrb.mxu1 %v3774_v11 }
 0x5e0   :  { %1861 = vmatpush.bf16.msrb.mxu2 %v3722_v2  ;;  %1874 = vmatpush.bf16.msrb.mxu3 %v3772_v3 }
 0x5e1   :  { %1894 = vmatpush.bf16.msra.mxu0 %v3833_v45 }
 0x5e3   :  { %1794 = vmatpush.bf16.msrb.mxu1 %v3783_v44 }
 0x5e4   :  { %1862 = vmatpush.bf16.msrb.mxu2 %v3728_v61  ;;  %1875 = vmatpush.bf16.msrb.mxu3 %v3781_v30 }
 0x5e7   :  { %1795 = vmatpush.bf16.msrb.mxu1 %v3790_v9 }
 0x5e8   :  { %1863 = vmatpush.bf16.msrb.mxu2 %v3732_v20  ;;  %1876 = vmatpush.bf16.msrb.mxu3 %v3786_v5 }
 0x5eb   :  { %1796 = vmatpush.bf16.msrb.mxu1 %v3797_v15 }
 0x5ec   :  { %1864 = vmatpush.bf16.msrb.mxu2 %v3736_v34  ;;  %1877 = vmatpush.bf16.msrb.mxu3 %v3793_v56 }
 0x5ee   :  { %1694 = vmatmul.bf16.vlgmr.msra.gmra.mxu1 %v4173_v14  ;;  %1707 = vmatmul.bf16.vlgmr.msra.gmra.mxu2 %v4173_v14  ;;  %v1542_v14 = vunpack.c.l.bf16 %v1540_v57 }
 0x5ef   :  { %1797 = vmatpush.bf16.msrb.mxu1 %v3804_v1 }
 0x5f0   :  { %1865 = vmatpush.bf16.msrb.mxu2 %v3740_v51  ;;  %1878 = vmatpush.bf16.msrb.mxu3 %v3802_v60  ;;  %v1712_v19 = vadd.f32 %v3810_v13, %v1542_v14  ;;  %v1544_v14 = vunpack.c.l.bf16 %v1541_v63 }
 0x5f2   :  { %v2752_v22 = vmul.f32 -1.442695, %v1712_v19 }
 0x5f3   :  { %1798 = vmatpush.bf16.msrb.mxu1 %v3813_v7 }
 0x5f4   :  { %1866 = vmatpush.bf16.msrb.mxu2 %v3744_v0  ;;  %1879 = vmatpush.bf16.msrb.mxu3 %v3807_v8  ;;  %2934 = vpow2.f32 %v2752_v22 }
 0x5f7   :  { %1799 = vmatpush.bf16.msrb.mxu1 %v3824_v4 }
 0x5f8   :  { %1867 = vmatpush.bf16.msrb.mxu2 %v3748_v24  ;;  %1880 = vmatpush.bf16.msrb.mxu3 %v3817_v48 }
 0x5fa   :  { %v2935_v26 = vpop.eup %2934 }
 0x5fb   :  { %1800 = vmatpush.bf16.msrb.mxu1 %v3833_v45  ;;  %v1716_v35 = vadd.f32 1.0, %v2935_v26 }
 0x5fc   :  { %1868 = vmatpush.bf16.msrb.mxu2 %v3752_v54  ;;  %1881 = vmatpush.bf16.msrb.mxu3 %v3829_v23 }
 0x5fd   :  { %2936 = vrcp.f32 %v1716_v35  ;;  %v1728_v36 = vand.u32 2147483648, %v1716_v35  ;;  %vm1722_vm1 = vweird.f32 %v1716_v35  ;;  %v1726_v12 = vand.u32 2147483647, %v1716_v35 }
 0x5ff   :  { %1955 = vmatpush.bf16.msra.mxu1 %v3722_v2  ;;  %v1729_v21 = vor.u32 1.1754944e-38, %v1728_v36  ;;  %vm1727_vm3 = vcmp.eq.f32.partialorder %v1726_v12, 8.507059e+37 }
 0x600   :  { %1968 = vmatpush.bf16.msra.mxu2 %v3772_v3 }
 0x603   :  { %1956 = vmatpush.bf16.msra.mxu1 %v3728_v61  ;;  %v2937_v43 = vpop.eup %2936 }
 0x604   :  { %1969 = vmatpush.bf16.msra.mxu2 %v3781_v30  ;;  %v1718_v50 = vmul.f32 %v2937_v43, %v1716_v35  ;;  %vm1723_vm0 = vweird.f32 %v2937_v43 }
 0x605   :  { %vm1724_vm2 = vmor %vm1722_vm1, %vm1723_vm0 }
 0x606   :  { %v1719_v59 = vsub.f32 1.0, %v1718_v50 }
 0x607   :  { %1957 = vmatpush.bf16.msra.mxu1 %v3732_v20 }
 0x608   :  { %1970 = vmatpush.bf16.msra.mxu2 %v3786_v5 }
 0x60b   :  { %1958 = vmatpush.bf16.msra.mxu1 %v3736_v34 }
 0x60c   :  { %1971 = vmatpush.bf16.msra.mxu2 %v3793_v56 }
 0x60f   :  { %1959 = vmatpush.bf16.msra.mxu1 %v3740_v51 }
 0x610   :  { %1972 = vmatpush.bf16.msra.mxu2 %v3802_v60 }
 0x613   :  { %1960 = vmatpush.bf16.msra.mxu1 %v3744_v0 }
 0x614   :  { %1973 = vmatpush.bf16.msra.mxu2 %v3807_v8 }
 0x617   :  { %1961 = vmatpush.bf16.msra.mxu1 %v3748_v24 }
 0x618   :  { %1974 = vmatpush.bf16.msra.mxu2 %v3817_v48 }
 0x61b   :  { %1962 = vmatpush.bf16.msra.mxu1 %v3752_v54 }
 0x61c   :  { %1975 = vmatpush.bf16.msra.mxu2 %v3829_v23 }
 0x65b   :  { %v1467_v31 = vpop.f32.mrf.mxu1 }
 0x65c   :  { %v1468_v42 = vadd.f32 %v1467_v31, %v4162_v41 }
 0x661   :  { %v1480_v39 = vpop.f32.mrf.mxu2 }
 0x662   :  { %v1481_v49 = vadd.f32 %v1480_v39, %v4171_v53  ;;  %v1493_v58 = vpop.f32.mrf.mxu3  ;;  %v1720_v53 = vmul.f32 %v2937_v43, %v1719_v59 }
 0x663   :  { %v1494_v16 = vadd.f32 %v1493_v58, %v4172_v62  ;;  %v1469_v25 = vpop.f32.mrf.mxu1  ;;  %v3899_v62 = vld [vmem:[%s4078_s4 + $0x1] ss:$0 sm:$0xff] }
 0x664   :  { %v1497_v28 = vpack.c.bf16 %v1481_v49, %v1468_v42  ;;  %v1721_v32 = vadd.f32 %v2937_v43, %v1720_v53 }
 0x665   :  { %v1498_v37 = vpack.c.bf16 %v1494_v16, %v1494_v16 }
 0x666   :  { %1500 = vst [vmem:[#allocation2 + $0x54] sm:$0xff] %v1497_v28  ;;  %v1725_v46 = vsel %vm1724_vm2, %v2937_v43, %v1721_v32 }
 0x667   :  { %1501 = vst [vmem:[#allocation2 + $0x5c] sm:$0xf] %v1498_v37  ;;  %v1730_v55 = vsel %vm1727_vm3, %v1729_v21, %v1725_v46 }
 0x669   :  { %v1482_v13 = vpop.f32.mrf.mxu2 }
 0x66a   :  { %v1495_v29 = vpop.f32.mrf.mxu3 }
 0x66b   :  { %v1695_v52 = vpop.f32.mrf.mxu1  ;;  %v1762_v29 = vld [vmem:[#allocation2 + $0xc] sm:$0xff] }
 0x66c   :  { %v1732_v17 = vadd.f32 %v1695_v52, %v1543_v38  ;;  %v1765_v38 = vunpack.c.h.bf16 %v1762_v29 }
 0x66e   :  { %v2753_v47 = vmul.f32 -1.442695, %v1732_v17 }
 0x670   :  { %2938 = vpow2.f32 %v2753_v47 }
 0x671   :  { %v1708_v41 = vpop.f32.mrf.mxu2 }
 0x672   :  { %v1752_v27 = vadd.f32 %v3899_v62, %v1708_v41  ;;  %v1764_v41 = vunpack.c.l.bf16 %v1762_v29 }
 0x673   :  { %v1697_v18 = vpop.f32.mrf.mxu1 }
 0x674   :  { %v1753_v10 = vmul.f32 %v1752_v27, %v1730_v55 }
 0x676   :  { %v2939_v40 = vpop.eup %2938  ;;  %v1754_v22 = vadd.f32 %v1753_v10, %v1544_v14 }
 0x677   :  { %v1736_v33 = vadd.f32 1.0, %v2939_v40 }
 0x679   :  { %2940 = vrcp.f32 %v1736_v33  ;;  %v1710_v6 = vpop.f32.mrf.mxu2  ;;  %v1748_v31 = vand.u32 2147483648, %v1736_v33  ;;  %v1746_v35 = vand.u32 2147483647, %v1736_v33  ;;  %vm1742_vm5 = vweird.f32 %v1736_v33 }
 0x67a   :  { %2942 = vtanh.f32 %v1754_v22 }
 0x67b   :  { %v1749_v49 = vor.u32 1.1754944e-38, %v1748_v31  ;;  %vm1747_vm7 = vcmp.eq.f32.partialorder %v1746_v35, 8.507059e+37  ;;  %v1763_v35 = vld [vmem:[#allocation2 + $0x14] sm:$0xf] }
 0x67f   :  { %v2941_v57 = vpop.eup %2940 }
 0x680   :  { %v1738_v19 = vmul.f32 %v2941_v57, %v1736_v33  ;;  %vm1743_vm4 = vweird.f32 %v2941_v57  ;;  %v2943_v28 = vpop.eup %2942 }
 0x681   :  { %vm1744_vm6 = vmor %vm1742_vm5, %vm1743_vm4 }
 0x682   :  { %v1739_v26 = vsub.f32 1.0, %v1738_v19 }
 0x684   :  { %v1740_v39 = vmul.f32 %v2941_v57, %v1739_v26 }
 0x686   :  { %v1741_v42 = vadd.f32 %v2941_v57, %v1740_v39 }
 0x688   :  { %v1745_v58 = vsel %vm1744_vm6, %v2941_v57, %v1741_v42 }
 0x689   :  { %v1750_v16 = vsel %vm1747_vm7, %v1749_v49, %v1745_v58 }
 0x68a   :  { %v1756_v25 = vsub.f32 1.0, %v1750_v16  ;;  %v1758_v43 = vmul.f32 0.0, %v1750_v16 }
 0x68c   :  { %v1757_v37 = vmul.f32 %v2943_v28, %v1756_v25 }
 0x68e   :  { %v3902_v13 = vadd.f32 %v1758_v43, %v1757_v37  ;;  %v1766_v37 = vunpack.c.l.bf16 %v1763_v35 }
 0x690   :  { %v1760_v50 = vpack.c.bf16 %v3902_v13, %v3902_v13 }
 0x692   :  { %1761 = vst [vmem:[%s4079_s5] sm:$0xf] %v1760_v50  ;;  %1775 = vmatmul.bf16.vlgmr.msra.gmra.mxu3 %v1760_v50  ;;  %1788 = vmatmul.bf16.vlgmr.msrb.gmra.mxu0 %v1760_v50 }
 0x693   :  { %1801 = vmatmul.bf16.vlgmr.msrb.gmra.mxu1 %v1760_v50  ;;  %1981 = vmatpush.bf16.msra.mxu3 %v3774_v11 }
 0x694   :  { %2049 = vmatpush.bf16.msrb.mxu0 %v3722_v2  ;;  %2062 = vmatpush.bf16.msrb.mxu1 %v3772_v3 }
 0x697   :  { %1982 = vmatpush.bf16.msra.mxu3 %v3783_v44 }
 0x698   :  { %2050 = vmatpush.bf16.msrb.mxu0 %v3728_v61  ;;  %2063 = vmatpush.bf16.msrb.mxu1 %v3781_v30 }
 0x69b   :  { %1983 = vmatpush.bf16.msra.mxu3 %v3790_v9 }
 0x69c   :  { %2051 = vmatpush.bf16.msrb.mxu0 %v3732_v20  ;;  %2064 = vmatpush.bf16.msrb.mxu1 %v3786_v5 }
 0x69f   :  { %1984 = vmatpush.bf16.msra.mxu3 %v3797_v15 }
 0x6a0   :  { %2052 = vmatpush.bf16.msrb.mxu0 %v3736_v34  ;;  %2065 = vmatpush.bf16.msrb.mxu1 %v3793_v56 }
 0x6a3   :  { %1985 = vmatpush.bf16.msra.mxu3 %v3804_v1 }
 0x6a4   :  { %2053 = vmatpush.bf16.msrb.mxu0 %v3740_v51  ;;  %2066 = vmatpush.bf16.msrb.mxu1 %v3802_v60 }
 0x6a7   :  { %1986 = vmatpush.bf16.msra.mxu3 %v3813_v7 }
 0x6a8   :  { %2054 = vmatpush.bf16.msrb.mxu0 %v3744_v0  ;;  %2067 = vmatpush.bf16.msrb.mxu1 %v3807_v8 }
 0x6ab   :  { %1987 = vmatpush.bf16.msra.mxu3 %v3824_v4 }
 0x6ac   :  { %2055 = vmatpush.bf16.msrb.mxu0 %v3748_v24  ;;  %2068 = vmatpush.bf16.msrb.mxu1 %v3817_v48 }
 0x6af   :  { %1988 = vmatpush.bf16.msra.mxu3 %v3833_v45 }
 0x6b0   :  { %2056 = vmatpush.bf16.msrb.mxu0 %v3752_v54  ;;  %2069 = vmatpush.bf16.msrb.mxu1 %v3829_v23 }
 0x70f   :  { %v1789_v52 = vpop.f32.mrf.mxu0 }
 0x710   :  { %v1826_v17 = vadd.f32 %v1789_v52, %v1765_v38  ;;  %v1802_v59 = vpop.f32.mrf.mxu1 }
 0x711   :  { %v1846_v49 = vadd.f32 %v3899_v62, %v1802_v59 }
 0x712   :  { %v2755_v47 = vmul.f32 -1.442695, %v1826_v17 }
 0x714   :  { %2944 = vpow2.f32 %v2755_v47 }
 0x715   :  { %v1776_v53 = vpop.f32.mrf.mxu3 }
 0x716   :  { %v1806_v18 = vadd.f32 %v1776_v53, %v1764_v41 }
 0x717   :  { %v1791_v32 = vpop.f32.mrf.mxu0 }
 0x718   :  { %v2754_v40 = vmul.f32 -1.442695, %v1806_v18  ;;  %v1804_v36 = vpop.f32.mrf.mxu1 }
 0x71a   :  { %v2945_v33 = vpop.eup %2944  ;;  %2946 = vpow2.f32 %v2754_v40  ;;  %v1856_v40 = vld [vmem:[#allocation2 + $0x18] sm:$0xff] }
 0x71b   :  { %v1830_v12 = vadd.f32 1.0, %v2945_v33  ;;  %v1858_v36 = vunpack.c.l.bf16 %v1856_v40  ;;  %v1859_v33 = vunpack.c.h.bf16 %v1856_v40 }
 0x71d   :  { %v1778_v46 = vpop.f32.mrf.mxu3  ;;  %2948 = vrcp.f32 %v1830_v12  ;;  %v1842_v28 = vand.u32 2147483648, %v1830_v12  ;;  %vm1836_vm13 = vweird.f32 %v1830_v12  ;;  %v1840_v50 = vand.u32 2147483647, %v1830_v12 }
 0x71f   :  { %v1843_v52 = vor.u32 1.1754944e-38, %v1842_v28  ;;  %vm1841_vm15 = vcmp.eq.f32.partialorder %v1840_v50, 8.507059e+37  ;;  %v1857_v50 = vld [vmem:[#allocation2 + $0x20] sm:$0xf] }
 0x720   :  { %v2947_v27 = vpop.eup %2946 }
 0x721   :  { %v1810_v6 = vadd.f32 1.0, %v2947_v27 }
 0x723   :  { %2950 = vrcp.f32 %v1810_v6  ;;  %v2949_v21 = vpop.eup %2948  ;;  %v1822_v19 = vand.u32 2147483648, %v1810_v6  ;;  %v1820_v26 = vand.u32 2147483647, %v1810_v6  ;;  %vm1816_vm9 = vweird.f32 %v1810_v6 }
 0x724   :  { %v1832_v63 = vmul.f32 %v2949_v21, %v1830_v12  ;;  %vm1837_vm12 = vweird.f32 %v2949_v21 }
 0x725   :  { %v1823_v42 = vor.u32 1.1754944e-38, %v1822_v19  ;;  %vm1821_vm11 = vcmp.eq.f32.partialorder %v1820_v26, 8.507059e+37  ;;  %vm1838_vm14 = vmor %vm1836_vm13, %vm1837_vm12 }
 0x726   :  { %v1833_v57 = vsub.f32 1.0, %v1832_v63 }
 0x728   :  { %v1834_v31 = vmul.f32 %v2949_v21, %v1833_v57 }
 0x729   :  { %v2951_v55 = vpop.eup %2950 }
 0x72a   :  { %v1812_v10 = vmul.f32 %v2951_v55, %v1810_v6  ;;  %vm1817_vm8 = vweird.f32 %v2951_v55  ;;  %v1835_v16 = vadd.f32 %v2949_v21, %v1834_v31 }
 0x72b   :  { %vm1818_vm10 = vmor %vm1816_vm9, %vm1817_vm8 }
 0x72c   :  { %v1813_v14 = vsub.f32 1.0, %v1812_v10  ;;  %v1839_v38 = vsel %vm1838_vm14, %v2949_v21, %v1835_v16 }
 0x72d   :  { %v1844_v17 = vsel %vm1841_vm15, %v1843_v52, %v1839_v38 }
 0x72e   :  { %v1814_v22 = vmul.f32 %v2951_v55, %v1813_v14  ;;  %v1850_v47 = vsub.f32 1.0, %v1844_v17  ;;  %v1852_v53 = vmul.f32 %v1844_v17, %v3902_v13 }
 0x730   :  { %v1815_v39 = vadd.f32 %v2951_v55, %v1814_v22 }
 0x732   :  { %v1819_v58 = vsel %vm1818_vm10, %v2951_v55, %v1815_v39 }
 0x733   :  { %v1824_v25 = vsel %vm1821_vm11, %v1823_v42, %v1819_v58 }
 0x734   :  { %v1847_v43 = vmul.f32 %v1846_v49, %v1824_v25 }
 0x736   :  { %v1848_v29 = vadd.f32 %v1847_v43, %v1766_v37 }
 0x738   :  { %2952 = vtanh.f32 %v1848_v29 }
 0x73e   :  { %v2953_v41 = vpop.eup %2952 }
 0x73f   :  { %v1851_v59 = vmul.f32 %v2953_v41, %v1850_v47  ;;  %v1860_v41 = vunpack.c.l.bf16 %v1857_v50 }
 0x741   :  { %v3935_v18 = vadd.f32 %v1852_v53, %v1851_v59 }
 0x743   :  { %v1854_v32 = vpack.c.bf16 %v3935_v18, %v3935_v18 }
 0x745   :  { %2756 = vst [vmem:[%s4079_s5 + $0x4] sm:$0xf] %v1854_v32  ;;  %1869 = vmatmul.bf16.vlgmr.msrb.gmra.mxu2 %v1854_v32  ;;  %1882 = vmatmul.bf16.vlgmr.msrb.gmra.mxu3 %v1854_v32 }
 0x746   :  { %1895 = vmatmul.bf16.vlgmr.msra.gmra.mxu0 %v1854_v32  ;;  %2075 = vmatpush.bf16.msrb.mxu2 %v3774_v11 }
 0x747   :  { %2143 = vmatpush.bf16.msrb.mxu3 %v3722_v2  ;;  %2156 = vmatpush.bf16.msra.mxu0 %v3772_v3 }
 0x74a   :  { %2076 = vmatpush.bf16.msrb.mxu2 %v3783_v44 }
 0x74b   :  { %2144 = vmatpush.bf16.msrb.mxu3 %v3728_v61  ;;  %2157 = vmatpush.bf16.msra.mxu0 %v3781_v30 }
 0x74e   :  { %2077 = vmatpush.bf16.msrb.mxu2 %v3790_v9 }
 0x74f   :  { %2145 = vmatpush.bf16.msrb.mxu3 %v3732_v20  ;;  %2158 = vmatpush.bf16.msra.mxu0 %v3786_v5 }
 0x752   :  { %2078 = vmatpush.bf16.msrb.mxu2 %v3797_v15 }
 0x753   :  { %2146 = vmatpush.bf16.msrb.mxu3 %v3736_v34  ;;  %2159 = vmatpush.bf16.msra.mxu0 %v3793_v56 }
 0x756   :  { %2079 = vmatpush.bf16.msrb.mxu2 %v3804_v1 }
 0x757   :  { %2147 = vmatpush.bf16.msrb.mxu3 %v3740_v51  ;;  %2160 = vmatpush.bf16.msra.mxu0 %v3802_v60 }
 0x75a   :  { %2080 = vmatpush.bf16.msrb.mxu2 %v3813_v7 }
 0x75b   :  { %2148 = vmatpush.bf16.msrb.mxu3 %v3744_v0  ;;  %2161 = vmatpush.bf16.msra.mxu0 %v3807_v8 }
 0x75e   :  { %2081 = vmatpush.bf16.msrb.mxu2 %v3824_v4 }
 0x75f   :  { %2149 = vmatpush.bf16.msrb.mxu3 %v3748_v24  ;;  %2162 = vmatpush.bf16.msra.mxu0 %v3817_v48 }
 0x762   :  { %2082 = vmatpush.bf16.msrb.mxu2 %v3833_v45 }
 0x763   :  { %2150 = vmatpush.bf16.msrb.mxu3 %v3752_v54  ;;  %2163 = vmatpush.bf16.msra.mxu0 %v3829_v23 }
 0x7c3   :  { %v1896_v13 = vpop.f32.mrf.mxu0 }
 0x7c4   :  { %v1940_v38 = vadd.f32 %v3899_v62, %v1896_v13 }
 0x7c8   :  { %v1870_v12 = vpop.f32.mrf.mxu2  ;;  %v1883_v46 = vpop.f32.mrf.mxu3 }
 0x7c9   :  { %v1900_v27 = vadd.f32 %v1870_v12, %v1858_v36  ;;  %v1920_v6 = vadd.f32 %v1883_v46, %v1859_v33 }
 0x7cb   :  { %v2757_v21 = vmul.f32 -1.442695, %v1900_v27  ;;  %v2758_v63 = vmul.f32 -1.442695, %v1920_v6  ;;  %v1898_v55 = vpop.f32.mrf.mxu0 }
 0x7cd   :  { %2954 = vpow2.f32 %v2757_v21 }
 0x7ce   :  { %2956 = vpow2.f32 %v2758_v63 }
 0x7d0   :  { %v1872_v10 = vpop.f32.mrf.mxu2  ;;  %v1885_v57 = vpop.f32.mrf.mxu3 }
 0x7d3   :  { %v2955_v14 = vpop.eup %2954 }
 0x7d4   :  { %v2957_v19 = vpop.eup %2956  ;;  %v1904_v22 = vadd.f32 1.0, %v2955_v14 }
 0x7d5   :  { %v1924_v26 = vadd.f32 1.0, %v2957_v19 }
 0x7d6   :  { %2958 = vrcp.f32 %v1904_v22  ;;  %v1916_v58 = vand.u32 2147483648, %v1904_v22  ;;  %v1914_v28 = vand.u32 2147483647, %v1904_v22  ;;  %vm1910_vm1 = vweird.f32 %v1904_v22 }
 0x7d7   :  { %2960 = vrcp.f32 %v1924_v26  ;;  %v1936_v53 = vand.u32 2147483648, %v1924_v26  ;;  %vm1930_vm5 = vweird.f32 %v1924_v26  ;;  %v1934_v32 = vand.u32 2147483647, %v1924_v26 }
 0x7d8   :  { %v1917_v29 = vor.u32 1.1754944e-38, %v1916_v58  ;;  %vm1915_vm3 = vcmp.eq.f32.partialorder %v1914_v28, 8.507059e+37 }
 0x7d9   :  { %v1937_v33 = vor.u32 1.1754944e-38, %v1936_v53  ;;  %vm1935_vm7 = vcmp.eq.f32.partialorder %v1934_v32, 8.507059e+37 }
 0x7dc   :  { %v2959_v31 = vpop.eup %2958 }
 0x7dd   :  { %v2961_v39 = vpop.eup %2960  ;;  %v1906_v35 = vmul.f32 %v2959_v31, %v1904_v22  ;;  %vm1911_vm0 = vweird.f32 %v2959_v31 }
 0x7de   :  { %v1926_v42 = vmul.f32 %v2961_v39, %v1924_v26  ;;  %vm1912_vm2 = vmor %vm1910_vm1, %vm1911_vm0  ;;  %vm1931_vm4 = vweird.f32 %v2961_v39 }
 0x7df   :  { %v1907_v49 = vsub.f32 1.0, %v1906_v35  ;;  %vm1932_vm6 = vmor %vm1930_vm5, %vm1931_vm4 }
 0x7e0   :  { %v1927_v16 = vsub.f32 1.0, %v1926_v42 }
 0x7e1   :  { %v1908_v25 = vmul.f32 %v2959_v31, %v1907_v49 }
 0x7e2   :  { %v1928_v37 = vmul.f32 %v2961_v39, %v1927_v16 }
 0x7e3   :  { %v1909_v43 = vadd.f32 %v2959_v31, %v1908_v25 }
 0x7e4   :  { %v1929_v47 = vadd.f32 %v2961_v39, %v1928_v37 }
 0x7e5   :  { %v1913_v52 = vsel %vm1912_vm2, %v2959_v31, %v1909_v43 }
 0x7e6   :  { %v1918_v17 = vsel %vm1915_vm3, %v1917_v29, %v1913_v52  ;;  %v1933_v36 = vsel %vm1932_vm6, %v2961_v39, %v1929_v47 }
 0x7e7   :  { %v1941_v59 = vmul.f32 %v1940_v38, %v1918_v17  ;;  %v1938_v12 = vsel %vm1935_vm7, %v1937_v33, %v1933_v36 }
 0x7e8   :  { %v1944_v46 = vsub.f32 1.0, %v1938_v12  ;;  %v1946_v6 = vmul.f32 %v1938_v12, %v3935_v18  ;;  %v1950_v18 = vld [vmem:[#allocation2 + $0x24] sm:$0xff] }
 0x7e9   :  { %v1942_v40 = vadd.f32 %v1941_v59, %v1860_v41  ;;  %v1952_v55 = vunpack.c.l.bf16 %v1950_v18  ;;  %v1953_v19 = vunpack.c.h.bf16 %v1950_v18  ;;  %v1951_v41 = vld [vmem:[#allocation2 + $0x2c] sm:$0xf] }
 0x7ea   :  { %v1954_v33 = vunpack.c.l.bf16 %v1951_v41 }
 0x7eb   :  { %2962 = vtanh.f32 %v1942_v40 }
 0x7f1   :  { %v2963_v27 = vpop.eup %2962 }
 0x7f2   :  { %v1945_v13 = vmul.f32 %v2963_v27, %v1944_v46 }
 0x7f4   :  { %v3968_v21 = vadd.f32 %v1946_v6, %v1945_v13 }
 0x7f6   :  { %v1948_v63 = vpack.c.bf16 %v3968_v21, %v3968_v21 }
 0x7f8   :  { %2759 = vst [vmem:[%s4079_s5 + $0x8] sm:$0xf] %v1948_v63  ;;  %1963 = vmatmul.bf16.vlgmr.msra.gmra.mxu1 %v1948_v63  ;;  %1976 = vmatmul.bf16.vlgmr.msra.gmra.mxu2 %v1948_v63 }
 0x7f9   :  { %1989 = vmatmul.bf16.vlgmr.msra.gmra.mxu3 %v1948_v63  ;;  %2169 = vmatpush.bf16.msra.mxu1 %v3774_v11 }
 0x7fa   :  { %2237 = vmatpush.bf16.msra.mxu2 %v3722_v2  ;;  %2250 = vmatpush.bf16.msra.mxu3 %v3772_v3 }
 0x7fd   :  { %2170 = vmatpush.bf16.msra.mxu1 %v3783_v44 }
 0x7fe   :  { %2238 = vmatpush.bf16.msra.mxu2 %v3728_v61  ;;  %2251 = vmatpush.bf16.msra.mxu3 %v3781_v30 }
 0x801   :  { %2171 = vmatpush.bf16.msra.mxu1 %v3790_v9 }
 0x802   :  { %2239 = vmatpush.bf16.msra.mxu2 %v3732_v20  ;;  %2252 = vmatpush.bf16.msra.mxu3 %v3786_v5 }
 0x805   :  { %2172 = vmatpush.bf16.msra.mxu1 %v3797_v15 }
 0x806   :  { %2240 = vmatpush.bf16.msra.mxu2 %v3736_v34  ;;  %2253 = vmatpush.bf16.msra.mxu3 %v3793_v56 }
 0x809   :  { %2173 = vmatpush.bf16.msra.mxu1 %v3804_v1 }
 0x80a   :  { %2241 = vmatpush.bf16.msra.mxu2 %v3740_v51  ;;  %2254 = vmatpush.bf16.msra.mxu3 %v3802_v60 }
 0x80d   :  { %2174 = vmatpush.bf16.msra.mxu1 %v3813_v7 }
 0x80e   :  { %2242 = vmatpush.bf16.msra.mxu2 %v3744_v0  ;;  %2255 = vmatpush.bf16.msra.mxu3 %v3807_v8 }
 0x811   :  { %2175 = vmatpush.bf16.msra.mxu1 %v3824_v4 }
 0x812   :  { %2243 = vmatpush.bf16.msra.mxu2 %v3748_v24  ;;  %2256 = vmatpush.bf16.msra.mxu3 %v3817_v48 }
 0x815   :  { %2176 = vmatpush.bf16.msra.mxu1 %v3833_v45 }
 0x816   :  { %2244 = vmatpush.bf16.msra.mxu2 %v3752_v54  ;;  %2257 = vmatpush.bf16.msra.mxu3 %v3829_v23 }
 0x875   :  { %v1964_v10 = vpop.f32.mrf.mxu1 }
 0x876   :  { %v1994_v57 = vadd.f32 %v1964_v10, %v1952_v55 }
 0x878   :  { %v2760_v14 = vmul.f32 -1.442695, %v1994_v57 }
 0x87a   :  { %2964 = vpow2.f32 %v2760_v14 }
 0x87b   :  { %v1977_v22 = vpop.f32.mrf.mxu2 }
 0x87c   :  { %v2014_v26 = vadd.f32 %v1977_v22, %v1953_v19  ;;  %v1990_v31 = vpop.f32.mrf.mxu3 }
 0x87d   :  { %v1966_v39 = vpop.f32.mrf.mxu1  ;;  %v2034_v36 = vadd.f32 %v3899_v62, %v1990_v31 }
 0x87e   :  { %v2761_v35 = vmul.f32 -1.442695, %v2014_v26 }
 0x880   :  { %v2965_v42 = vpop.eup %2964  ;;  %2966 = vpow2.f32 %v2761_v35 }
 0x881   :  { %v1998_v49 = vadd.f32 1.0, %v2965_v42 }
 0x883   :  { %2968 = vrcp.f32 %v1998_v49  ;;  %v1979_v58 = vpop.f32.mrf.mxu2  ;;  %v2010_v29 = vand.u32 2147483648, %v1998_v49  ;;  %v2008_v52 = vand.u32 2147483647, %v1998_v49  ;;  %vm2004_vm9 = vweird.f32 %v1998_v49 }
 0x884   :  { %v1992_v16 = vpop.f32.mrf.mxu3 }
 0x885   :  { %v2011_v53 = vor.u32 1.1754944e-38, %v2010_v29  ;;  %vm2009_vm11 = vcmp.eq.f32.partialorder %v2008_v52, 8.507059e+37 }
 0x886   :  { %v2967_v25 = vpop.eup %2966 }
 0x887   :  { %v2018_v28 = vadd.f32 1.0, %v2967_v25 }
 0x889   :  { %v2969_v37 = vpop.eup %2968  ;;  %2970 = vrcp.f32 %v2018_v28  ;;  %v2030_v27 = vand.u32 2147483648, %v2018_v28  ;;  %v2028_v6 = vand.u32 2147483647, %v2018_v28  ;;  %vm2024_vm13 = vweird.f32 %v2018_v28 }
 0x88a   :  { %v2000_v43 = vmul.f32 %v2969_v37, %v1998_v49  ;;  %vm2005_vm8 = vweird.f32 %v2969_v37 }
 0x88b   :  { %vm2006_vm10 = vmor %vm2004_vm9, %vm2005_vm8  ;;  %v2031_v55 = vor.u32 1.1754944e-38, %v2030_v27  ;;  %vm2029_vm15 = vcmp.eq.f32.partialorder %v2028_v6, 8.507059e+37 }
 0x88c   :  { %v2001_v50 = vsub.f32 1.0, %v2000_v43 }
 0x88e   :  { %v2002_v38 = vmul.f32 %v2969_v37, %v2001_v50 }
 0x88f   :  { %v2971_v17 = vpop.eup %2970 }
 0x890   :  { %v2020_v47 = vmul.f32 %v2971_v17, %v2018_v28  ;;  %v2003_v59 = vadd.f32 %v2969_v37, %v2002_v38  ;;  %vm2025_vm12 = vweird.f32 %v2971_v17  ;;  %v2045_v38 = vld [vmem:[#allocation2 + $0x38] sm:$0xf] }
 0x891   :  { %vm2026_vm14 = vmor %vm2024_vm13, %vm2025_vm12 }
 0x892   :  { %v2021_v32 = vsub.f32 1.0, %v2020_v47  ;;  %v2007_v40 = vsel %vm2006_vm10, %v2969_v37, %v2003_v59 }
 0x893   :  { %v2012_v12 = vsel %vm2009_vm11, %v2011_v53, %v2007_v40 }
 0x894   :  { %v2022_v46 = vmul.f32 %v2971_v17, %v2021_v32  ;;  %v2035_v13 = vmul.f32 %v2034_v36, %v2012_v12  ;;  %v2048_v32 = vunpack.c.l.bf16 %v2045_v38 }
 0x896   :  { %v2023_v63 = vadd.f32 %v2971_v17, %v2022_v46  ;;  %v2036_v18 = vadd.f32 %v2035_v13, %v1954_v33 }
 0x898   :  { %v2027_v10 = vsel %vm2026_vm14, %v2971_v17, %v2023_v63  ;;  %2972 = vtanh.f32 %v2036_v18 }
 0x899   :  { %v2032_v57 = vsel %vm2029_vm15, %v2031_v55, %v2027_v10 }
 0x89a   :  { %v2038_v14 = vsub.f32 1.0, %v2032_v57  ;;  %v2040_v26 = vmul.f32 %v2032_v57, %v3968_v21  ;;  %v2138_v57 = vld [vmem:[#allocation2 + $0x3c] sm:$0xff] }
 0x89e   :  { %v2973_v19 = vpop.eup %2972 }
 0x89f   :  { %v2039_v22 = vmul.f32 %v2973_v19, %v2038_v14  ;;  %v2141_v14 = vunpack.c.h.bf16 %v2138_v57 }
 0x8a1   :  { %v4001_v31 = vadd.f32 %v2040_v26, %v2039_v22 }
 0x8a3   :  { %v2042_v39 = vpack.c.bf16 %v4001_v31, %v4001_v31 }
 0x8a5   :  { %2762 = vst [vmem:[%s4079_s5 + $0xc] sm:$0xf] %v2042_v39  ;;  %2057 = vmatmul.bf16.vlgmr.msrb.gmra.mxu0 %v2042_v39  ;;  %2070 = vmatmul.bf16.vlgmr.msrb.gmra.mxu1 %v2042_v39 }
 0x8a6   :  { %2083 = vmatmul.bf16.vlgmr.msrb.gmra.mxu2 %v2042_v39  ;;  %2263 = vmatpush.bf16.msrb.mxu0 %v3774_v11 }
 0x8a7   :  { %2331 = vmatpush.bf16.msrb.mxu1 %v3722_v2  ;;  %2344 = vmatpush.bf16.msrb.mxu2 %v3772_v3  ;;  %v2044_v2 = vld [vmem:[#allocation2 + $0x30] sm:$0xff] }
 0x8aa   :  { %2264 = vmatpush.bf16.msrb.mxu0 %v3783_v44 }
 0x8ab   :  { %2332 = vmatpush.bf16.msrb.mxu1 %v3728_v61  ;;  %2345 = vmatpush.bf16.msrb.mxu2 %v3781_v30  ;;  %v2046_v61 = vunpack.c.l.bf16 %v2044_v2 }
 0x8ae   :  { %2265 = vmatpush.bf16.msrb.mxu0 %v3790_v9 }
 0x8af   :  { %2333 = vmatpush.bf16.msrb.mxu1 %v3732_v20  ;;  %2346 = vmatpush.bf16.msrb.mxu2 %v3786_v5  ;;  %v2047_v20 = vunpack.c.h.bf16 %v2044_v2 }
 0x8b2   :  { %2266 = vmatpush.bf16.msrb.mxu0 %v3797_v15 }
 0x8b3   :  { %2334 = vmatpush.bf16.msrb.mxu1 %v3736_v34  ;;  %2347 = vmatpush.bf16.msrb.mxu2 %v3793_v56 }
 0x8b6   :  { %2267 = vmatpush.bf16.msrb.mxu0 %v3804_v1 }
 0x8b7   :  { %2335 = vmatpush.bf16.msrb.mxu1 %v3740_v51  ;;  %2348 = vmatpush.bf16.msrb.mxu2 %v3802_v60 }
 0x8ba   :  { %2268 = vmatpush.bf16.msrb.mxu0 %v3813_v7 }
 0x8bb   :  { %2336 = vmatpush.bf16.msrb.mxu1 %v3744_v0  ;;  %2349 = vmatpush.bf16.msrb.mxu2 %v3807_v8 }
 0x8be   :  { %2269 = vmatpush.bf16.msrb.mxu0 %v3824_v4 }
 0x8bf   :  { %2337 = vmatpush.bf16.msrb.mxu1 %v3748_v24  ;;  %2350 = vmatpush.bf16.msrb.mxu2 %v3817_v48 }
 0x8c2   :  { %2270 = vmatpush.bf16.msrb.mxu0 %v3833_v45 }
 0x8c3   :  { %2338 = vmatpush.bf16.msrb.mxu1 %v3752_v54  ;;  %2351 = vmatpush.bf16.msrb.mxu2 %v3829_v23 }
 0x922   :  { %v2058_v34 = vpop.f32.mrf.mxu0  ;;  %v2071_v51 = vpop.f32.mrf.mxu1 }
 0x923   :  { %v2088_v0 = vadd.f32 %v2058_v34, %v2046_v61  ;;  %v2108_v3 = vadd.f32 %v2071_v51, %v2047_v20 }
 0x925   :  { %v2763_v30 = vmul.f32 -1.442695, %v2088_v0  ;;  %v2764_v5 = vmul.f32 -1.442695, %v2108_v3 }
 0x927   :  { %2974 = vpow2.f32 %v2763_v30 }
 0x928   :  { %2976 = vpow2.f32 %v2764_v5 }
 0x929   :  { %v2084_v24 = vpop.f32.mrf.mxu2 }
 0x92a   :  { %v2060_v56 = vpop.f32.mrf.mxu0  ;;  %v2073_v60 = vpop.f32.mrf.mxu1  ;;  %v2128_v47 = vadd.f32 %v3899_v62, %v2084_v24 }
 0x92d   :  { %v2975_v8 = vpop.eup %2974 }
 0x92e   :  { %v2977_v48 = vpop.eup %2976  ;;  %v2092_v21 = vadd.f32 1.0, %v2975_v8 }
 0x92f   :  { %v2112_v54 = vadd.f32 1.0, %v2977_v48  ;;  %v2139_v48 = vld [vmem:[#allocation2 + $0x44] sm:$0xf] }
 0x930   :  { %2978 = vrcp.f32 %v2092_v21  ;;  %v2104_v28 = vand.u32 2147483648, %v2092_v21  ;;  %v2102_v43 = vand.u32 2147483647, %v2092_v21  ;;  %vm2098_vm1 = vweird.f32 %v2092_v21 }
 0x931   :  { %2980 = vrcp.f32 %v2112_v54  ;;  %v2086_v23 = vpop.f32.mrf.mxu2  ;;  %v2124_v53 = vand.u32 2147483648, %v2112_v54  ;;  %vm2118_vm5 = vweird.f32 %v2112_v54  ;;  %v2122_v36 = vand.u32 2147483647, %v2112_v54 }
 0x932   :  { %v2105_v52 = vor.u32 1.1754944e-38, %v2104_v28  ;;  %vm2103_vm3 = vcmp.eq.f32.partialorder %v2102_v43, 8.507059e+37 }
 0x933   :  { %v2125_v46 = vor.u32 1.1754944e-38, %v2124_v53  ;;  %vm2123_vm7 = vcmp.eq.f32.partialorder %v2122_v36, 8.507059e+37  ;;  %v2232_v53 = vld [vmem:[#allocation2 + $0x48] sm:$0xff] }
 0x936   :  { %v2979_v35 = vpop.eup %2978 }
 0x937   :  { %v2981_v42 = vpop.eup %2980  ;;  %v2094_v49 = vmul.f32 %v2979_v35, %v2092_v21  ;;  %vm2099_vm0 = vweird.f32 %v2979_v35 }
 0x938   :  { %v2114_v58 = vmul.f32 %v2981_v42, %v2112_v54  ;;  %vm2100_vm2 = vmor %vm2098_vm1, %vm2099_vm0  ;;  %vm2119_vm4 = vweird.f32 %v2981_v42 }
 0x939   :  { %v2095_v16 = vsub.f32 1.0, %v2094_v49  ;;  %vm2120_vm6 = vmor %vm2118_vm5, %vm2119_vm4 }
 0x93a   :  { %v2115_v25 = vsub.f32 1.0, %v2114_v58  ;;  %v2142_v58 = vunpack.c.l.bf16 %v2139_v48 }
 0x93b   :  { %v2096_v37 = vmul.f32 %v2979_v35, %v2095_v16 }
 0x93c   :  { %v2116_v50 = vmul.f32 %v2981_v42, %v2115_v25 }
 0x93d   :  { %v2097_v29 = vadd.f32 %v2979_v35, %v2096_v37 }
 0x93e   :  { %v2117_v41 = vadd.f32 %v2981_v42, %v2116_v50 }
 0x93f   :  { %v2101_v17 = vsel %vm2100_vm2, %v2979_v35, %v2097_v29 }
 0x940   :  { %v2106_v59 = vsel %vm2103_vm3, %v2105_v52, %v2101_v17  ;;  %v2121_v12 = vsel %vm2120_vm6, %v2981_v42, %v2117_v41 }
 0x941   :  { %v2129_v40 = vmul.f32 %v2128_v47, %v2106_v59  ;;  %v2126_v27 = vsel %vm2123_vm7, %v2125_v46, %v2121_v12 }
 0x942   :  { %v2132_v13 = vsub.f32 1.0, %v2126_v27  ;;  %v2134_v18 = vmul.f32 %v2126_v27, %v4001_v31 }
 0x943   :  { %v2130_v33 = vadd.f32 %v2129_v40, %v2048_v32  ;;  %v2234_v32 = vunpack.c.l.bf16 %v2232_v53  ;;  %v2235_v40 = vunpack.c.h.bf16 %v2232_v53 }
 0x945   :  { %2982 = vtanh.f32 %v2130_v33 }
 0x94b   :  { %v2983_v6 = vpop.eup %2982 }
 0x94c   :  { %v2133_v63 = vmul.f32 %v2983_v6, %v2132_v13 }
 0x94e   :  { %v4034_v55 = vadd.f32 %v2134_v18, %v2133_v63 }
 0x950   :  { %v2136_v10 = vpack.c.bf16 %v4034_v55, %v4034_v55 }
 0x952   :  { %2765 = vst [vmem:[%s4079_s5 + $0x10] sm:$0xf] %v2136_v10  ;;  %2151 = vmatmul.bf16.vlgmr.msrb.gmra.mxu3 %v2136_v10  ;;  %2164 = vmatmul.bf16.vlgmr.msra.gmra.mxu0 %v2136_v10 }
 0x953   :  { %2177 = vmatmul.bf16.vlgmr.msra.gmra.mxu1 %v2136_v10  ;;  %2357 = vmatpush.bf16.msrb.mxu3 %v3774_v11 }
 0x957   :  { %2358 = vmatpush.bf16.msrb.mxu3 %v3783_v44  ;;  %v2140_v44 = vunpack.c.l.bf16 %v2138_v57 }
 0x95b   :  { %2359 = vmatpush.bf16.msrb.mxu3 %v3790_v9 }
 0x95f   :  { %2360 = vmatpush.bf16.msrb.mxu3 %v3797_v15 }
 0x963   :  { %2361 = vmatpush.bf16.msrb.mxu3 %v3804_v1 }
 0x967   :  { %2362 = vmatpush.bf16.msrb.mxu3 %v3813_v7 }
 0x96b   :  { %2363 = vmatpush.bf16.msrb.mxu3 %v3824_v4 }
 0x96f   :  { %2364 = vmatpush.bf16.msrb.mxu3 %v3833_v45 }
 0x9cf   :  { %v2165_v19 = vpop.f32.mrf.mxu0 }
 0x9d0   :  { %v2202_v22 = vadd.f32 %v2165_v19, %v2141_v14  ;;  %v2178_v26 = vpop.f32.mrf.mxu1 }
 0x9d1   :  { %v2222_v54 = vadd.f32 %v3899_v62, %v2178_v26 }
 0x9d2   :  { %v2767_v11 = vmul.f32 -1.442695, %v2202_v22 }
 0x9d4   :  { %2984 = vpow2.f32 %v2767_v11 }
 0x9d5   :  { %v2152_v31 = vpop.f32.mrf.mxu3 }
 0x9d6   :  { %v2182_v9 = vadd.f32 %v2152_v31, %v2140_v44 }
 0x9d7   :  { %v2167_v39 = vpop.f32.mrf.mxu0 }
 0x9d8   :  { %v2766_v15 = vmul.f32 -1.442695, %v2182_v9  ;;  %v2180_v2 = vpop.f32.mrf.mxu1 }
 0x9da   :  { %v2985_v1 = vpop.eup %2984  ;;  %2986 = vpow2.f32 %v2766_v15 }
 0x9db   :  { %v2206_v7 = vadd.f32 1.0, %v2985_v1 }
 0x9dd   :  { %v2154_v61 = vpop.f32.mrf.mxu3  ;;  %2988 = vrcp.f32 %v2206_v7  ;;  %v2218_v49 = vand.u32 2147483648, %v2206_v7  ;;  %vm2212_vm13 = vweird.f32 %v2206_v7  ;;  %v2216_v25 = vand.u32 2147483647, %v2206_v7 }
 0x9df   :  { %v2219_v43 = vor.u32 1.1754944e-38, %v2218_v49  ;;  %vm2217_vm15 = vcmp.eq.f32.partialorder %v2216_v25, 8.507059e+37 }
 0x9e0   :  { %v2987_v4 = vpop.eup %2986 }
 0x9e1   :  { %v2186_v45 = vadd.f32 1.0, %v2987_v4 }
 0x9e3   :  { %2990 = vrcp.f32 %v2186_v45  ;;  %v2989_v20 = vpop.eup %2988  ;;  %v2198_v5 = vand.u32 2147483648, %v2186_v45  ;;  %v2196_v56 = vand.u32 2147483647, %v2186_v45  ;;  %vm2192_vm9 = vweird.f32 %v2186_v45 }
 0x9e4   :  { %v2208_v34 = vmul.f32 %v2989_v20, %v2206_v7  ;;  %vm2213_vm12 = vweird.f32 %v2989_v20  ;;  %v2233_v7 = vld [vmem:[#allocation2 + $0x50] sm:$0xf] }
 0x9e5   :  { %v2199_v21 = vor.u32 1.1754944e-38, %v2198_v5  ;;  %vm2197_vm11 = vcmp.eq.f32.partialorder %v2196_v56, 8.507059e+37  ;;  %vm2214_vm14 = vmor %vm2212_vm13, %vm2213_vm12 }
 0x9e6   :  { %v2209_v3 = vsub.f32 1.0, %v2208_v34 }
 0x9e8   :  { %v2210_v60 = vmul.f32 %v2989_v20, %v2209_v3 }
 0x9e9   :  { %v2991_v51 = vpop.eup %2990 }
 0x9ea   :  { %v2188_v0 = vmul.f32 %v2991_v51, %v2186_v45  ;;  %vm2193_vm8 = vweird.f32 %v2991_v51  ;;  %v2211_v35 = vadd.f32 %v2989_v20, %v2210_v60 }
 0x9eb   :  { %vm2194_vm10 = vmor %vm2192_vm9, %vm2193_vm8 }
 0x9ec   :  { %v2189_v30 = vsub.f32 1.0, %v2188_v0  ;;  %v2215_v37 = vsel %vm2214_vm14, %v2989_v20, %v2211_v35  ;;  %v2326_v35 = vld [vmem:[#allocation2 + $0x54] sm:$0xff] }
 0x9ed   :  { %v2220_v50 = vsel %vm2217_vm15, %v2219_v43, %v2215_v37  ;;  %v2329_v25 = vunpack.c.h.bf16 %v2326_v35 }
 0x9ee   :  { %v2190_v24 = vmul.f32 %v2991_v51, %v2189_v30  ;;  %v2226_v29 = vsub.f32 1.0, %v2220_v50  ;;  %v2228_v17 = vmul.f32 %v2220_v50, %v4034_v55 }
 0x9f0   :  { %v2191_v8 = vadd.f32 %v2991_v51, %v2190_v24 }
 0x9f2   :  { %v2195_v23 = vsel %vm2194_vm10, %v2991_v51, %v2191_v8  ;;  %v2236_v51 = vunpack.c.l.bf16 %v2233_v7 }
 0x9f3   :  { %v2200_v42 = vsel %vm2197_vm11, %v2199_v21, %v2195_v23 }
 0x9f4   :  { %v2223_v16 = vmul.f32 %v2222_v54, %v2200_v42  ;;  %v2328_v42 = vunpack.c.l.bf16 %v2326_v35 }
 0x9f6   :  { %v2224_v28 = vadd.f32 %v2223_v16, %v2142_v58 }
 0x9f8   :  { %2992 = vtanh.f32 %v2224_v28 }
 0x9fe   :  { %v2993_v38 = vpop.eup %2992 }
 0x9ff   :  { %v2227_v52 = vmul.f32 %v2993_v38, %v2226_v29 }
 0xa01   :  { %v4051_v47 = vadd.f32 %v2228_v17, %v2227_v52 }
 0xa03   :  { %v2230_v41 = vpack.c.bf16 %v4051_v47, %v4051_v47 }
 0xa05   :  { %2768 = vst [vmem:[%s4079_s5 + $0x14] sm:$0xf] %v2230_v41  ;;  %2245 = vmatmul.bf16.vlgmr.msra.gmra.mxu2 %v2230_v41  ;;  %2258 = vmatmul.bf16.vlgmr.msra.gmra.mxu3 %v2230_v41 }
 0xa06   :  { %2271 = vmatmul.bf16.vlgmr.msrb.gmra.mxu0 %v2230_v41 }
 0xa83   :  { %v2272_v59 = vpop.f32.mrf.mxu0 }
 0xa84   :  { %v2316_v4 = vadd.f32 %v3899_v62, %v2272_v59 }
 0xa88   :  { %v2246_v36 = vpop.f32.mrf.mxu2  ;;  %v2259_v33 = vpop.f32.mrf.mxu3 }
 0xa89   :  { %v2276_v12 = vadd.f32 %v2246_v36, %v2234_v32  ;;  %v2296_v46 = vadd.f32 %v2259_v33, %v2235_v40 }
 0xa8b   :  { %v2769_v27 = vmul.f32 -1.442695, %v2276_v12  ;;  %v2770_v13 = vmul.f32 -1.442695, %v2296_v46  ;;  %v2274_v6 = vpop.f32.mrf.mxu0 }
 0xa8d   :  { %2994 = vpow2.f32 %v2769_v27 }
 0xa8e   :  { %2996 = vpow2.f32 %v2770_v13  ;;  %v2327_v13 = vld [vmem:[#allocation2 + $0x5c] sm:$0xf] }
 0xa90   :  { %v2248_v63 = vpop.f32.mrf.mxu2  ;;  %v2261_v18 = vpop.f32.mrf.mxu3 }
 0xa93   :  { %v2995_v55 = vpop.eup %2994 }
 0xa94   :  { %v2997_v10 = vpop.eup %2996  ;;  %v2280_v57 = vadd.f32 1.0, %v2995_v55 }
 0xa95   :  { %v2300_v14 = vadd.f32 1.0, %v2997_v10  ;;  %v3015_v10 = vld [vmem:[%s4078_s4 + $0x1] ss:$0 sm:$0xff] }
 0xa96   :  { %2998 = vrcp.f32 %v2280_v57  ;;  %v2292_v31 = vand.u32 2147483648, %v2280_v57  ;;  %v2290_v15 = vand.u32 2147483647, %v2280_v57  ;;  %vm2286_vm1 = vweird.f32 %v2280_v57 }
 0xa97   :  { %3000 = vrcp.f32 %v2300_v14  ;;  %v2312_v3 = vand.u32 2147483648, %v2300_v14  ;;  %vm2306_vm5 = vweird.f32 %v2300_v14  ;;  %v2310_v30 = vand.u32 2147483647, %v2300_v14 }
 0xa98   :  { %v2293_v61 = vor.u32 1.1754944e-38, %v2292_v31  ;;  %vm2291_vm3 = vcmp.eq.f32.partialorder %v2290_v15, 8.507059e+37 }
 0xa99   :  { %v2313_v56 = vor.u32 1.1754944e-38, %v2312_v3  ;;  %vm2311_vm7 = vcmp.eq.f32.partialorder %v2310_v30, 8.507059e+37 }
 0xa9c   :  { %v2999_v19 = vpop.eup %2998 }
 0xa9d   :  { %v3001_v22 = vpop.eup %3000  ;;  %v2282_v26 = vmul.f32 %v2999_v19, %v2280_v57  ;;  %vm2287_vm0 = vweird.f32 %v2999_v19 }
 0xa9e   :  { %v2302_v11 = vmul.f32 %v3001_v22, %v2300_v14  ;;  %vm2288_vm2 = vmor %vm2286_vm1, %vm2287_vm0  ;;  %vm2307_vm4 = vweird.f32 %v3001_v22  ;;  %v2330_v14 = vunpack.c.l.bf16 %v2327_v13 }
 0xa9f   :  { %v2283_v44 = vsub.f32 1.0, %v2282_v26  ;;  %vm2308_vm6 = vmor %vm2306_vm5, %vm2307_vm4 }
 0xaa0   :  { %v2303_v9 = vsub.f32 1.0, %v2302_v11 }
 0xaa1   :  { %v2284_v39 = vmul.f32 %v2999_v19, %v2283_v44 }
 0xaa2   :  { %v2304_v2 = vmul.f32 %v3001_v22, %v2303_v9 }
 0xaa3   :  { %v2285_v1 = vadd.f32 %v2999_v19, %v2284_v39 }
 0xaa4   :  { %v2305_v34 = vadd.f32 %v3001_v22, %v2304_v2 }
 0xaa5   :  { %v2289_v45 = vsel %vm2288_vm2, %v2999_v19, %v2285_v1 }
 0xaa6   :  { %v2294_v20 = vsel %vm2291_vm3, %v2293_v61, %v2289_v45  ;;  %v2309_v24 = vsel %vm2308_vm6, %v3001_v22, %v2305_v34 }
 0xaa7   :  { %v2317_v0 = vmul.f32 %v2316_v4, %v2294_v20  ;;  %v2314_v60 = vsel %vm2311_vm7, %v2313_v56, %v2309_v24 }
 0xaa8   :  { %v2320_v8 = vsub.f32 1.0, %v2314_v60  ;;  %v2322_v21 = vmul.f32 %v2314_v60, %v4051_v47 }
 0xaa9   :  { %v2318_v5 = vadd.f32 %v2317_v0, %v2236_v51 }
 0xaab   :  { %3002 = vtanh.f32 %v2318_v5 }
 0xab1   :  { %v3003_v48 = vpop.eup %3002 }
 0xab2   :  { %v2321_v62 = vmul.f32 %v3003_v48, %v2320_v8 }
 0xab4   :  { %v4060_v54 = vadd.f32 %v2322_v21, %v2321_v62 }
 0xab6   :  { %v2324_v23 = vpack.c.bf16 %v4060_v54, %v4060_v54 }
 0xab8   :  { %2771 = vst [vmem:[%s4079_s5 + $0x18] sm:$0xf] %v2324_v23  ;;  %2339 = vmatmul.bf16.vlgmr.msrb.gmra.mxu1 %v2324_v23  ;;  %2352 = vmatmul.bf16.vlgmr.msrb.gmra.mxu2 %v2324_v23 }
 0xab9   :  { %2365 = vmatmul.bf16.vlgmr.msrb.gmra.mxu3 %v2324_v23 }
 0xb35   :  { %v2340_v49 = vpop.f32.mrf.mxu1 }
 0xb36   :  { %v2370_v58 = vadd.f32 %v2340_v49, %v2328_v42 }
 0xb38   :  { %v2772_v16 = vmul.f32 -1.442695, %v2370_v58 }
 0xb3a   :  { %3004 = vpow2.f32 %v2772_v16 }
 0xb3b   :  { %v2353_v28 = vpop.f32.mrf.mxu2 }
 0xb3c   :  { %v2390_v37 = vadd.f32 %v2353_v28, %v2329_v25  ;;  %v2366_v43 = vpop.f32.mrf.mxu3 }
 0xb3d   :  { %v2342_v50 = vpop.f32.mrf.mxu1  ;;  %v2410_v57 = vadd.f32 %v3015_v10, %v2366_v43 }
 0xb3e   :  { %v2773_v29 = vmul.f32 -1.442695, %v2390_v37 }
 0xb40   :  { %v3005_v38 = vpop.eup %3004  ;;  %3006 = vpow2.f32 %v2773_v29 }
 0xb41   :  { %v2374_v52 = vadd.f32 1.0, %v3005_v38 }
 0xb43   :  { %3008 = vrcp.f32 %v2374_v52  ;;  %v2355_v17 = vpop.f32.mrf.mxu2  ;;  %v2386_v36 = vand.u32 2147483648, %v2374_v52  ;;  %v2384_v12 = vand.u32 2147483647, %v2374_v52  ;;  %vm2380_vm9 = vweird.f32 %v2374_v52 }
 0xb44   :  { %v2368_v47 = vpop.f32.mrf.mxu3 }
 0xb45   :  { %v2387_v63 = vor.u32 1.1754944e-38, %v2386_v36  ;;  %vm2385_vm11 = vcmp.eq.f32.partialorder %v2384_v12, 8.507059e+37 }
 0xb46   :  { %v3007_v41 = vpop.eup %3006 }
 0xb47   :  { %v2394_v59 = vadd.f32 1.0, %v3007_v41 }
 0xb49   :  { %v3009_v53 = vpop.eup %3008  ;;  %3010 = vrcp.f32 %v2394_v59  ;;  %v2406_v26 = vand.u32 2147483648, %v2394_v59  ;;  %v2404_v44 = vand.u32 2147483647, %v2394_v59  ;;  %vm2400_vm13 = vweird.f32 %v2394_v59 }
 0xb4a   :  { %v2376_v32 = vmul.f32 %v3009_v53, %v2374_v52  ;;  %vm2381_vm8 = vweird.f32 %v3009_v53 }
 0xb4b   :  { %vm2382_vm10 = vmor %vm2380_vm9, %vm2381_vm8  ;;  %v2407_v39 = vor.u32 1.1754944e-38, %v2406_v26  ;;  %vm2405_vm15 = vcmp.eq.f32.partialorder %v2404_v44, 8.507059e+37 }
 0xb4c   :  { %v2377_v40 = vsub.f32 1.0, %v2376_v32 }
 0xb4e   :  { %v2378_v33 = vmul.f32 %v3009_v53, %v2377_v40 }
 0xb4f   :  { %v3011_v46 = vpop.eup %3010 }
 0xb50   :  { %v2396_v27 = vmul.f32 %v3011_v46, %v2394_v59  ;;  %v2379_v6 = vadd.f32 %v3009_v53, %v2378_v33  ;;  %vm2401_vm12 = vweird.f32 %v3011_v46 }
 0xb51   :  { %vm2402_vm14 = vmor %vm2400_vm13, %vm2401_vm12 }
 0xb52   :  { %v2397_v18 = vsub.f32 1.0, %v2396_v27  ;;  %v2383_v55 = vsel %vm2382_vm10, %v3009_v53, %v2379_v6 }
 0xb53   :  { %v2388_v19 = vsel %vm2385_vm11, %v2387_v63, %v2383_v55 }
 0xb54   :  { %v2398_v22 = vmul.f32 %v3011_v46, %v2397_v18  ;;  %v2411_v11 = vmul.f32 %v2410_v57, %v2388_v19 }
 0xb56   :  { %v2399_v31 = vadd.f32 %v3011_v46, %v2398_v22  ;;  %v2412_v9 = vadd.f32 %v2411_v11, %v2330_v14 }
 0xb58   :  { %v2403_v15 = vsel %vm2402_vm14, %v3011_v46, %v2399_v31  ;;  %3012 = vtanh.f32 %v2412_v9 }
 0xb59   :  { %v2408_v2 = vsel %vm2405_vm15, %v2407_v39, %v2403_v15 }
 0xb5a   :  { %v2414_v1 = vsub.f32 1.0, %v2408_v2  ;;  %v2416_v4 = vmul.f32 %v2408_v2, %v4060_v54 }
 0xb5e   :  { %v3013_v7 = vpop.eup %3012 }
 0xb5f   :  { %v2415_v61 = vmul.f32 %v3013_v7, %v2414_v1 }
 0xb61   :  { %v2417_v45 = vadd.f32 %v2416_v4, %v2415_v61 }
 0xb63   :  { %v2418_v20 = vpack.c.bf16 %v2417_v45, %v2417_v45 }
 0xb65   :  { %2774 = vst [vmem:[%s4079_s5 + $0x1c] sm:$0xf] %v2418_v20 }
 0xb66   :  { %2424 = vsyncpa [#allocation4], 1 }
 0xb67   :  { %2425 = vsyncpa [#allocation6], 1 }

</bundles_post_ra>
